<compile_context>
chip_gen: v7x
topology: tpu7x:2x2x1
jax: 0.10.0
libtpu: 0.0.40
codegen_flags: <defaults>
</compile_context>

<pallas_src>
import functools

import jax
import jax.numpy as jnp
from jax import lax
from jax.experimental import pallas as pl
from jax.experimental.pallas import tpu as pltpu


# --------------------------------------------------------------------------
# Row-tiled affine projection kernel with multiple input streams and multiple
# outputs:   out_j = sum_i x_i @ w_{j,i} + b_j     (bf16 matmuls, fp32 acc)
# Used for (a) the hoisted per-layer input projection of all gates, emitting
# separate fwd-gate / bwd-gate tensors (no host-side transpose or slice), and
# (b) the final linear head.  Separate fwd/bwd feature streams remove the
# inter-layer concatenate.
# --------------------------------------------------------------------------
def _make_affine_kernel(n_in, n_out):
    def kernel(*refs):
        x_refs = refs[:n_in]
        w_refs = refs[n_in:n_in + n_in * n_out]
        b_refs = refs[n_in + n_in * n_out:n_in + n_in * n_out + n_out]
        o_refs = refs[n_in + n_in * n_out + n_out:]
        xs = [xr[...].astype(jnp.bfloat16) for xr in x_refs]
        for j in range(n_out):
            acc = jnp.dot(xs[0], w_refs[j * n_in][...],
                          preferred_element_type=jnp.float32)
            for i in range(1, n_in):
                acc = acc + jnp.dot(xs[i], w_refs[j * n_in + i][...],
                                    preferred_element_type=jnp.float32)
            o_refs[j][...] = (acc + b_refs[j][...]).astype(o_refs[j].dtype)
    return kernel


def affine_rows(inputs, weight_groups, biases, *, row_block=512):
    """inputs[i]: (rows, K_i); weight_groups[j][i]: (K_i, N_j) bf16;
    biases[j]: (1, N_j) f32.  Returns a tuple of (rows, N_j) f32 arrays."""
    rows = inputs[0].shape[0]
    n_in = len(inputs)
    n_out = len(weight_groups)
    rb = min(rows, row_block)
    flat_w = [w for grp in weight_groups for w in grp]

    in_specs = (
        [pl.BlockSpec((rb, x.shape[1]), lambda i: (i, 0)) for x in inputs]
        + [pl.BlockSpec(w.shape, lambda i: (0, 0)) for w in flat_w]
        + [pl.BlockSpec(b.shape, lambda i: (0, 0)) for b in biases]
    )
    out_shapes = tuple(jax.ShapeDtypeStruct((rows, b.shape[-1]), jnp.float32)
                       for b in biases)
    out_specs = tuple(pl.BlockSpec((rb, b.shape[-1]), lambda i: (i, 0))
                      for b in biases)
    return pl.pallas_call(
        _make_affine_kernel(n_in, n_out),
        out_shape=out_shapes,
        grid=(pl.cdiv(rows, rb),),
        in_specs=in_specs,
        out_specs=out_specs,
        compiler_params=pltpu.CompilerParams(dimension_semantics=("parallel",)),
    )(*inputs, *flat_w, *biases)


# --------------------------------------------------------------------------
# Fused bidirectional LSTM recurrence over pre-projected gates.
# Grid iterates over time chunks (forward chunks ascend, backward chunks
# descend via the mirrored index map); h/c carries live in VMEM scratch.
# Gate order follows PyTorch nn.LSTM: [i, f, g, o], stored contiguously along
# the 4H lane axis.
# --------------------------------------------------------------------------
def _sigmoid(z):
    # sigmoid(z) = 0.5 * (1 + tanh(z / 2)): one EUP op instead of exp + recip.
    return 0.5 * (1.0 + jnp.tanh(0.5 * z))


def _make_bilstm_kernel(*, t_real, tq, nb, hidden):
    H = hidden
    has_pad = (nb * tq) != t_real

    def kernel(gxf_ref, gxb_ref, whf_ref, whb_ref, outf_ref, outb_ref,
               hf_ref, cf_ref, hb_ref, cb_ref):
        tc = pl.program_id(0)

        @pl.when(tc == 0)
        def _():
            hf_ref[...] = jnp.zeros_like(hf_ref)
            cf_ref[...] = jnp.zeros_like(cf_ref)
            hb_ref[...] = jnp.zeros_like(hb_ref)
            cb_ref[...] = jnp.zeros_like(cb_ref)

        # Recurrent weights hoisted out of the time loop.
        w_f = whf_ref[...]
        w_b = whb_ref[...]

        def cell(gx, h_prev, c_prev, w):
            # Single fused (Bp,H)@(H,4H) MXU dot per direction per step.
            pre = gx + jnp.dot(h_prev.astype(jnp.bfloat16), w,
                               preferred_element_type=jnp.float32)
            i_g = _sigmoid(pre[:, 0 * H:1 * H])
            f_g = _sigmoid(pre[:, 1 * H:2 * H])
            g_g = jnp.tanh(pre[:, 2 * H:3 * H])
            o_g = _sigmoid(pre[:, 3 * H:4 * H])
            c_new = f_g * c_prev + i_g * g_g
            h_new = o_g * jnp.tanh(c_new)
            return h_new, c_new

        def step(tl, carry):
            # Forward direction walks the chunk front-to-back ...
            h_new, c_new = cell(gxf_ref[tl], hf_ref[...], cf_ref[...], w_f)
            hf_ref[...] = h_new
            cf_ref[...] = c_new
            # NOTE: at H<128 this store is lane-masked; H multiple of 128 in the
            # model config makes it a full-width vst.
            outf_ref[tl] = h_new.astype(outf_ref.dtype)

            # ... backward direction walks it back-to-front.
            tr = tq - 1 - tl
            h_prev = hb_ref[...]
            c_prev = cb_ref[...]
            h_new, c_new = cell(gxb_ref[tr], h_prev, c_prev, w_b)
            if has_pad:
                # Padded trailing timesteps (t >= t_real) are processed FIRST by
                # the backward walk; hold the carry at its initial zero there.
                is_pad = (nb - 1 - tc) * tq + tr >= t_real
                h_new = jnp.where(is_pad, h_prev, h_new)
                c_new = jnp.where(is_pad, c_prev, c_new)
            hb_ref[...] = h_new
            cb_ref[...] = c_new
            outb_ref[tr] = h_new.astype(outb_ref.dtype)
            return carry

        # Cap the unroll so live pre-activations + carries stay in the vreg file.
        lax.fori_loop(0, tq, step, 0, unroll=min(tq, 8))

    return kernel


def _plan_time(T, Bp, H, *, max_tq=32, vmem_budget_bytes=8 << 20):
    """Choose the time-chunk size tq and padded length Tp = nb*tq.

    tq is as large as possible (amortizes ~0.35us per-grid-step overhead and
    feeds the DMA pipeline) subject to a conservative VMEM budget for the
    double-buffered gx/out blocks (matters on v7x with 64 MiB VMEM), and T is
    padded up instead of shrinking tq to a divisor of T."""
    def chunk_bytes(tq):
        gx = tq * Bp * 4 * H * 4        # fp32 gate projections, per direction
        out = tq * Bp * H * 2           # bf16 hidden outputs, per direction
        return 2 * 2 * (gx + out)       # 2 directions x double buffering
    tq_cap = max(1, min(max_tq, T))
    while tq_cap > 1 and chunk_bytes(tq_cap) > vmem_budget_bytes:
        tq_cap = (tq_cap + 1) // 2
    nb = -(-T // tq_cap)
    tq = -(-T // nb)
    return tq, nb, nb * tq


def bilstm_layer(gxf, gxb, whh_f, whh_b, *, t_real, tq):
    """gxf/gxb: (Tp, Bp, 4H) f32 pre-projected gates (fwd / bwd directions);
    whh_*: (H, 4H) bf16.  Returns two (Tp, Bp, H) bf16 hidden-state streams."""
    Tp, Bp, G = gxf.shape
    H = G // 4
    nb = Tp // tq

    gx_spec_f = pl.BlockSpec((tq, Bp, G), lambda tc: (tc, 0, 0))
    gx_spec_b = pl.BlockSpec((tq, Bp, G), lambda tc: (nb - 1 - tc, 0, 0))
    w_spec = pl.BlockSpec((H, G), lambda tc: (0, 0))

    return pl.pallas_call(
        _make_bilstm_kernel(t_real=t_real, tq=tq, nb=nb, hidden=H),
        out_shape=(jax.ShapeDtypeStruct((Tp, Bp, H), jnp.bfloat16),
                   jax.ShapeDtypeStruct((Tp, Bp, H), jnp.bfloat16)),
        grid=(nb,),
        in_specs=[gx_spec_f, gx_spec_b, w_spec, w_spec],
        out_specs=(pl.BlockSpec((tq, Bp, H), lambda tc: (tc, 0, 0)),
                   pl.BlockSpec((tq, Bp, H), lambda tc: (nb - 1 - tc, 0, 0))),
        scratch_shapes=[pltpu.VMEM((Bp, H), jnp.float32) for _ in range(4)],
        compiler_params=pltpu.CompilerParams(
            dimension_semantics=("arbitrary",)),   # sequential recurrence
    )(gxf, gxb, whh_f, whh_b)


# --------------------------------------------------------------------------
# Parameter construction (deterministic; PyTorch-equivalent shapes, stored in
# the kernel-friendly layouts described above).
# --------------------------------------------------------------------------
def init_params(key, input_size, output_size, hidden_dim, num_layers):
    H = hidden_dim
    k_h = 1.0 / float(H) ** 0.5

    def u(k, shape, bound):
        return jax.random.uniform(k, shape, jnp.float32, -bound, bound)

    params = {"lstm": []}
    for layer in range(num_layers):
        d_in = input_size if layer == 0 else 2 * H
        key, kwf, kwb, khf, khb, kf1, kf2, kb1, kb2 = jax.random.split(key, 9)
        # Input-projection weights, pre-transposed: (d_in, 4H) per direction,
        # gate order [i, f, g, o].
        wih_f = u(kwf, (d_in, 4 * H), k_h)
        wih_b = u(kwb, (d_in, 4 * H), k_h)
        lp = {
            # Recurrent weights per direction: (H, 4H) == weight_hh.T, bf16.
            "whh_f": u(khf, (H, 4 * H), k_h).astype(jnp.bfloat16),
            "whh_b": u(khb, (H, 4 * H), k_h).astype(jnp.bfloat16),
            # b_ih + b_hh, folded into the hoisted projection.
            "bias_f": (u(kf1, (4 * H,), k_h) + u(kf2, (4 * H,), k_h)).reshape(1, 4 * H),
            "bias_b": (u(kb1, (4 * H,), k_h) + u(kb2, (4 * H,), k_h)).reshape(1, 4 * H),
        }
        if layer == 0:
            lp["wih_f"] = (wih_f.astype(jnp.bfloat16),)
            lp["wih_b"] = (wih_b.astype(jnp.bfloat16),)
        else:
            # Split rows so the layer input stays as separate fwd/bwd streams.
            lp["wih_f"] = (wih_f[:H].astype(jnp.bfloat16),
                           wih_f[H:].astype(jnp.bfloat16))
            lp["wih_b"] = (wih_b[:H].astype(jnp.bfloat16),
                           wih_b[H:].astype(jnp.bfloat16))
        params["lstm"].append(lp)

    key, kw, kb = jax.random.split(key, 3)
    k_l = 1.0 / float(2 * H) ** 0.5
    w_lin = u(kw, (2 * H, output_size), k_l)
    b_lin = u(kb, (output_size,), k_l)
    o_pad = -(-output_size // 128) * 128          # lane-dense head output
    w_pad = jnp.zeros((2 * H, o_pad), jnp.float32).at[:, :output_size].set(w_lin)
    b_pad = jnp.zeros((1, o_pad), jnp.float32).at[:, :output_size].set(b_lin)
    params["head"] = {
        "w": (w_pad[:H].astype(jnp.bfloat16), w_pad[H:].astype(jnp.bfloat16)),
        "b": b_pad,
    }
    return params


# --------------------------------------------------------------------------
# Full forward pass matching BayesianBLSTM.forward (eval-mode dropout).
# --------------------------------------------------------------------------
def bayesian_blstm_forward(x_btd, params, *, output_size):
    B, T, D = x_btd.shape
    H = params["lstm"][0]["whh_f"].shape[0]
    Bp = ((B + 7) // 8) * 8                         # fill the sublane dimension
    tq, _, Tp = _plan_time(T, Bp, H)

    x = jnp.transpose(x_btd.astype(jnp.float32), (1, 0, 2))        # (T, B, D)
    x = jnp.pad(x, ((0, Tp - T), (0, Bp - B), (0, 0)))              # (Tp, Bp, D)
    rows = Tp * Bp

    feats = (x.reshape(rows, D),)
    for lp in params["lstm"]:
        # Hoisted input projection for BOTH directions at once; bias folded in;
        # fwd/bwd gate blocks come out as separate tensors -> no transpose/slice.
        gxf, gxb = affine_rows(list(feats),
                               [list(lp["wih_f"]), list(lp["wih_b"])],
                               [lp["bias_f"], lp["bias_b"]])
        outf, outb = bilstm_layer(gxf.reshape(Tp, Bp, 4 * H),
                                  gxb.reshape(Tp, Bp, 4 * H),
                                  lp["whh_f"], lp["whh_b"],
                                  t_real=T, tq=tq)
        # Inter-layer MC dropout: identity in eval mode.
        feats = (outf.reshape(rows, H), outb.reshape(rows, H))      # bf16

    # linear_dropout: identity in eval mode.
    head = params["head"]
    (y,) = affine_rows(list(feats), [list(head["w"])], [head["b"]])
    o_pad = head["b"].shape[-1]
    y = y.reshape(Tp, Bp, o_pad)[:T, :B, :output_size]
    return jnp.transpose(y, (1, 0, 2))                              # (B, T, O)


# --------------------------------------------------------------------------
# Pure-JAX fp32 reference (same bf16-stored weights) for a sanity check.
# --------------------------------------------------------------------------
def _reference_forward(x_btd, params, *, output_size):
    def run_dir(gx, whh):              # gx: (T, B, 4H) f32, whh: (H, 4H) f32
        H = whh.shape[0]
        def step(carry, g):
            h, c = carry
            pre = g + h @ whh
            i = jax.nn.sigmoid(pre[:, :H])
            f = jax.nn.sigmoid(pre[:, H:2 * H])
            gg = jnp.tanh(pre[:, 2 * H:3 * H])
            o = jax.nn.sigmoid(pre[:, 3 * H:])
            c = f * c + i * gg
            h = o * jnp.tanh(c)
            return (h, c), h
        B = gx.shape[1]
        z = jnp.zeros((B, H), jnp.float32)
        _, hs = lax.scan(step, (z, z), gx)
        return hs

    feats = [jnp.transpose(x_btd.astype(jnp.float32), (1, 0, 2))]
    for lp in params["lstm"]:
        gxf = sum(f @ w.astype(jnp.float32) for f, w in zip(feats, lp["wih_f"])) + lp["bias_f"]
        gxb = sum(f @ w.astype(jnp.float32) for f, w in zip(feats, lp["wih_b"])) + lp["bias_b"]
        hf = run_dir(gxf, lp["whh_f"].astype(jnp.float32))
        hb = run_dir(gxb[::-1], lp["whh_b"].astype(jnp.float32))[::-1]
        feats = [hf, hb]
    head = params["head"]
    y = sum(f @ w.astype(jnp.float32) for f, w in zip(feats, head["w"])) + head["b"]
    return jnp.transpose(y[..., :output_size], (1, 0, 2))


if __name__ == "__main__":
    # Small shapes consistent with the module.
    B, T = 2, 8
    INPUT_SIZE, OUTPUT_SIZE = 4, 2
    HIDDEN_DIM, NUM_LAYERS = 32, 2

    key = jax.random.PRNGKey(0)
    key, kx = jax.random.split(key)
    x = jax.random.normal(kx, (B, T, INPUT_SIZE), jnp.float32)

    params = init_params(key, INPUT_SIZE, OUTPUT_SIZE, HIDDEN_DIM, NUM_LAYERS)

    fwd = jax.jit(functools.partial(bayesian_blstm_forward,
                                    output_size=OUTPUT_SIZE))
    y = jax.block_until_ready(fwd(x, params))

    assert y.shape == (B, T, OUTPUT_SIZE), y.shape
    assert y.dtype == jnp.float32
    assert bool(jnp.all(jnp.isfinite(y)))

    # Loose tolerance: kernel runs matmuls in bf16 with fp32 accumulation and
    # stores inter-layer activations in bf16; reference is fp32 throughout.
    y_ref = _reference_forward(x, params, output_size=OUTPUT_SIZE)
    assert bool(jnp.allclose(y, y_ref, rtol=5e-2, atol=5e-2)), (
        float(jnp.max(jnp.abs(y - y_ref))))

    print("KERNEL_OK")
</pallas_src>

<mosaic_0001>
module attributes {stable_mosaic.version = 11 : i64} {
  func.func @kernel(%arg0: i32, %arg1: memref<64x4xf32, #tpu.memory_space<vmem>>, %arg2: memref<4x128xbf16, #tpu.memory_space<vmem>>, %arg3: memref<4x128xbf16, #tpu.memory_space<vmem>>, %arg4: memref<1x128xf32, #tpu.memory_space<vmem>>, %arg5: memref<1x128xf32, #tpu.memory_space<vmem>>, %arg6: memref<64x128xf32, #tpu.memory_space<vmem>>, %arg7: memref<64x128xf32, #tpu.memory_space<vmem>>) attributes {dimension_semantics = [#tpu.dimension_semantics<parallel>], iteration_bounds = array<i64: 1>, scalar_prefetch = 0 : i64, scratch_operands = 0 : i64, tpu.core_type = #tpu.core_type<tc>, window_params = [{transform_indices = @transform_0, window_bounds = array<i64: 64, 4>}, {pipeline_mode = #tpu.pipeline_mode<synchronous>, transform_indices = @transform_1, window_bounds = array<i64: 4, 128>}, {pipeline_mode = #tpu.pipeline_mode<synchronous>, transform_indices = @transform_2, window_bounds = array<i64: 4, 128>}, {pipeline_mode = #tpu.pipeline_mode<synchronous>, transform_indices = @transform_3, window_bounds = array<i64: 1, 128>}, {pipeline_mode = #tpu.pipeline_mode<synchronous>, transform_indices = @transform_4, window_bounds = array<i64: 1, 128>}, {transform_indices = @transform_5, window_bounds = array<i64: 64, 128>}, {transform_indices = @transform_6, window_bounds = array<i64: 64, 128>}]} {
    %c0 = arith.constant 0 : index
    %c0_0 = arith.constant 0 : index
    %0 = vector.load %arg1[%c0, %c0_0] : memref<64x4xf32, #tpu.memory_space<vmem>>, vector<64x4xf32>
    %1 = arith.truncf %0 : vector<64x4xf32> to vector<64x4xbf16>
    %c0_1 = arith.constant 0 : index
    %c0_2 = arith.constant 0 : index
    %2 = vector.load %arg2[%c0_1, %c0_2] : memref<4x128xbf16, #tpu.memory_space<vmem>>, vector<4x128xbf16>
    %cst = arith.constant dense<0.000000e+00> : vector<64x128xf32>
    %3 = tpu.matmul %1, %2, %cst {dimension_numbers = #tpu.dot_dimension_numbers<[1], [0], [0], [1], [0, 0, 1, 1], [], []>} : vector<64x4xbf16>, vector<4x128xbf16>, vector<64x128xf32> -> vector<64x128xf32>
    %c0_3 = arith.constant 0 : index
    %c0_4 = arith.constant 0 : index
    %4 = vector.load %arg4[%c0_3, %c0_4] : memref<1x128xf32, #tpu.memory_space<vmem>>, vector<1x128xf32>
    %5 = vector.broadcast %4 : vector<1x128xf32> to vector<64x128xf32>
    %6 = arith.addf %3, %5 : vector<64x128xf32>
    %c0_5 = arith.constant 0 : index
    %c0_6 = arith.constant 0 : index
    %7 = vector.load %arg6[%c0_5, %c0_6] : memref<64x128xf32, #tpu.memory_space<vmem>>, vector<64x128xf32>
    tpu.vector_store %arg6[%c0_5, %c0_6], %6 {strides = array<i32>} : memref<64x128xf32, #tpu.memory_space<vmem>>, vector<64x128xf32>,
    %c0_7 = arith.constant 0 : index
    %c0_8 = arith.constant 0 : index
    %8 = vector.load %arg3[%c0_7, %c0_8] : memref<4x128xbf16, #tpu.memory_space<vmem>>, vector<4x128xbf16>
    %cst_9 = arith.constant dense<0.000000e+00> : vector<64x128xf32>
    %9 = tpu.matmul %1, %8, %cst_9 {dimension_numbers = #tpu.dot_dimension_numbers<[1], [0], [0], [1], [0, 0, 1, 1], [], []>} : vector<64x4xbf16>, vector<4x128xbf16>, vector<64x128xf32> -> vector<64x128xf32>
    %c0_10 = arith.constant 0 : index
    %c0_11 = arith.constant 0 : index
    %10 = vector.load %arg5[%c0_10, %c0_11] : memref<1x128xf32, #tpu.memory_space<vmem>>, vector<1x128xf32>
    %11 = vector.broadcast %10 : vector<1x128xf32> to vector<64x128xf32>
    %12 = arith.addf %9, %11 : vector<64x128xf32>
    %c0_12 = arith.constant 0 : index
    %c0_13 = arith.constant 0 : index
    %13 = vector.load %arg7[%c0_12, %c0_13] : memref<64x128xf32, #tpu.memory_space<vmem>>, vector<64x128xf32>
    tpu.vector_store %arg7[%c0_12, %c0_13], %12 {strides = array<i32>} : memref<64x128xf32, #tpu.memory_space<vmem>>, vector<64x128xf32>,
    return
  }
  func.func @transform_0(%arg0: i32) -> (i32, i32) {
    %c0_i32 = arith.constant 0 : i32
    %c0_i32_0 = arith.constant 0 : i32
    return %arg0, %c0_i32 : i32, i32
  }
  func.func @transform_1(%arg0: i32) -> (i32, i32) {
    %c0_i32 = arith.constant 0 : i32
    %c0_i32_0 = arith.constant 0 : i32
    %c0_i32_1 = arith.constant 0 : i32
    return %c0_i32, %c0_i32_0 : i32, i32
  }
  func.func @transform_2(%arg0: i32) -> (i32, i32) {
    %c0_i32 = arith.constant 0 : i32
    %c0_i32_0 = arith.constant 0 : i32
    %c0_i32_1 = arith.constant 0 : i32
    return %c0_i32, %c0_i32_0 : i32, i32
  }
  func.func @transform_3(%arg0: i32) -> (i32, i32) {
    %c0_i32 = arith.constant 0 : i32
    %c0_i32_0 = arith.constant 0 : i32
    %c0_i32_1 = arith.constant 0 : i32
    return %c0_i32, %c0_i32_0 : i32, i32
  }
  func.func @transform_4(%arg0: i32) -> (i32, i32) {
    %c0_i32 = arith.constant 0 : i32
    %c0_i32_0 = arith.constant 0 : i32
    %c0_i32_1 = arith.constant 0 : i32
    return %c0_i32, %c0_i32_0 : i32, i32
  }
  func.func @transform_5(%arg0: i32) -> (i32, i32) {
    %c0_i32 = arith.constant 0 : i32
    %c0_i32_0 = arith.constant 0 : i32
    return %arg0, %c0_i32 : i32, i32
  }
  func.func @transform_6(%arg0: i32) -> (i32, i32) {
    %c0_i32 = arith.constant 0 : i32
    %c0_i32_0 = arith.constant 0 : i32
    return %arg0, %c0_i32 : i32, i32
  }
}

module attributes {stable_mosaic.version = 11 : i64} {
  func.func @kernel(%arg0: i32, %arg1: memref<8x8x128xf32, #tpu.memory_space<vmem>>, %arg2: memref<8x8x128xf32, #tpu.memory_space<vmem>>, %arg3: memref<32x128xbf16, #tpu.memory_space<vmem>>, %arg4: memref<32x128xbf16, #tpu.memory_space<vmem>>, %arg5: memref<8x8x32xbf16, #tpu.memory_space<vmem>>, %arg6: memref<8x8x32xbf16, #tpu.memory_space<vmem>>, %arg7: memref<8x32xf32, #tpu.memory_space<vmem>>, %arg8: memref<8x32xf32, #tpu.memory_space<vmem>>, %arg9: memref<8x32xf32, #tpu.memory_space<vmem>>, %arg10: memref<8x32xf32, #tpu.memory_space<vmem>>) attributes {dimension_semantics = [#tpu.dimension_semantics<arbitrary>], iteration_bounds = array<i64: 1>, scalar_prefetch = 0 : i64, scratch_operands = 4 : i64, tpu.core_type = #tpu.core_type<tc>, window_params = [{transform_indices = @transform_0, window_bounds = array<i64: 8, 8, 128>}, {transform_indices = @transform_1, window_bounds = array<i64: 8, 8, 128>}, {pipeline_mode = #tpu.pipeline_mode<synchronous>, transform_indices = @transform_2, window_bounds = array<i64: 32, 128>}, {pipeline_mode = #tpu.pipeline_mode<synchronous>, transform_indices = @transform_3, window_bounds = array<i64: 32, 128>}, {transform_indices = @transform_4, window_bounds = array<i64: 8, 8, 32>}, {transform_indices = @transform_5, window_bounds = array<i64: 8, 8, 32>}]} {
    %c0_i32 = arith.constant 0 : i32
    %0 = arith.cmpi eq, %arg0, %c0_i32 : i32
    %1 = arith.extui %0 : i1 to i32
    %c0_i32_0 = arith.constant 0 : i32
    %2 = arith.cmpi ne, %1, %c0_i32_0 : i32
    scf.if %2 {
      %cst_364 = arith.constant 0.000000e+00 : f32
      %749 = vector.broadcast %cst_364 : f32 to vector<8x32xf32>
      %c0_365 = arith.constant 0 : index
      %c0_366 = arith.constant 0 : index
      %750 = vector.load %arg7[%c0_365, %c0_366] : memref<8x32xf32, #tpu.memory_space<vmem>>, vector<8x32xf32>
      tpu.vector_store %arg7[%c0_365, %c0_366], %749 {strides = array<i32>} : memref<8x32xf32, #tpu.memory_space<vmem>>, vector<8x32xf32>,
      %cst_367 = arith.constant 0.000000e+00 : f32
      %751 = vector.broadcast %cst_367 : f32 to vector<8x32xf32>
      %c0_368 = arith.constant 0 : index
      %c0_369 = arith.constant 0 : index
      %752 = vector.load %arg8[%c0_368, %c0_369] : memref<8x32xf32, #tpu.memory_space<vmem>>, vector<8x32xf32>
      tpu.vector_store %arg8[%c0_368, %c0_369], %751 {strides = array<i32>} : memref<8x32xf32, #tpu.memory_space<vmem>>, vector<8x32xf32>,
      %cst_370 = arith.constant 0.000000e+00 : f32
      %753 = vector.broadcast %cst_370 : f32 to vector<8x32xf32>
      %c0_371 = arith.constant 0 : index
      %c0_372 = arith.constant 0 : index
      %754 = vector.load %arg9[%c0_371, %c0_372] : memref<8x32xf32, #tpu.memory_space<vmem>>, vector<8x32xf32>
      tpu.vector_store %arg9[%c0_371, %c0_372], %753 {strides = array<i32>} : memref<8x32xf32, #tpu.memory_space<vmem>>, vector<8x32xf32>,
      %cst_373 = arith.constant 0.000000e+00 : f32
      %755 = vector.broadcast %cst_373 : f32 to vector<8x32xf32>
      %c0_374 = arith.constant 0 : index
      %c0_375 = arith.constant 0 : index
      %756 = vector.load %arg10[%c0_374, %c0_375] : memref<8x32xf32, #tpu.memory_space<vmem>>, vector<8x32xf32>
      tpu.vector_store %arg10[%c0_374, %c0_375], %755 {strides = array<i32>} : memref<8x32xf32, #tpu.memory_space<vmem>>, vector<8x32xf32>,
    } else {
    }
    %c0 = arith.constant 0 : index
    %c0_1 = arith.constant 0 : index
    %3 = vector.load %arg3[%c0, %c0_1] : memref<32x128xbf16, #tpu.memory_space<vmem>>, vector<32x128xbf16>
    %c0_2 = arith.constant 0 : index
    %c0_3 = arith.constant 0 : index
    %4 = vector.load %arg4[%c0_2, %c0_3] : memref<32x128xbf16, #tpu.memory_space<vmem>>, vector<32x128xbf16>
    %c0_i32_4 = arith.constant 0 : i32
    %5 = arith.index_cast %c0_i32_4 : i32 to index
    %c0_5 = arith.constant 0 : index
    %c0_6 = arith.constant 0 : index
    %6 = vector.load %arg1[%5, %c0_5, %c0_6] : memref<8x8x128xf32, #tpu.memory_space<vmem>>, vector<1x8x128xf32>
    %7 = vector.shape_cast %6 : vector<1x8x128xf32> to vector<8x128xf32>
    %c0_7 = arith.constant 0 : index
    %c0_8 = arith.constant 0 : index
    %8 = vector.load %arg7[%c0_7, %c0_8] : memref<8x32xf32, #tpu.memory_space<vmem>>, vector<8x32xf32>
    %c0_9 = arith.constant 0 : index
    %c0_10 = arith.constant 0 : index
    %9 = vector.load %arg8[%c0_9, %c0_10] : memref<8x32xf32, #tpu.memory_space<vmem>>, vector<8x32xf32>
    %10 = arith.truncf %8 : vector<8x32xf32> to vector<8x32xbf16>
    %cst = arith.constant dense<0.000000e+00> : vector<8x128xf32>
    %11 = tpu.matmul %10, %3, %cst {dimension_numbers = #tpu.dot_dimension_numbers<[1], [0], [0], [1], [0, 0, 1, 1], [], []>} : vector<8x32xbf16>, vector<32x128xbf16>, vector<8x128xf32> -> vector<8x128xf32>
    %12 = arith.addf %7, %11 : vector<8x128xf32>
    %13 = vector.extract_strided_slice %12 {offsets = [0, 0], sizes = [8, 32], strides = [1, 1]} : vector<8x128xf32> to vector<8x32xf32>
    %cst_11 = arith.constant 5.000000e-01 : f32
    %14 = vector.broadcast %cst_11 : f32 to vector<8x32xf32>
    %15 = arith.mulf %14, %13 : vector<8x32xf32>
    %16 = math.tanh %15 : vector<8x32xf32>
    %cst_12 = arith.constant 1.000000e+00 : f32
    %17 = vector.broadcast %cst_12 : f32 to vector<8x32xf32>
    %18 = arith.addf %17, %16 : vector<8x32xf32>
    %cst_13 = arith.constant 5.000000e-01 : f32
    %19 = vector.broadcast %cst_13 : f32 to vector<8x32xf32>
    %20 = arith.mulf %19, %18 : vector<8x32xf32>
    %21 = vector.extract_strided_slice %12 {offsets = [0, 32], sizes = [8, 32], strides = [1, 1]} : vector<8x128xf32> to vector<8x32xf32>
    %cst_14 = arith.constant 5.000000e-01 : f32
    %22 = vector.broadcast %cst_14 : f32 to vector<8x32xf32>
    %23 = arith.mulf %22, %21 : vector<8x32xf32>
    %24 = math.tanh %23 : vector<8x32xf32>
    %cst_15 = arith.constant 1.000000e+00 : f32
    %25 = vector.broadcast %cst_15 : f32 to vector<8x32xf32>
    %26 = arith.addf %25, %24 : vector<8x32xf32>
    %cst_16 = arith.constant 5.000000e-01 : f32
    %27 = vector.broadcast %cst_16 : f32 to vector<8x32xf32>
    %28 = arith.mulf %27, %26 : vector<8x32xf32>
    %29 = vector.extract_strided_slice %12 {offsets = [0, 64], sizes = [8, 32], strides = [1, 1]} : vector<8x128xf32> to vector<8x32xf32>
    %30 = math.tanh %29 : vector<8x32xf32>
    %31 = vector.extract_strided_slice %12 {offsets = [0, 96], sizes = [8, 32], strides = [1, 1]} : vector<8x128xf32> to vector<8x32xf32>
    %cst_17 = arith.constant 5.000000e-01 : f32
    %32 = vector.broadcast %cst_17 : f32 to vector<8x32xf32>
    %33 = arith.mulf %32, %31 : vector<8x32xf32>
    %34 = math.tanh %33 : vector<8x32xf32>
    %cst_18 = arith.constant 1.000000e+00 : f32
    %35 = vector.broadcast %cst_18 : f32 to vector<8x32xf32>
    %36 = arith.addf %35, %34 : vector<8x32xf32>
    %cst_19 = arith.constant 5.000000e-01 : f32
    %37 = vector.broadcast %cst_19 : f32 to vector<8x32xf32>
    %38 = arith.mulf %37, %36 : vector<8x32xf32>
    %39 = arith.mulf %28, %9 : vector<8x32xf32>
    %40 = arith.mulf %20, %30 : vector<8x32xf32>
    %41 = arith.addf %39, %40 : vector<8x32xf32>
    %42 = math.tanh %41 : vector<8x32xf32>
    %43 = arith.mulf %38, %42 : vector<8x32xf32>
    %c0_20 = arith.constant 0 : index
    %c0_21 = arith.constant 0 : index
    %44 = vector.load %arg7[%c0_20, %c0_21] : memref<8x32xf32, #tpu.memory_space<vmem>>, vector<8x32xf32>
    tpu.vector_store %arg7[%c0_20, %c0_21], %43 {strides = array<i32>} : memref<8x32xf32, #tpu.memory_space<vmem>>, vector<8x32xf32>,
    %c0_22 = arith.constant 0 : index
    %c0_23 = arith.constant 0 : index
    %45 = vector.load %arg8[%c0_22, %c0_23] : memref<8x32xf32, #tpu.memory_space<vmem>>, vector<8x32xf32>
    tpu.vector_store %arg8[%c0_22, %c0_23], %41 {strides = array<i32>} : memref<8x32xf32, #tpu.memory_space<vmem>>, vector<8x32xf32>,
    %46 = arith.truncf %43 : vector<8x32xf32> to vector<8x32xbf16>
    %47 = arith.index_cast %c0_i32_4 : i32 to index
    %c0_24 = arith.constant 0 : index
    %c0_25 = arith.constant 0 : index
    %48 = vector.load %arg5[%47, %c0_24, %c0_25] : memref<8x8x32xbf16, #tpu.memory_space<vmem>>, vector<1x8x32xbf16>
    %49 = vector.shape_cast %48 : vector<1x8x32xbf16> to vector<8x32xbf16>
    %50 = vector.shape_cast %46 : vector<8x32xbf16> to vector<1x8x32xbf16>
    tpu.vector_store %arg5[%47, %c0_24, %c0_25], %50 {strides = array<i32>} : memref<8x8x32xbf16, #tpu.memory_space<vmem>>, vector<1x8x32xbf16>,
    %c7_i32 = arith.constant 7 : i32
    %51 = arith.subi %c7_i32, %c0_i32_4 : i32
    %c0_26 = arith.constant 0 : index
    %c0_27 = arith.constant 0 : index
    %52 = vector.load %arg9[%c0_26, %c0_27] : memref<8x32xf32, #tpu.memory_space<vmem>>, vector<8x32xf32>
    %c0_28 = arith.constant 0 : index
    %c0_29 = arith.constant 0 : index
    %53 = vector.load %arg10[%c0_28, %c0_29] : memref<8x32xf32, #tpu.memory_space<vmem>>, vector<8x32xf32>
    %54 = arith.index_cast %51 : i32 to index
    %c0_30 = arith.constant 0 : index
    %c0_31 = arith.constant 0 : index
    %55 = vector.load %arg2[%54, %c0_30, %c0_31] : memref<8x8x128xf32, #tpu.memory_space<vmem>>, vector<1x8x128xf32>
    %56 = vector.shape_cast %55 : vector<1x8x128xf32> to vector<8x128xf32>
    %57 = arith.truncf %52 : vector<8x32xf32> to vector<8x32xbf16>
    %cst_32 = arith.constant dense<0.000000e+00> : vector<8x128xf32>
    %58 = tpu.matmul %57, %4, %cst_32 {dimension_numbers = #tpu.dot_dimension_numbers<[1], [0], [0], [1], [0, 0, 1, 1], [], []>} : vector<8x32xbf16>, vector<32x128xbf16>, vector<8x128xf32> -> vector<8x128xf32>
    %59 = arith.addf %56, %58 : vector<8x128xf32>
    %60 = vector.extract_strided_slice %59 {offsets = [0, 0], sizes = [8, 32], strides = [1, 1]} : vector<8x128xf32> to vector<8x32xf32>
    %cst_33 = arith.constant 5.000000e-01 : f32
    %61 = vector.broadcast %cst_33 : f32 to vector<8x32xf32>
    %62 = arith.mulf %61, %60 : vector<8x32xf32>
    %63 = math.tanh %62 : vector<8x32xf32>
    %cst_34 = arith.constant 1.000000e+00 : f32
    %64 = vector.broadcast %cst_34 : f32 to vector<8x32xf32>
    %65 = arith.addf %64, %63 : vector<8x32xf32>
    %cst_35 = arith.constant 5.000000e-01 : f32
    %66 = vector.broadcast %cst_35 : f32 to vector<8x32xf32>
    %67 = arith.mulf %66, %65 : vector<8x32xf32>
    %68 = vector.extract_strided_slice %59 {offsets = [0, 32], sizes = [8, 32], strides = [1, 1]} : vector<8x128xf32> to vector<8x32xf32>
    %cst_36 = arith.constant 5.000000e-01 : f32
    %69 = vector.broadcast %cst_36 : f32 to vector<8x32xf32>
    %70 = arith.mulf %69, %68 : vector<8x32xf32>
    %71 = math.tanh %70 : vector<8x32xf32>
    %cst_37 = arith.constant 1.000000e+00 : f32
    %72 = vector.broadcast %cst_37 : f32 to vector<8x32xf32>
    %73 = arith.addf %72, %71 : vector<8x32xf32>
    %cst_38 = arith.constant 5.000000e-01 : f32
    %74 = vector.broadcast %cst_38 : f32 to vector<8x32xf32>
    %75 = arith.mulf %74, %73 : vector<8x32xf32>
    %76 = vector.extract_strided_slice %59 {offsets = [0, 64], sizes = [8, 32], strides = [1, 1]} : vector<8x128xf32> to vector<8x32xf32>
    %77 = math.tanh %76 : vector<8x32xf32>
    %78 = vector.extract_strided_slice %59 {offsets = [0, 96], sizes = [8, 32], strides = [1, 1]} : vector<8x128xf32> to vector<8x32xf32>
    %cst_39 = arith.constant 5.000000e-01 : f32
    %79 = vector.broadcast %cst_39 : f32 to vector<8x32xf32>
    %80 = arith.mulf %79, %78 : vector<8x32xf32>
    %81 = math.tanh %80 : vector<8x32xf32>
    %cst_40 = arith.constant 1.000000e+00 : f32
    %82 = vector.broadcast %cst_40 : f32 to vector<8x32xf32>
    %83 = arith.addf %82, %81 : vector<8x32xf32>
    %cst_41 = arith.constant 5.000000e-01 : f32
    %84 = vector.broadcast %cst_41 : f32 to vector<8x32xf32>
    %85 = arith.mulf %84, %83 : vector<8x32xf32>
    %86 = arith.mulf %75, %53 : vector<8x32xf32>
    %87 = arith.mulf %67, %77 : vector<8x32xf32>
    %88 = arith.addf %86, %87 : vector<8x32xf32>
    %89 = math.tanh %88 : vector<8x32xf32>
    %90 = arith.mulf %85, %89 : vector<8x32xf32>
    %c0_42 = arith.constant 0 : index
    %c0_43 = arith.constant 0 : index
    %91 = vector.load %arg9[%c0_42, %c0_43] : memref<8x32xf32, #tpu.memory_space<vmem>>, vector<8x32xf32>
    tpu.vector_store %arg9[%c0_42, %c0_43], %90 {strides = array<i32>} : memref<8x32xf32, #tpu.memory_space<vmem>>, vector<8x32xf32>,
    %c0_44 = arith.constant 0 : index
    %c0_45 = arith.constant 0 : index
    %92 = vector.load %arg10[%c0_44, %c0_45] : memref<8x32xf32, #tpu.memory_space<vmem>>, vector<8x32xf32>
    tpu.vector_store %arg10[%c0_44, %c0_45], %88 {strides = array<i32>} : memref<8x32xf32, #tpu.memory_space<vmem>>, vector<8x32xf32>,
    %93 = arith.truncf %90 : vector<8x32xf32> to vector<8x32xbf16>
    %94 = arith.index_cast %51 : i32 to index
    %c0_46 = arith.constant 0 : index
    %c0_47 = arith.constant 0 : index
    %95 = vector.load %arg6[%94, %c0_46, %c0_47] : memref<8x8x32xbf16, #tpu.memory_space<vmem>>, vector<1x8x32xbf16>
    %96 = vector.shape_cast %95 : vector<1x8x32xbf16> to vector<8x32xbf16>
    %97 = vector.shape_cast %93 : vector<8x32xbf16> to vector<1x8x32xbf16>
    tpu.vector_store %arg6[%94, %c0_46, %c0_47], %97 {strides = array<i32>} : memref<8x8x32xbf16, #tpu.memory_space<vmem>>, vector<1x8x32xbf16>,
    %c1_i32 = arith.constant 1 : i32
    %98 = arith.index_cast %c1_i32 : i32 to index
    %c0_48 = arith.constant 0 : index
    %c0_49 = arith.constant 0 : index
    %99 = vector.load %arg1[%98, %c0_48, %c0_49] : memref<8x8x128xf32, #tpu.memory_space<vmem>>, vector<1x8x128xf32>
    %100 = vector.shape_cast %99 : vector<1x8x128xf32> to vector<8x128xf32>
    %c0_50 = arith.constant 0 : index
    %c0_51 = arith.constant 0 : index
    %101 = vector.load %arg7[%c0_50, %c0_51] : memref<8x32xf32, #tpu.memory_space<vmem>>, vector<8x32xf32>
    %c0_52 = arith.constant 0 : index
    %c0_53 = arith.constant 0 : index
    %102 = vector.load %arg8[%c0_52, %c0_53] : memref<8x32xf32, #tpu.memory_space<vmem>>, vector<8x32xf32>
    %103 = arith.truncf %101 : vector<8x32xf32> to vector<8x32xbf16>
    %cst_54 = arith.constant dense<0.000000e+00> : vector<8x128xf32>
    %104 = tpu.matmul %103, %3, %cst_54 {dimension_numbers = #tpu.dot_dimension_numbers<[1], [0], [0], [1], [0, 0, 1, 1], [], []>} : vector<8x32xbf16>, vector<32x128xbf16>, vector<8x128xf32> -> vector<8x128xf32>
    %105 = arith.addf %100, %104 : vector<8x128xf32>
    %106 = vector.extract_strided_slice %105 {offsets = [0, 0], sizes = [8, 32], strides = [1, 1]} : vector<8x128xf32> to vector<8x32xf32>
    %cst_55 = arith.constant 5.000000e-01 : f32
    %107 = vector.broadcast %cst_55 : f32 to vector<8x32xf32>
    %108 = arith.mulf %107, %106 : vector<8x32xf32>
    %109 = math.tanh %108 : vector<8x32xf32>
    %cst_56 = arith.constant 1.000000e+00 : f32
    %110 = vector.broadcast %cst_56 : f32 to vector<8x32xf32>
    %111 = arith.addf %110, %109 : vector<8x32xf32>
    %cst_57 = arith.constant 5.000000e-01 : f32
    %112 = vector.broadcast %cst_57 : f32 to vector<8x32xf32>
    %113 = arith.mulf %112, %111 : vector<8x32xf32>
    %114 = vector.extract_strided_slice %105 {offsets = [0, 32], sizes = [8, 32], strides = [1, 1]} : vector<8x128xf32> to vector<8x32xf32>
    %cst_58 = arith.constant 5.000000e-01 : f32
    %115 = vector.broadcast %cst_58 : f32 to vector<8x32xf32>
    %116 = arith.mulf %115, %114 : vector<8x32xf32>
    %117 = math.tanh %116 : vector<8x32xf32>
    %cst_59 = arith.constant 1.000000e+00 : f32
    %118 = vector.broadcast %cst_59 : f32 to vector<8x32xf32>
    %119 = arith.addf %118, %117 : vector<8x32xf32>
    %cst_60 = arith.constant 5.000000e-01 : f32
    %120 = vector.broadcast %cst_60 : f32 to vector<8x32xf32>
    %121 = arith.mulf %120, %119 : vector<8x32xf32>
    %122 = vector.extract_strided_slice %105 {offsets = [0, 64], sizes = [8, 32], strides = [1, 1]} : vector<8x128xf32> to vector<8x32xf32>
    %123 = math.tanh %122 : vector<8x32xf32>
    %124 = vector.extract_strided_slice %105 {offsets = [0, 96], sizes = [8, 32], strides = [1, 1]} : vector<8x128xf32> to vector<8x32xf32>
    %cst_61 = arith.constant 5.000000e-01 : f32
    %125 = vector.broadcast %cst_61 : f32 to vector<8x32xf32>
    %126 = arith.mulf %125, %124 : vector<8x32xf32>
    %127 = math.tanh %126 : vector<8x32xf32>
    %cst_62 = arith.constant 1.000000e+00 : f32
    %128 = vector.broadcast %cst_62 : f32 to vector<8x32xf32>
    %129 = arith.addf %128, %127 : vector<8x32xf32>
    %cst_63 = arith.constant 5.000000e-01 : f32
    %130 = vector.broadcast %cst_63 : f32 to vector<8x32xf32>
    %131 = arith.mulf %130, %129 : vector<8x32xf32>
    %132 = arith.mulf %121, %102 : vector<8x32xf32>
    %133 = arith.mulf %113, %123 : vector<8x32xf32>
    %134 = arith.addf %132, %133 : vector<8x32xf32>
    %135 = math.tanh %134 : vector<8x32xf32>
    %136 = arith.mulf %131, %135 : vector<8x32xf32>
    %c0_64 = arith.constant 0 : index
    %c0_65 = arith.constant 0 : index
    %137 = vector.load %arg7[%c0_64, %c0_65] : memref<8x32xf32, #tpu.memory_space<vmem>>, vector<8x32xf32>
    tpu.vector_store %arg7[%c0_64, %c0_65], %136 {strides = array<i32>} : memref<8x32xf32, #tpu.memory_space<vmem>>, vector<8x32xf32>,
    %c0_66 = arith.constant 0 : index
    %c0_67 = arith.constant 0 : index
    %138 = vector.load %arg8[%c0_66, %c0_67] : memref<8x32xf32, #tpu.memory_space<vmem>>, vector<8x32xf32>
    tpu.vector_store %arg8[%c0_66, %c0_67], %134 {strides = array<i32>} : memref<8x32xf32, #tpu.memory_space<vmem>>, vector<8x32xf32>,
    %139 = arith.truncf %136 : vector<8x32xf32> to vector<8x32xbf16>
    %140 = arith.index_cast %c1_i32 : i32 to index
    %c0_68 = arith.constant 0 : index
    %c0_69 = arith.constant 0 : index
    %141 = vector.load %arg5[%140, %c0_68, %c0_69] : memref<8x8x32xbf16, #tpu.memory_space<vmem>>, vector<1x8x32xbf16>
    %142 = vector.shape_cast %141 : vector<1x8x32xbf16> to vector<8x32xbf16>
    %143 = vector.shape_cast %139 : vector<8x32xbf16> to vector<1x8x32xbf16>
    tpu.vector_store %arg5[%140, %c0_68, %c0_69], %143 {strides = array<i32>} : memref<8x8x32xbf16, #tpu.memory_space<vmem>>, vector<1x8x32xbf16>,
    %c7_i32_70 = arith.constant 7 : i32
    %144 = arith.subi %c7_i32_70, %c1_i32 : i32
    %c0_71 = arith.constant 0 : index
    %c0_72 = arith.constant 0 : index
    %145 = vector.load %arg9[%c0_71, %c0_72] : memref<8x32xf32, #tpu.memory_space<vmem>>, vector<8x32xf32>
    %c0_73 = arith.constant 0 : index
    %c0_74 = arith.constant 0 : index
    %146 = vector.load %arg10[%c0_73, %c0_74] : memref<8x32xf32, #tpu.memory_space<vmem>>, vector<8x32xf32>
    %147 = arith.index_cast %144 : i32 to index
    %c0_75 = arith.constant 0 : index
    %c0_76 = arith.constant 0 : index
    %148 = vector.load %arg2[%147, %c0_75, %c0_76] : memref<8x8x128xf32, #tpu.memory_space<vmem>>, vector<1x8x128xf32>
    %149 = vector.shape_cast %148 : vector<1x8x128xf32> to vector<8x128xf32>
    %150 = arith.truncf %145 : vector<8x32xf32> to vector<8x32xbf16>
    %cst_77 = arith.constant dense<0.000000e+00> : vector<8x128xf32>
    %151 = tpu.matmul %150, %4, %cst_77 {dimension_numbers = #tpu.dot_dimension_numbers<[1], [0], [0], [1], [0, 0, 1, 1], [], []>} : vector<8x32xbf16>, vector<32x128xbf16>, vector<8x128xf32> -> vector<8x128xf32>
    %152 = arith.addf %149, %151 : vector<8x128xf32>
    %153 = vector.extract_strided_slice %152 {offsets = [0, 0], sizes = [8, 32], strides = [1, 1]} : vector<8x128xf32> to vector<8x32xf32>
    %cst_78 = arith.constant 5.000000e-01 : f32
    %154 = vector.broadcast %cst_78 : f32 to vector<8x32xf32>
    %155 = arith.mulf %154, %153 : vector<8x32xf32>
    %156 = math.tanh %155 : vector<8x32xf32>
    %cst_79 = arith.constant 1.000000e+00 : f32
    %157 = vector.broadcast %cst_79 : f32 to vector<8x32xf32>
    %158 = arith.addf %157, %156 : vector<8x32xf32>
    %cst_80 = arith.constant 5.000000e-01 : f32
    %159 = vector.broadcast %cst_80 : f32 to vector<8x32xf32>
    %160 = arith.mulf %159, %158 : vector<8x32xf32>
    %161 = vector.extract_strided_slice %152 {offsets = [0, 32], sizes = [8, 32], strides = [1, 1]} : vector<8x128xf32> to vector<8x32xf32>
    %cst_81 = arith.constant 5.000000e-01 : f32
    %162 = vector.broadcast %cst_81 : f32 to vector<8x32xf32>
    %163 = arith.mulf %162, %161 : vector<8x32xf32>
    %164 = math.tanh %163 : vector<8x32xf32>
    %cst_82 = arith.constant 1.000000e+00 : f32
    %165 = vector.broadcast %cst_82 : f32 to vector<8x32xf32>
    %166 = arith.addf %165, %164 : vector<8x32xf32>
    %cst_83 = arith.constant 5.000000e-01 : f32
    %167 = vector.broadcast %cst_83 : f32 to vector<8x32xf32>
    %168 = arith.mulf %167, %166 : vector<8x32xf32>
    %169 = vector.extract_strided_slice %152 {offsets = [0, 64], sizes = [8, 32], strides = [1, 1]} : vector<8x128xf32> to vector<8x32xf32>
    %170 = math.tanh %169 : vector<8x32xf32>
    %171 = vector.extract_strided_slice %152 {offsets = [0, 96], sizes = [8, 32], strides = [1, 1]} : vector<8x128xf32> to vector<8x32xf32>
    %cst_84 = arith.constant 5.000000e-01 : f32
    %172 = vector.broadcast %cst_84 : f32 to vector<8x32xf32>
    %173 = arith.mulf %172, %171 : vector<8x32xf32>
    %174 = math.tanh %173 : vector<8x32xf32>
    %cst_85 = arith.constant 1.000000e+00 : f32
    %175 = vector.broadcast %cst_85 : f32 to vector<8x32xf32>
    %176 = arith.addf %175, %174 : vector<8x32xf32>
    %cst_86 = arith.constant 5.000000e-01 : f32
    %177 = vector.broadcast %cst_86 : f32 to vector<8x32xf32>
    %178 = arith.mulf %177, %176 : vector<8x32xf32>
    %179 = arith.mulf %168, %146 : vector<8x32xf32>
    %180 = arith.mulf %160, %170 : vector<8x32xf32>
    %181 = arith.addf %179, %180 : vector<8x32xf32>
    %182 = math.tanh %181 : vector<8x32xf32>
    %183 = arith.mulf %178, %182 : vector<8x32xf32>
    %c0_87 = arith.constant 0 : index
    %c0_88 = arith.constant 0 : index
    %184 = vector.load %arg9[%c0_87, %c0_88] : memref<8x32xf32, #tpu.memory_space<vmem>>, vector<8x32xf32>
    tpu.vector_store %arg9[%c0_87, %c0_88], %183 {strides = array<i32>} : memref<8x32xf32, #tpu.memory_space<vmem>>, vector<8x32xf32>,
    %c0_89 = arith.constant 0 : index
    %c0_90 = arith.constant 0 : index
    %185 = vector.load %arg10[%c0_89, %c0_90] : memref<8x32xf32, #tpu.memory_space<vmem>>, vector<8x32xf32>
    tpu.vector_store %arg10[%c0_89, %c0_90], %181 {strides = array<i32>} : memref<8x32xf32, #tpu.memory_space<vmem>>, vector<8x32xf32>,
    %186 = arith.truncf %183 : vector<8x32xf32> to vector<8x32xbf16>
    %187 = arith.index_cast %144 : i32 to index
    %c0_91 = arith.constant 0 : index
    %c0_92 = arith.constant 0 : index
    %188 = vector.load %arg6[%187, %c0_91, %c0_92] : memref<8x8x32xbf16, #tpu.memory_space<vmem>>, vector<1x8x32xbf16>
    %189 = vector.shape_cast %188 : vector<1x8x32xbf16> to vector<8x32xbf16>
    %190 = vector.shape_cast %186 : vector<8x32xbf16> to vector<1x8x32xbf16>
    tpu.vector_store %arg6[%187, %c0_91, %c0_92], %190 {strides = array<i32>} : memref<8x8x32xbf16, #tpu.memory_space<vmem>>, vector<1x8x32xbf16>,
    %c2_i32 = arith.constant 2 : i32
    %191 = arith.index_cast %c2_i32 : i32 to index
    %c0_93 = arith.constant 0 : index
    %c0_94 = arith.constant 0 : index
    %192 = vector.load %arg1[%191, %c0_93, %c0_94] : memref<8x8x128xf32, #tpu.memory_space<vmem>>, vector<1x8x128xf32>
    %193 = vector.shape_cast %192 : vector<1x8x128xf32> to vector<8x128xf32>
    %c0_95 = arith.constant 0 : index
    %c0_96 = arith.constant 0 : index
    %194 = vector.load %arg7[%c0_95, %c0_96] : memref<8x32xf32, #tpu.memory_space<vmem>>, vector<8x32xf32>
    %c0_97 = arith.constant 0 : index
    %c0_98 = arith.constant 0 : index
    %195 = vector.load %arg8[%c0_97, %c0_98] : memref<8x32xf32, #tpu.memory_space<vmem>>, vector<8x32xf32>
    %196 = arith.truncf %194 : vector<8x32xf32> to vector<8x32xbf16>
    %cst_99 = arith.constant dense<0.000000e+00> : vector<8x128xf32>
    %197 = tpu.matmul %196, %3, %cst_99 {dimension_numbers = #tpu.dot_dimension_numbers<[1], [0], [0], [1], [0, 0, 1, 1], [], []>} : vector<8x32xbf16>, vector<32x128xbf16>, vector<8x128xf32> -> vector<8x128xf32>
    %198 = arith.addf %193, %197 : vector<8x128xf32>
    %199 = vector.extract_strided_slice %198 {offsets = [0, 0], sizes = [8, 32], strides = [1, 1]} : vector<8x128xf32> to vector<8x32xf32>
    %cst_100 = arith.constant 5.000000e-01 : f32
    %200 = vector.broadcast %cst_100 : f32 to vector<8x32xf32>
    %201 = arith.mulf %200, %199 : vector<8x32xf32>
    %202 = math.tanh %201 : vector<8x32xf32>
    %cst_101 = arith.constant 1.000000e+00 : f32
    %203 = vector.broadcast %cst_101 : f32 to vector<8x32xf32>
    %204 = arith.addf %203, %202 : vector<8x32xf32>
    %cst_102 = arith.constant 5.000000e-01 : f32
    %205 = vector.broadcast %cst_102 : f32 to vector<8x32xf32>
    %206 = arith.mulf %205, %204 : vector<8x32xf32>
    %207 = vector.extract_strided_slice %198 {offsets = [0, 32], sizes = [8, 32], strides = [1, 1]} : vector<8x128xf32> to vector<8x32xf32>
    %cst_103 = arith.constant 5.000000e-01 : f32
    %208 = vector.broadcast %cst_103 : f32 to vector<8x32xf32>
    %209 = arith.mulf %208, %207 : vector<8x32xf32>
    %210 = math.tanh %209 : vector<8x32xf32>
    %cst_104 = arith.constant 1.000000e+00 : f32
    %211 = vector.broadcast %cst_104 : f32 to vector<8x32xf32>
    %212 = arith.addf %211, %210 : vector<8x32xf32>
    %cst_105 = arith.constant 5.000000e-01 : f32
    %213 = vector.broadcast %cst_105 : f32 to vector<8x32xf32>
    %214 = arith.mulf %213, %212 : vector<8x32xf32>
    %215 = vector.extract_strided_slice %198 {offsets = [0, 64], sizes = [8, 32], strides = [1, 1]} : vector<8x128xf32> to vector<8x32xf32>
    %216 = math.tanh %215 : vector<8x32xf32>
    %217 = vector.extract_strided_slice %198 {offsets = [0, 96], sizes = [8, 32], strides = [1, 1]} : vector<8x128xf32> to vector<8x32xf32>
    %cst_106 = arith.constant 5.000000e-01 : f32
    %218 = vector.broadcast %cst_106 : f32 to vector<8x32xf32>
    %219 = arith.mulf %218, %217 : vector<8x32xf32>
    %220 = math.tanh %219 : vector<8x32xf32>
    %cst_107 = arith.constant 1.000000e+00 : f32
    %221 = vector.broadcast %cst_107 : f32 to vector<8x32xf32>
    %222 = arith.addf %221, %220 : vector<8x32xf32>
    %cst_108 = arith.constant 5.000000e-01 : f32
    %223 = vector.broadcast %cst_108 : f32 to vector<8x32xf32>
    %224 = arith.mulf %223, %222 : vector<8x32xf32>
    %225 = arith.mulf %214, %195 : vector<8x32xf32>
    %226 = arith.mulf %206, %216 : vector<8x32xf32>
    %227 = arith.addf %225, %226 : vector<8x32xf32>
    %228 = math.tanh %227 : vector<8x32xf32>
    %229 = arith.mulf %224, %228 : vector<8x32xf32>
    %c0_109 = arith.constant 0 : index
    %c0_110 = arith.constant 0 : index
    %230 = vector.load %arg7[%c0_109, %c0_110] : memref<8x32xf32, #tpu.memory_space<vmem>>, vector<8x32xf32>
    tpu.vector_store %arg7[%c0_109, %c0_110], %229 {strides = array<i32>} : memref<8x32xf32, #tpu.memory_space<vmem>>, vector<8x32xf32>,
    %c0_111 = arith.constant 0 : index
    %c0_112 = arith.constant 0 : index
    %231 = vector.load %arg8[%c0_111, %c0_112] : memref<8x32xf32, #tpu.memory_space<vmem>>, vector<8x32xf32>
    tpu.vector_store %arg8[%c0_111, %c0_112], %227 {strides = array<i32>} : memref<8x32xf32, #tpu.memory_space<vmem>>, vector<8x32xf32>,
    %232 = arith.truncf %229 : vector<8x32xf32> to vector<8x32xbf16>
    %233 = arith.index_cast %c2_i32 : i32 to index
    %c0_113 = arith.constant 0 : index
    %c0_114 = arith.constant 0 : index
    %234 = vector.load %arg5[%233, %c0_113, %c0_114] : memref<8x8x32xbf16, #tpu.memory_space<vmem>>, vector<1x8x32xbf16>
    %235 = vector.shape_cast %234 : vector<1x8x32xbf16> to vector<8x32xbf16>
    %236 = vector.shape_cast %232 : vector<8x32xbf16> to vector<1x8x32xbf16>
    tpu.vector_store %arg5[%233, %c0_113, %c0_114], %236 {strides = array<i32>} : memref<8x8x32xbf16, #tpu.memory_space<vmem>>, vector<1x8x32xbf16>,
    %c7_i32_115 = arith.constant 7 : i32
    %237 = arith.subi %c7_i32_115, %c2_i32 : i32
    %c0_116 = arith.constant 0 : index
    %c0_117 = arith.constant 0 : index
    %238 = vector.load %arg9[%c0_116, %c0_117] : memref<8x32xf32, #tpu.memory_space<vmem>>, vector<8x32xf32>
    %c0_118 = arith.constant 0 : index
    %c0_119 = arith.constant 0 : index
    %239 = vector.load %arg10[%c0_118, %c0_119] : memref<8x32xf32, #tpu.memory_space<vmem>>, vector<8x32xf32>
    %240 = arith.index_cast %237 : i32 to index
    %c0_120 = arith.constant 0 : index
    %c0_121 = arith.constant 0 : index
    %241 = vector.load %arg2[%240, %c0_120, %c0_121] : memref<8x8x128xf32, #tpu.memory_space<vmem>>, vector<1x8x128xf32>
    %242 = vector.shape_cast %241 : vector<1x8x128xf32> to vector<8x128xf32>
    %243 = arith.truncf %238 : vector<8x32xf32> to vector<8x32xbf16>
    %cst_122 = arith.constant dense<0.000000e+00> : vector<8x128xf32>
    %244 = tpu.matmul %243, %4, %cst_122 {dimension_numbers = #tpu.dot_dimension_numbers<[1], [0], [0], [1], [0, 0, 1, 1], [], []>} : vector<8x32xbf16>, vector<32x128xbf16>, vector<8x128xf32> -> vector<8x128xf32>
    %245 = arith.addf %242, %244 : vector<8x128xf32>
    %246 = vector.extract_strided_slice %245 {offsets = [0, 0], sizes = [8, 32], strides = [1, 1]} : vector<8x128xf32> to vector<8x32xf32>
    %cst_123 = arith.constant 5.000000e-01 : f32
    %247 = vector.broadcast %cst_123 : f32 to vector<8x32xf32>
    %248 = arith.mulf %247, %246 : vector<8x32xf32>
    %249 = math.tanh %248 : vector<8x32xf32>
    %cst_124 = arith.constant 1.000000e+00 : f32
    %250 = vector.broadcast %cst_124 : f32 to vector<8x32xf32>
    %251 = arith.addf %250, %249 : vector<8x32xf32>
    %cst_125 = arith.constant 5.000000e-01 : f32
    %252 = vector.broadcast %cst_125 : f32 to vector<8x32xf32>
    %253 = arith.mulf %252, %251 : vector<8x32xf32>
    %254 = vector.extract_strided_slice %245 {offsets = [0, 32], sizes = [8, 32], strides = [1, 1]} : vector<8x128xf32> to vector<8x32xf32>
    %cst_126 = arith.constant 5.000000e-01 : f32
    %255 = vector.broadcast %cst_126 : f32 to vector<8x32xf32>
    %256 = arith.mulf %255, %254 : vector<8x32xf32>
    %257 = math.tanh %256 : vector<8x32xf32>
    %cst_127 = arith.constant 1.000000e+00 : f32
    %258 = vector.broadcast %cst_127 : f32 to vector<8x32xf32>
    %259 = arith.addf %258, %257 : vector<8x32xf32>
    %cst_128 = arith.constant 5.000000e-01 : f32
    %260 = vector.broadcast %cst_128 : f32 to vector<8x32xf32>
    %261 = arith.mulf %260, %259 : vector<8x32xf32>
    %262 = vector.extract_strided_slice %245 {offsets = [0, 64], sizes = [8, 32], strides = [1, 1]} : vector<8x128xf32> to vector<8x32xf32>
    %263 = math.tanh %262 : vector<8x32xf32>
    %264 = vector.extract_strided_slice %245 {offsets = [0, 96], sizes = [8, 32], strides = [1, 1]} : vector<8x128xf32> to vector<8x32xf32>
    %cst_129 = arith.constant 5.000000e-01 : f32
    %265 = vector.broadcast %cst_129 : f32 to vector<8x32xf32>
    %266 = arith.mulf %265, %264 : vector<8x32xf32>
    %267 = math.tanh %266 : vector<8x32xf32>
    %cst_130 = arith.constant 1.000000e+00 : f32
    %268 = vector.broadcast %cst_130 : f32 to vector<8x32xf32>
    %269 = arith.addf %268, %267 : vector<8x32xf32>
    %cst_131 = arith.constant 5.000000e-01 : f32
    %270 = vector.broadcast %cst_131 : f32 to vector<8x32xf32>
    %271 = arith.mulf %270, %269 : vector<8x32xf32>
    %272 = arith.mulf %261, %239 : vector<8x32xf32>
    %273 = arith.mulf %253, %263 : vector<8x32xf32>
    %274 = arith.addf %272, %273 : vector<8x32xf32>
    %275 = math.tanh %274 : vector<8x32xf32>
    %276 = arith.mulf %271, %275 : vector<8x32xf32>
    %c0_132 = arith.constant 0 : index
    %c0_133 = arith.constant 0 : index
    %277 = vector.load %arg9[%c0_132, %c0_133] : memref<8x32xf32, #tpu.memory_space<vmem>>, vector<8x32xf32>
    tpu.vector_store %arg9[%c0_132, %c0_133], %276 {strides = array<i32>} : memref<8x32xf32, #tpu.memory_space<vmem>>, vector<8x32xf32>,
    %c0_134 = arith.constant 0 : index
    %c0_135 = arith.constant 0 : index
    %278 = vector.load %arg10[%c0_134, %c0_135] : memref<8x32xf32, #tpu.memory_space<vmem>>, vector<8x32xf32>
    tpu.vector_store %arg10[%c0_134, %c0_135], %274 {strides = array<i32>} : memref<8x32xf32, #tpu.memory_space<vmem>>, vector<8x32xf32>,
    %279 = arith.truncf %276 : vector<8x32xf32> to vector<8x32xbf16>
    %280 = arith.index_cast %237 : i32 to index
    %c0_136 = arith.constant 0 : index
    %c0_137 = arith.constant 0 : index
    %281 = vector.load %arg6[%280, %c0_136, %c0_137] : memref<8x8x32xbf16, #tpu.memory_space<vmem>>, vector<1x8x32xbf16>
    %282 = vector.shape_cast %281 : vector<1x8x32xbf16> to vector<8x32xbf16>
    %283 = vector.shape_cast %279 : vector<8x32xbf16> to vector<1x8x32xbf16>
    tpu.vector_store %arg6[%280, %c0_136, %c0_137], %283 {strides = array<i32>} : memref<8x8x32xbf16, #tpu.memory_space<vmem>>, vector<1x8x32xbf16>,
    %c3_i32 = arith.constant 3 : i32
    %284 = arith.index_cast %c3_i32 : i32 to index
    %c0_138 = arith.constant 0 : index
    %c0_139 = arith.constant 0 : index
    %285 = vector.load %arg1[%284, %c0_138, %c0_139] : memref<8x8x128xf32, #tpu.memory_space<vmem>>, vector<1x8x128xf32>
    %286 = vector.shape_cast %285 : vector<1x8x128xf32> to vector<8x128xf32>
    %c0_140 = arith.constant 0 : index
    %c0_141 = arith.constant 0 : index
    %287 = vector.load %arg7[%c0_140, %c0_141] : memref<8x32xf32, #tpu.memory_space<vmem>>, vector<8x32xf32>
    %c0_142 = arith.constant 0 : index
    %c0_143 = arith.constant 0 : index
    %288 = vector.load %arg8[%c0_142, %c0_143] : memref<8x32xf32, #tpu.memory_space<vmem>>, vector<8x32xf32>
    %289 = arith.truncf %287 : vector<8x32xf32> to vector<8x32xbf16>
    %cst_144 = arith.constant dense<0.000000e+00> : vector<8x128xf32>
    %290 = tpu.matmul %289, %3, %cst_144 {dimension_numbers = #tpu.dot_dimension_numbers<[1], [0], [0], [1], [0, 0, 1, 1], [], []>} : vector<8x32xbf16>, vector<32x128xbf16>, vector<8x128xf32> -> vector<8x128xf32>
    %291 = arith.addf %286, %290 : vector<8x128xf32>
    %292 = vector.extract_strided_slice %291 {offsets = [0, 0], sizes = [8, 32], strides = [1, 1]} : vector<8x128xf32> to vector<8x32xf32>
    %cst_145 = arith.constant 5.000000e-01 : f32
    %293 = vector.broadcast %cst_145 : f32 to vector<8x32xf32>
    %294 = arith.mulf %293, %292 : vector<8x32xf32>
    %295 = math.tanh %294 : vector<8x32xf32>
    %cst_146 = arith.constant 1.000000e+00 : f32
    %296 = vector.broadcast %cst_146 : f32 to vector<8x32xf32>
    %297 = arith.addf %296, %295 : vector<8x32xf32>
    %cst_147 = arith.constant 5.000000e-01 : f32
    %298 = vector.broadcast %cst_147 : f32 to vector<8x32xf32>
    %299 = arith.mulf %298, %297 : vector<8x32xf32>
    %300 = vector.extract_strided_slice %291 {offsets = [0, 32], sizes = [8, 32], strides = [1, 1]} : vector<8x128xf32> to vector<8x32xf32>
    %cst_148 = arith.constant 5.000000e-01 : f32
    %301 = vector.broadcast %cst_148 : f32 to vector<8x32xf32>
    %302 = arith.mulf %301, %300 : vector<8x32xf32>
    %303 = math.tanh %302 : vector<8x32xf32>
    %cst_149 = arith.constant 1.000000e+00 : f32
    %304 = vector.broadcast %cst_149 : f32 to vector<8x32xf32>
    %305 = arith.addf %304, %303 : vector<8x32xf32>
    %cst_150 = arith.constant 5.000000e-01 : f32
    %306 = vector.broadcast %cst_150 : f32 to vector<8x32xf32>
    %307 = arith.mulf %306, %305 : vector<8x32xf32>
    %308 = vector.extract_strided_slice %291 {offsets = [0, 64], sizes = [8, 32], strides = [1, 1]} : vector<8x128xf32> to vector<8x32xf32>
    %309 = math.tanh %308 : vector<8x32xf32>
    %310 = vector.extract_strided_slice %291 {offsets = [0, 96], sizes = [8, 32], strides = [1, 1]} : vector<8x128xf32> to vector<8x32xf32>
    %cst_151 = arith.constant 5.000000e-01 : f32
    %311 = vector.broadcast %cst_151 : f32 to vector<8x32xf32>
    %312 = arith.mulf %311, %310 : vector<8x32xf32>
    %313 = math.tanh %312 : vector<8x32xf32>
    %cst_152 = arith.constant 1.000000e+00 : f32
    %314 = vector.broadcast %cst_152 : f32 to vector<8x32xf32>
    %315 = arith.addf %314, %313 : vector<8x32xf32>
    %cst_153 = arith.constant 5.000000e-01 : f32
    %316 = vector.broadcast %cst_153 : f32 to vector<8x32xf32>
    %317 = arith.mulf %316, %315 : vector<8x32xf32>
    %318 = arith.mulf %307, %288 : vector<8x32xf32>
    %319 = arith.mulf %299, %309 : vector<8x32xf32>
    %320 = arith.addf %318, %319 : vector<8x32xf32>
    %321 = math.tanh %320 : vector<8x32xf32>
    %322 = arith.mulf %317, %321 : vector<8x32xf32>
    %c0_154 = arith.constant 0 : index
    %c0_155 = arith.constant 0 : index
    %323 = vector.load %arg7[%c0_154, %c0_155] : memref<8x32xf32, #tpu.memory_space<vmem>>, vector<8x32xf32>
    tpu.vector_store %arg7[%c0_154, %c0_155], %322 {strides = array<i32>} : memref<8x32xf32, #tpu.memory_space<vmem>>, vector<8x32xf32>,
    %c0_156 = arith.constant 0 : index
    %c0_157 = arith.constant 0 : index
    %324 = vector.load %arg8[%c0_156, %c0_157] : memref<8x32xf32, #tpu.memory_space<vmem>>, vector<8x32xf32>
    tpu.vector_store %arg8[%c0_156, %c0_157], %320 {strides = array<i32>} : memref<8x32xf32, #tpu.memory_space<vmem>>, vector<8x32xf32>,
    %325 = arith.truncf %322 : vector<8x32xf32> to vector<8x32xbf16>
    %326 = arith.index_cast %c3_i32 : i32 to index
    %c0_158 = arith.constant 0 : index
    %c0_159 = arith.constant 0 : index
    %327 = vector.load %arg5[%326, %c0_158, %c0_159] : memref<8x8x32xbf16, #tpu.memory_space<vmem>>, vector<1x8x32xbf16>
    %328 = vector.shape_cast %327 : vector<1x8x32xbf16> to vector<8x32xbf16>
    %329 = vector.shape_cast %325 : vector<8x32xbf16> to vector<1x8x32xbf16>
    tpu.vector_store %arg5[%326, %c0_158, %c0_159], %329 {strides = array<i32>} : memref<8x8x32xbf16, #tpu.memory_space<vmem>>, vector<1x8x32xbf16>,
    %c7_i32_160 = arith.constant 7 : i32
    %330 = arith.subi %c7_i32_160, %c3_i32 : i32
    %c0_161 = arith.constant 0 : index
    %c0_162 = arith.constant 0 : index
    %331 = vector.load %arg9[%c0_161, %c0_162] : memref<8x32xf32, #tpu.memory_space<vmem>>, vector<8x32xf32>
    %c0_163 = arith.constant 0 : index
    %c0_164 = arith.constant 0 : index
    %332 = vector.load %arg10[%c0_163, %c0_164] : memref<8x32xf32, #tpu.memory_space<vmem>>, vector<8x32xf32>
    %333 = arith.index_cast %330 : i32 to index
    %c0_165 = arith.constant 0 : index
    %c0_166 = arith.constant 0 : index
    %334 = vector.load %arg2[%333, %c0_165, %c0_166] : memref<8x8x128xf32, #tpu.memory_space<vmem>>, vector<1x8x128xf32>
    %335 = vector.shape_cast %334 : vector<1x8x128xf32> to vector<8x128xf32>
    %336 = arith.truncf %331 : vector<8x32xf32> to vector<8x32xbf16>
    %cst_167 = arith.constant dense<0.000000e+00> : vector<8x128xf32>
    %337 = tpu.matmul %336, %4, %cst_167 {dimension_numbers = #tpu.dot_dimension_numbers<[1], [0], [0], [1], [0, 0, 1, 1], [], []>} : vector<8x32xbf16>, vector<32x128xbf16>, vector<8x128xf32> -> vector<8x128xf32>
    %338 = arith.addf %335, %337 : vector<8x128xf32>
    %339 = vector.extract_strided_slice %338 {offsets = [0, 0], sizes = [8, 32], strides = [1, 1]} : vector<8x128xf32> to vector<8x32xf32>
    %cst_168 = arith.constant 5.000000e-01 : f32
    %340 = vector.broadcast %cst_168 : f32 to vector<8x32xf32>
    %341 = arith.mulf %340, %339 : vector<8x32xf32>
    %342 = math.tanh %341 : vector<8x32xf32>
    %cst_169 = arith.constant 1.000000e+00 : f32
    %343 = vector.broadcast %cst_169 : f32 to vector<8x32xf32>
    %344 = arith.addf %343, %342 : vector<8x32xf32>
    %cst_170 = arith.constant 5.000000e-01 : f32
    %345 = vector.broadcast %cst_170 : f32 to vector<8x32xf32>
    %346 = arith.mulf %345, %344 : vector<8x32xf32>
    %347 = vector.extract_strided_slice %338 {offsets = [0, 32], sizes = [8, 32], strides = [1, 1]} : vector<8x128xf32> to vector<8x32xf32>
    %cst_171 = arith.constant 5.000000e-01 : f32
    %348 = vector.broadcast %cst_171 : f32 to vector<8x32xf32>
    %349 = arith.mulf %348, %347 : vector<8x32xf32>
    %350 = math.tanh %349 : vector<8x32xf32>
    %cst_172 = arith.constant 1.000000e+00 : f32
    %351 = vector.broadcast %cst_172 : f32 to vector<8x32xf32>
    %352 = arith.addf %351, %350 : vector<8x32xf32>
    %cst_173 = arith.constant 5.000000e-01 : f32
    %353 = vector.broadcast %cst_173 : f32 to vector<8x32xf32>
    %354 = arith.mulf %353, %352 : vector<8x32xf32>
    %355 = vector.extract_strided_slice %338 {offsets = [0, 64], sizes = [8, 32], strides = [1, 1]} : vector<8x128xf32> to vector<8x32xf32>
    %356 = math.tanh %355 : vector<8x32xf32>
    %357 = vector.extract_strided_slice %338 {offsets = [0, 96], sizes = [8, 32], strides = [1, 1]} : vector<8x128xf32> to vector<8x32xf32>
    %cst_174 = arith.constant 5.000000e-01 : f32
    %358 = vector.broadcast %cst_174 : f32 to vector<8x32xf32>
    %359 = arith.mulf %358, %357 : vector<8x32xf32>
    %360 = math.tanh %359 : vector<8x32xf32>
    %cst_175 = arith.constant 1.000000e+00 : f32
    %361 = vector.broadcast %cst_175 : f32 to vector<8x32xf32>
    %362 = arith.addf %361, %360 : vector<8x32xf32>
    %cst_176 = arith.constant 5.000000e-01 : f32
    %363 = vector.broadcast %cst_176 : f32 to vector<8x32xf32>
    %364 = arith.mulf %363, %362 : vector<8x32xf32>
    %365 = arith.mulf %354, %332 : vector<8x32xf32>
    %366 = arith.mulf %346, %356 : vector<8x32xf32>
    %367 = arith.addf %365, %366 : vector<8x32xf32>
    %368 = math.tanh %367 : vector<8x32xf32>
    %369 = arith.mulf %364, %368 : vector<8x32xf32>
    %c0_177 = arith.constant 0 : index
    %c0_178 = arith.constant 0 : index
    %370 = vector.load %arg9[%c0_177, %c0_178] : memref<8x32xf32, #tpu.memory_space<vmem>>, vector<8x32xf32>
    tpu.vector_store %arg9[%c0_177, %c0_178], %369 {strides = array<i32>} : memref<8x32xf32, #tpu.memory_space<vmem>>, vector<8x32xf32>,
    %c0_179 = arith.constant 0 : index
    %c0_180 = arith.constant 0 : index
    %371 = vector.load %arg10[%c0_179, %c0_180] : memref<8x32xf32, #tpu.memory_space<vmem>>, vector<8x32xf32>
    tpu.vector_store %arg10[%c0_179, %c0_180], %367 {strides = array<i32>} : memref<8x32xf32, #tpu.memory_space<vmem>>, vector<8x32xf32>,
    %372 = arith.truncf %369 : vector<8x32xf32> to vector<8x32xbf16>
    %373 = arith.index_cast %330 : i32 to index
    %c0_181 = arith.constant 0 : index
    %c0_182 = arith.constant 0 : index
    %374 = vector.load %arg6[%373, %c0_181, %c0_182] : memref<8x8x32xbf16, #tpu.memory_space<vmem>>, vector<1x8x32xbf16>
    %375 = vector.shape_cast %374 : vector<1x8x32xbf16> to vector<8x32xbf16>
    %376 = vector.shape_cast %372 : vector<8x32xbf16> to vector<1x8x32xbf16>
    tpu.vector_store %arg6[%373, %c0_181, %c0_182], %376 {strides = array<i32>} : memref<8x8x32xbf16, #tpu.memory_space<vmem>>, vector<1x8x32xbf16>,
    %c4_i32 = arith.constant 4 : i32
    %377 = arith.index_cast %c4_i32 : i32 to index
    %c0_183 = arith.constant 0 : index
    %c0_184 = arith.constant 0 : index
    %378 = vector.load %arg1[%377, %c0_183, %c0_184] : memref<8x8x128xf32, #tpu.memory_space<vmem>>, vector<1x8x128xf32>
    %379 = vector.shape_cast %378 : vector<1x8x128xf32> to vector<8x128xf32>
    %c0_185 = arith.constant 0 : index
    %c0_186 = arith.constant 0 : index
    %380 = vector.load %arg7[%c0_185, %c0_186] : memref<8x32xf32, #tpu.memory_space<vmem>>, vector<8x32xf32>
    %c0_187 = arith.constant 0 : index
    %c0_188 = arith.constant 0 : index
    %381 = vector.load %arg8[%c0_187, %c0_188] : memref<8x32xf32, #tpu.memory_space<vmem>>, vector<8x32xf32>
    %382 = arith.truncf %380 : vector<8x32xf32> to vector<8x32xbf16>
    %cst_189 = arith.constant dense<0.000000e+00> : vector<8x128xf32>
    %383 = tpu.matmul %382, %3, %cst_189 {dimension_numbers = #tpu.dot_dimension_numbers<[1], [0], [0], [1], [0, 0, 1, 1], [], []>} : vector<8x32xbf16>, vector<32x128xbf16>, vector<8x128xf32> -> vector<8x128xf32>
    %384 = arith.addf %379, %383 : vector<8x128xf32>
    %385 = vector.extract_strided_slice %384 {offsets = [0, 0], sizes = [8, 32], strides = [1, 1]} : vector<8x128xf32> to vector<8x32xf32>
    %cst_190 = arith.constant 5.000000e-01 : f32
    %386 = vector.broadcast %cst_190 : f32 to vector<8x32xf32>
    %387 = arith.mulf %386, %385 : vector<8x32xf32>
    %388 = math.tanh %387 : vector<8x32xf32>
    %cst_191 = arith.constant 1.000000e+00 : f32
    %389 = vector.broadcast %cst_191 : f32 to vector<8x32xf32>
    %390 = arith.addf %389, %388 : vector<8x32xf32>
    %cst_192 = arith.constant 5.000000e-01 : f32
    %391 = vector.broadcast %cst_192 : f32 to vector<8x32xf32>
    %392 = arith.mulf %391, %390 : vector<8x32xf32>
    %393 = vector.extract_strided_slice %384 {offsets = [0, 32], sizes = [8, 32], strides = [1, 1]} : vector<8x128xf32> to vector<8x32xf32>
    %cst_193 = arith.constant 5.000000e-01 : f32
    %394 = vector.broadcast %cst_193 : f32 to vector<8x32xf32>
    %395 = arith.mulf %394, %393 : vector<8x32xf32>
    %396 = math.tanh %395 : vector<8x32xf32>
    %cst_194 = arith.constant 1.000000e+00 : f32
    %397 = vector.broadcast %cst_194 : f32 to vector<8x32xf32>
    %398 = arith.addf %397, %396 : vector<8x32xf32>
    %cst_195 = arith.constant 5.000000e-01 : f32
    %399 = vector.broadcast %cst_195 : f32 to vector<8x32xf32>
    %400 = arith.mulf %399, %398 : vector<8x32xf32>
    %401 = vector.extract_strided_slice %384 {offsets = [0, 64], sizes = [8, 32], strides = [1, 1]} : vector<8x128xf32> to vector<8x32xf32>
    %402 = math.tanh %401 : vector<8x32xf32>
    %403 = vector.extract_strided_slice %384 {offsets = [0, 96], sizes = [8, 32], strides = [1, 1]} : vector<8x128xf32> to vector<8x32xf32>
    %cst_196 = arith.constant 5.000000e-01 : f32
    %404 = vector.broadcast %cst_196 : f32 to vector<8x32xf32>
    %405 = arith.mulf %404, %403 : vector<8x32xf32>
    %406 = math.tanh %405 : vector<8x32xf32>
    %cst_197 = arith.constant 1.000000e+00 : f32
    %407 = vector.broadcast %cst_197 : f32 to vector<8x32xf32>
    %408 = arith.addf %407, %406 : vector<8x32xf32>
    %cst_198 = arith.constant 5.000000e-01 : f32
    %409 = vector.broadcast %cst_198 : f32 to vector<8x32xf32>
    %410 = arith.mulf %409, %408 : vector<8x32xf32>
    %411 = arith.mulf %400, %381 : vector<8x32xf32>
    %412 = arith.mulf %392, %402 : vector<8x32xf32>
    %413 = arith.addf %411, %412 : vector<8x32xf32>
    %414 = math.tanh %413 : vector<8x32xf32>
    %415 = arith.mulf %410, %414 : vector<8x32xf32>
    %c0_199 = arith.constant 0 : index
    %c0_200 = arith.constant 0 : index
    %416 = vector.load %arg7[%c0_199, %c0_200] : memref<8x32xf32, #tpu.memory_space<vmem>>, vector<8x32xf32>
    tpu.vector_store %arg7[%c0_199, %c0_200], %415 {strides = array<i32>} : memref<8x32xf32, #tpu.memory_space<vmem>>, vector<8x32xf32>,
    %c0_201 = arith.constant 0 : index
    %c0_202 = arith.constant 0 : index
    %417 = vector.load %arg8[%c0_201, %c0_202] : memref<8x32xf32, #tpu.memory_space<vmem>>, vector<8x32xf32>
    tpu.vector_store %arg8[%c0_201, %c0_202], %413 {strides = array<i32>} : memref<8x32xf32, #tpu.memory_space<vmem>>, vector<8x32xf32>,
    %418 = arith.truncf %415 : vector<8x32xf32> to vector<8x32xbf16>
    %419 = arith.index_cast %c4_i32 : i32 to index
    %c0_203 = arith.constant 0 : index
    %c0_204 = arith.constant 0 : index
    %420 = vector.load %arg5[%419, %c0_203, %c0_204] : memref<8x8x32xbf16, #tpu.memory_space<vmem>>, vector<1x8x32xbf16>
    %421 = vector.shape_cast %420 : vector<1x8x32xbf16> to vector<8x32xbf16>
    %422 = vector.shape_cast %418 : vector<8x32xbf16> to vector<1x8x32xbf16>
    tpu.vector_store %arg5[%419, %c0_203, %c0_204], %422 {strides = array<i32>} : memref<8x8x32xbf16, #tpu.memory_space<vmem>>, vector<1x8x32xbf16>,
    %c7_i32_205 = arith.constant 7 : i32
    %423 = arith.subi %c7_i32_205, %c4_i32 : i32
    %c0_206 = arith.constant 0 : index
    %c0_207 = arith.constant 0 : index
    %424 = vector.load %arg9[%c0_206, %c0_207] : memref<8x32xf32, #tpu.memory_space<vmem>>, vector<8x32xf32>
    %c0_208 = arith.constant 0 : index
    %c0_209 = arith.constant 0 : index
    %425 = vector.load %arg10[%c0_208, %c0_209] : memref<8x32xf32, #tpu.memory_space<vmem>>, vector<8x32xf32>
    %426 = arith.index_cast %423 : i32 to index
    %c0_210 = arith.constant 0 : index
    %c0_211 = arith.constant 0 : index
    %427 = vector.load %arg2[%426, %c0_210, %c0_211] : memref<8x8x128xf32, #tpu.memory_space<vmem>>, vector<1x8x128xf32>
    %428 = vector.shape_cast %427 : vector<1x8x128xf32> to vector<8x128xf32>
    %429 = arith.truncf %424 : vector<8x32xf32> to vector<8x32xbf16>
    %cst_212 = arith.constant dense<0.000000e+00> : vector<8x128xf32>
    %430 = tpu.matmul %429, %4, %cst_212 {dimension_numbers = #tpu.dot_dimension_numbers<[1], [0], [0], [1], [0, 0, 1, 1], [], []>} : vector<8x32xbf16>, vector<32x128xbf16>, vector<8x128xf32> -> vector<8x128xf32>
    %431 = arith.addf %428, %430 : vector<8x128xf32>
    %432 = vector.extract_strided_slice %431 {offsets = [0, 0], sizes = [8, 32], strides = [1, 1]} : vector<8x128xf32> to vector<8x32xf32>
    %cst_213 = arith.constant 5.000000e-01 : f32
    %433 = vector.broadcast %cst_213 : f32 to vector<8x32xf32>
    %434 = arith.mulf %433, %432 : vector<8x32xf32>
    %435 = math.tanh %434 : vector<8x32xf32>
    %cst_214 = arith.constant 1.000000e+00 : f32
    %436 = vector.broadcast %cst_214 : f32 to vector<8x32xf32>
    %437 = arith.addf %436, %435 : vector<8x32xf32>
    %cst_215 = arith.constant 5.000000e-01 : f32
    %438 = vector.broadcast %cst_215 : f32 to vector<8x32xf32>
    %439 = arith.mulf %438, %437 : vector<8x32xf32>
    %440 = vector.extract_strided_slice %431 {offsets = [0, 32], sizes = [8, 32], strides = [1, 1]} : vector<8x128xf32> to vector<8x32xf32>
    %cst_216 = arith.constant 5.000000e-01 : f32
    %441 = vector.broadcast %cst_216 : f32 to vector<8x32xf32>
    %442 = arith.mulf %441, %440 : vector<8x32xf32>
    %443 = math.tanh %442 : vector<8x32xf32>
    %cst_217 = arith.constant 1.000000e+00 : f32
    %444 = vector.broadcast %cst_217 : f32 to vector<8x32xf32>
    %445 = arith.addf %444, %443 : vector<8x32xf32>
    %cst_218 = arith.constant 5.000000e-01 : f32
    %446 = vector.broadcast %cst_218 : f32 to vector<8x32xf32>
    %447 = arith.mulf %446, %445 : vector<8x32xf32>
    %448 = vector.extract_strided_slice %431 {offsets = [0, 64], sizes = [8, 32], strides = [1, 1]} : vector<8x128xf32> to vector<8x32xf32>
    %449 = math.tanh %448 : vector<8x32xf32>
    %450 = vector.extract_strided_slice %431 {offsets = [0, 96], sizes = [8, 32], strides = [1, 1]} : vector<8x128xf32> to vector<8x32xf32>
    %cst_219 = arith.constant 5.000000e-01 : f32
    %451 = vector.broadcast %cst_219 : f32 to vector<8x32xf32>
    %452 = arith.mulf %451, %450 : vector<8x32xf32>
    %453 = math.tanh %452 : vector<8x32xf32>
    %cst_220 = arith.constant 1.000000e+00 : f32
    %454 = vector.broadcast %cst_220 : f32 to vector<8x32xf32>
    %455 = arith.addf %454, %453 : vector<8x32xf32>
    %cst_221 = arith.constant 5.000000e-01 : f32
    %456 = vector.broadcast %cst_221 : f32 to vector<8x32xf32>
    %457 = arith.mulf %456, %455 : vector<8x32xf32>
    %458 = arith.mulf %447, %425 : vector<8x32xf32>
    %459 = arith.mulf %439, %449 : vector<8x32xf32>
    %460 = arith.addf %458, %459 : vector<8x32xf32>
    %461 = math.tanh %460 : vector<8x32xf32>
    %462 = arith.mulf %457, %461 : vector<8x32xf32>
    %c0_222 = arith.constant 0 : index
    %c0_223 = arith.constant 0 : index
    %463 = vector.load %arg9[%c0_222, %c0_223] : memref<8x32xf32, #tpu.memory_space<vmem>>, vector<8x32xf32>
    tpu.vector_store %arg9[%c0_222, %c0_223], %462 {strides = array<i32>} : memref<8x32xf32, #tpu.memory_space<vmem>>, vector<8x32xf32>,
    %c0_224 = arith.constant 0 : index
    %c0_225 = arith.constant 0 : index
    %464 = vector.load %arg10[%c0_224, %c0_225] : memref<8x32xf32, #tpu.memory_space<vmem>>, vector<8x32xf32>
    tpu.vector_store %arg10[%c0_224, %c0_225], %460 {strides = array<i32>} : memref<8x32xf32, #tpu.memory_space<vmem>>, vector<8x32xf32>,
    %465 = arith.truncf %462 : vector<8x32xf32> to vector<8x32xbf16>
    %466 = arith.index_cast %423 : i32 to index
    %c0_226 = arith.constant 0 : index
    %c0_227 = arith.constant 0 : index
    %467 = vector.load %arg6[%466, %c0_226, %c0_227] : memref<8x8x32xbf16, #tpu.memory_space<vmem>>, vector<1x8x32xbf16>
    %468 = vector.shape_cast %467 : vector<1x8x32xbf16> to vector<8x32xbf16>
    %469 = vector.shape_cast %465 : vector<8x32xbf16> to vector<1x8x32xbf16>
    tpu.vector_store %arg6[%466, %c0_226, %c0_227], %469 {strides = array<i32>} : memref<8x8x32xbf16, #tpu.memory_space<vmem>>, vector<1x8x32xbf16>,
    %c5_i32 = arith.constant 5 : i32
    %470 = arith.index_cast %c5_i32 : i32 to index
    %c0_228 = arith.constant 0 : index
    %c0_229 = arith.constant 0 : index
    %471 = vector.load %arg1[%470, %c0_228, %c0_229] : memref<8x8x128xf32, #tpu.memory_space<vmem>>, vector<1x8x128xf32>
    %472 = vector.shape_cast %471 : vector<1x8x128xf32> to vector<8x128xf32>
    %c0_230 = arith.constant 0 : index
    %c0_231 = arith.constant 0 : index
    %473 = vector.load %arg7[%c0_230, %c0_231] : memref<8x32xf32, #tpu.memory_space<vmem>>, vector<8x32xf32>
    %c0_232 = arith.constant 0 : index
    %c0_233 = arith.constant 0 : index
    %474 = vector.load %arg8[%c0_232, %c0_233] : memref<8x32xf32, #tpu.memory_space<vmem>>, vector<8x32xf32>
    %475 = arith.truncf %473 : vector<8x32xf32> to vector<8x32xbf16>
    %cst_234 = arith.constant dense<0.000000e+00> : vector<8x128xf32>
    %476 = tpu.matmul %475, %3, %cst_234 {dimension_numbers = #tpu.dot_dimension_numbers<[1], [0], [0], [1], [0, 0, 1, 1], [], []>} : vector<8x32xbf16>, vector<32x128xbf16>, vector<8x128xf32> -> vector<8x128xf32>
    %477 = arith.addf %472, %476 : vector<8x128xf32>
    %478 = vector.extract_strided_slice %477 {offsets = [0, 0], sizes = [8, 32], strides = [1, 1]} : vector<8x128xf32> to vector<8x32xf32>
    %cst_235 = arith.constant 5.000000e-01 : f32
    %479 = vector.broadcast %cst_235 : f32 to vector<8x32xf32>
    %480 = arith.mulf %479, %478 : vector<8x32xf32>
    %481 = math.tanh %480 : vector<8x32xf32>
    %cst_236 = arith.constant 1.000000e+00 : f32
    %482 = vector.broadcast %cst_236 : f32 to vector<8x32xf32>
    %483 = arith.addf %482, %481 : vector<8x32xf32>
    %cst_237 = arith.constant 5.000000e-01 : f32
    %484 = vector.broadcast %cst_237 : f32 to vector<8x32xf32>
    %485 = arith.mulf %484, %483 : vector<8x32xf32>
    %486 = vector.extract_strided_slice %477 {offsets = [0, 32], sizes = [8, 32], strides = [1, 1]} : vector<8x128xf32> to vector<8x32xf32>
    %cst_238 = arith.constant 5.000000e-01 : f32
    %487 = vector.broadcast %cst_238 : f32 to vector<8x32xf32>
    %488 = arith.mulf %487, %486 : vector<8x32xf32>
    %489 = math.tanh %488 : vector<8x32xf32>
    %cst_239 = arith.constant 1.000000e+00 : f32
    %490 = vector.broadcast %cst_239 : f32 to vector<8x32xf32>
    %491 = arith.addf %490, %489 : vector<8x32xf32>
    %cst_240 = arith.constant 5.000000e-01 : f32
    %492 = vector.broadcast %cst_240 : f32 to vector<8x32xf32>
    %493 = arith.mulf %492, %491 : vector<8x32xf32>
    %494 = vector.extract_strided_slice %477 {offsets = [0, 64], sizes = [8, 32], strides = [1, 1]} : vector<8x128xf32> to vector<8x32xf32>
    %495 = math.tanh %494 : vector<8x32xf32>
    %496 = vector.extract_strided_slice %477 {offsets = [0, 96], sizes = [8, 32], strides = [1, 1]} : vector<8x128xf32> to vector<8x32xf32>
    %cst_241 = arith.constant 5.000000e-01 : f32
    %497 = vector.broadcast %cst_241 : f32 to vector<8x32xf32>
    %498 = arith.mulf %497, %496 : vector<8x32xf32>
    %499 = math.tanh %498 : vector<8x32xf32>
    %cst_242 = arith.constant 1.000000e+00 : f32
    %500 = vector.broadcast %cst_242 : f32 to vector<8x32xf32>
    %501 = arith.addf %500, %499 : vector<8x32xf32>
    %cst_243 = arith.constant 5.000000e-01 : f32
    %502 = vector.broadcast %cst_243 : f32 to vector<8x32xf32>
    %503 = arith.mulf %502, %501 : vector<8x32xf32>
    %504 = arith.mulf %493, %474 : vector<8x32xf32>
    %505 = arith.mulf %485, %495 : vector<8x32xf32>
    %506 = arith.addf %504, %505 : vector<8x32xf32>
    %507 = math.tanh %506 : vector<8x32xf32>
    %508 = arith.mulf %503, %507 : vector<8x32xf32>
    %c0_244 = arith.constant 0 : index
    %c0_245 = arith.constant 0 : index
    %509 = vector.load %arg7[%c0_244, %c0_245] : memref<8x32xf32, #tpu.memory_space<vmem>>, vector<8x32xf32>
    tpu.vector_store %arg7[%c0_244, %c0_245], %508 {strides = array<i32>} : memref<8x32xf32, #tpu.memory_space<vmem>>, vector<8x32xf32>,
    %c0_246 = arith.constant 0 : index
    %c0_247 = arith.constant 0 : index
    %510 = vector.load %arg8[%c0_246, %c0_247] : memref<8x32xf32, #tpu.memory_space<vmem>>, vector<8x32xf32>
    tpu.vector_store %arg8[%c0_246, %c0_247], %506 {strides = array<i32>} : memref<8x32xf32, #tpu.memory_space<vmem>>, vector<8x32xf32>,
    %511 = arith.truncf %508 : vector<8x32xf32> to vector<8x32xbf16>
    %512 = arith.index_cast %c5_i32 : i32 to index
    %c0_248 = arith.constant 0 : index
    %c0_249 = arith.constant 0 : index
    %513 = vector.load %arg5[%512, %c0_248, %c0_249] : memref<8x8x32xbf16, #tpu.memory_space<vmem>>, vector<1x8x32xbf16>
    %514 = vector.shape_cast %513 : vector<1x8x32xbf16> to vector<8x32xbf16>
    %515 = vector.shape_cast %511 : vector<8x32xbf16> to vector<1x8x32xbf16>
    tpu.vector_store %arg5[%512, %c0_248, %c0_249], %515 {strides = array<i32>} : memref<8x8x32xbf16, #tpu.memory_space<vmem>>, vector<1x8x32xbf16>,
    %c7_i32_250 = arith.constant 7 : i32
    %516 = arith.subi %c7_i32_250, %c5_i32 : i32
    %c0_251 = arith.constant 0 : index
    %c0_252 = arith.constant 0 : index
    %517 = vector.load %arg9[%c0_251, %c0_252] : memref<8x32xf32, #tpu.memory_space<vmem>>, vector<8x32xf32>
    %c0_253 = arith.constant 0 : index
    %c0_254 = arith.constant 0 : index
    %518 = vector.load %arg10[%c0_253, %c0_254] : memref<8x32xf32, #tpu.memory_space<vmem>>, vector<8x32xf32>
    %519 = arith.index_cast %516 : i32 to index
    %c0_255 = arith.constant 0 : index
    %c0_256 = arith.constant 0 : index
    %520 = vector.load %arg2[%519, %c0_255, %c0_256] : memref<8x8x128xf32, #tpu.memory_space<vmem>>, vector<1x8x128xf32>
    %521 = vector.shape_cast %520 : vector<1x8x128xf32> to vector<8x128xf32>
    %522 = arith.truncf %517 : vector<8x32xf32> to vector<8x32xbf16>
    %cst_257 = arith.constant dense<0.000000e+00> : vector<8x128xf32>
    %523 = tpu.matmul %522, %4, %cst_257 {dimension_numbers = #tpu.dot_dimension_numbers<[1], [0], [0], [1], [0, 0, 1, 1], [], []>} : vector<8x32xbf16>, vector<32x128xbf16>, vector<8x128xf32> -> vector<8x128xf32>
    %524 = arith.addf %521, %523 : vector<8x128xf32>
    %525 = vector.extract_strided_slice %524 {offsets = [0, 0], sizes = [8, 32], strides = [1, 1]} : vector<8x128xf32> to vector<8x32xf32>
    %cst_258 = arith.constant 5.000000e-01 : f32
    %526 = vector.broadcast %cst_258 : f32 to vector<8x32xf32>
    %527 = arith.mulf %526, %525 : vector<8x32xf32>
    %528 = math.tanh %527 : vector<8x32xf32>
    %cst_259 = arith.constant 1.000000e+00 : f32
    %529 = vector.broadcast %cst_259 : f32 to vector<8x32xf32>
    %530 = arith.addf %529, %528 : vector<8x32xf32>
    %cst_260 = arith.constant 5.000000e-01 : f32
    %531 = vector.broadcast %cst_260 : f32 to vector<8x32xf32>
    %532 = arith.mulf %531, %530 : vector<8x32xf32>
    %533 = vector.extract_strided_slice %524 {offsets = [0, 32], sizes = [8, 32], strides = [1, 1]} : vector<8x128xf32> to vector<8x32xf32>
    %cst_261 = arith.constant 5.000000e-01 : f32
    %534 = vector.broadcast %cst_261 : f32 to vector<8x32xf32>
    %535 = arith.mulf %534, %533 : vector<8x32xf32>
    %536 = math.tanh %535 : vector<8x32xf32>
    %cst_262 = arith.constant 1.000000e+00 : f32
    %537 = vector.broadcast %cst_262 : f32 to vector<8x32xf32>
    %538 = arith.addf %537, %536 : vector<8x32xf32>
    %cst_263 = arith.constant 5.000000e-01 : f32
    %539 = vector.broadcast %cst_263 : f32 to vector<8x32xf32>
    %540 = arith.mulf %539, %538 : vector<8x32xf32>
    %541 = vector.extract_strided_slice %524 {offsets = [0, 64], sizes = [8, 32], strides = [1, 1]} : vector<8x128xf32> to vector<8x32xf32>
    %542 = math.tanh %541 : vector<8x32xf32>
    %543 = vector.extract_strided_slice %524 {offsets = [0, 96], sizes = [8, 32], strides = [1, 1]} : vector<8x128xf32> to vector<8x32xf32>
    %cst_264 = arith.constant 5.000000e-01 : f32
    %544 = vector.broadcast %cst_264 : f32 to vector<8x32xf32>
    %545 = arith.mulf %544, %543 : vector<8x32xf32>
    %546 = math.tanh %545 : vector<8x32xf32>
    %cst_265 = arith.constant 1.000000e+00 : f32
    %547 = vector.broadcast %cst_265 : f32 to vector<8x32xf32>
    %548 = arith.addf %547, %546 : vector<8x32xf32>
    %cst_266 = arith.constant 5.000000e-01 : f32
    %549 = vector.broadcast %cst_266 : f32 to vector<8x32xf32>
    %550 = arith.mulf %549, %548 : vector<8x32xf32>
    %551 = arith.mulf %540, %518 : vector<8x32xf32>
    %552 = arith.mulf %532, %542 : vector<8x32xf32>
    %553 = arith.addf %551, %552 : vector<8x32xf32>
    %554 = math.tanh %553 : vector<8x32xf32>
    %555 = arith.mulf %550, %554 : vector<8x32xf32>
    %c0_267 = arith.constant 0 : index
    %c0_268 = arith.constant 0 : index
    %556 = vector.load %arg9[%c0_267, %c0_268] : memref<8x32xf32, #tpu.memory_space<vmem>>, vector<8x32xf32>
    tpu.vector_store %arg9[%c0_267, %c0_268], %555 {strides = array<i32>} : memref<8x32xf32, #tpu.memory_space<vmem>>, vector<8x32xf32>,
    %c0_269 = arith.constant 0 : index
    %c0_270 = arith.constant 0 : index
    %557 = vector.load %arg10[%c0_269, %c0_270] : memref<8x32xf32, #tpu.memory_space<vmem>>, vector<8x32xf32>
    tpu.vector_store %arg10[%c0_269, %c0_270], %553 {strides = array<i32>} : memref<8x32xf32, #tpu.memory_space<vmem>>, vector<8x32xf32>,
    %558 = arith.truncf %555 : vector<8x32xf32> to vector<8x32xbf16>
    %559 = arith.index_cast %516 : i32 to index
    %c0_271 = arith.constant 0 : index
    %c0_272 = arith.constant 0 : index
    %560 = vector.load %arg6[%559, %c0_271, %c0_272] : memref<8x8x32xbf16, #tpu.memory_space<vmem>>, vector<1x8x32xbf16>
    %561 = vector.shape_cast %560 : vector<1x8x32xbf16> to vector<8x32xbf16>
    %562 = vector.shape_cast %558 : vector<8x32xbf16> to vector<1x8x32xbf16>
    tpu.vector_store %arg6[%559, %c0_271, %c0_272], %562 {strides = array<i32>} : memref<8x8x32xbf16, #tpu.memory_space<vmem>>, vector<1x8x32xbf16>,
    %c6_i32 = arith.constant 6 : i32
    %563 = arith.index_cast %c6_i32 : i32 to index
    %c0_273 = arith.constant 0 : index
    %c0_274 = arith.constant 0 : index
    %564 = vector.load %arg1[%563, %c0_273, %c0_274] : memref<8x8x128xf32, #tpu.memory_space<vmem>>, vector<1x8x128xf32>
    %565 = vector.shape_cast %564 : vector<1x8x128xf32> to vector<8x128xf32>
    %c0_275 = arith.constant 0 : index
    %c0_276 = arith.constant 0 : index
    %566 = vector.load %arg7[%c0_275, %c0_276] : memref<8x32xf32, #tpu.memory_space<vmem>>, vector<8x32xf32>
    %c0_277 = arith.constant 0 : index
    %c0_278 = arith.constant 0 : index
    %567 = vector.load %arg8[%c0_277, %c0_278] : memref<8x32xf32, #tpu.memory_space<vmem>>, vector<8x32xf32>
    %568 = arith.truncf %566 : vector<8x32xf32> to vector<8x32xbf16>
    %cst_279 = arith.constant dense<0.000000e+00> : vector<8x128xf32>
    %569 = tpu.matmul %568, %3, %cst_279 {dimension_numbers = #tpu.dot_dimension_numbers<[1], [0], [0], [1], [0, 0, 1, 1], [], []>} : vector<8x32xbf16>, vector<32x128xbf16>, vector<8x128xf32> -> vector<8x128xf32>
    %570 = arith.addf %565, %569 : vector<8x128xf32>
    %571 = vector.extract_strided_slice %570 {offsets = [0, 0], sizes = [8, 32], strides = [1, 1]} : vector<8x128xf32> to vector<8x32xf32>
    %cst_280 = arith.constant 5.000000e-01 : f32
    %572 = vector.broadcast %cst_280 : f32 to vector<8x32xf32>
    %573 = arith.mulf %572, %571 : vector<8x32xf32>
    %574 = math.tanh %573 : vector<8x32xf32>
    %cst_281 = arith.constant 1.000000e+00 : f32
    %575 = vector.broadcast %cst_281 : f32 to vector<8x32xf32>
    %576 = arith.addf %575, %574 : vector<8x32xf32>
    %cst_282 = arith.constant 5.000000e-01 : f32
    %577 = vector.broadcast %cst_282 : f32 to vector<8x32xf32>
    %578 = arith.mulf %577, %576 : vector<8x32xf32>
    %579 = vector.extract_strided_slice %570 {offsets = [0, 32], sizes = [8, 32], strides = [1, 1]} : vector<8x128xf32> to vector<8x32xf32>
    %cst_283 = arith.constant 5.000000e-01 : f32
    %580 = vector.broadcast %cst_283 : f32 to vector<8x32xf32>
    %581 = arith.mulf %580, %579 : vector<8x32xf32>
    %582 = math.tanh %581 : vector<8x32xf32>
    %cst_284 = arith.constant 1.000000e+00 : f32
    %583 = vector.broadcast %cst_284 : f32 to vector<8x32xf32>
    %584 = arith.addf %583, %582 : vector<8x32xf32>
    %cst_285 = arith.constant 5.000000e-01 : f32
    %585 = vector.broadcast %cst_285 : f32 to vector<8x32xf32>
    %586 = arith.mulf %585, %584 : vector<8x32xf32>
    %587 = vector.extract_strided_slice %570 {offsets = [0, 64], sizes = [8, 32], strides = [1, 1]} : vector<8x128xf32> to vector<8x32xf32>
    %588 = math.tanh %587 : vector<8x32xf32>
    %589 = vector.extract_strided_slice %570 {offsets = [0, 96], sizes = [8, 32], strides = [1, 1]} : vector<8x128xf32> to vector<8x32xf32>
    %cst_286 = arith.constant 5.000000e-01 : f32
    %590 = vector.broadcast %cst_286 : f32 to vector<8x32xf32>
    %591 = arith.mulf %590, %589 : vector<8x32xf32>
    %592 = math.tanh %591 : vector<8x32xf32>
    %cst_287 = arith.constant 1.000000e+00 : f32
    %593 = vector.broadcast %cst_287 : f32 to vector<8x32xf32>
    %594 = arith.addf %593, %592 : vector<8x32xf32>
    %cst_288 = arith.constant 5.000000e-01 : f32
    %595 = vector.broadcast %cst_288 : f32 to vector<8x32xf32>
    %596 = arith.mulf %595, %594 : vector<8x32xf32>
    %597 = arith.mulf %586, %567 : vector<8x32xf32>
    %598 = arith.mulf %578, %588 : vector<8x32xf32>
    %599 = arith.addf %597, %598 : vector<8x32xf32>
    %600 = math.tanh %599 : vector<8x32xf32>
    %601 = arith.mulf %596, %600 : vector<8x32xf32>
    %c0_289 = arith.constant 0 : index
    %c0_290 = arith.constant 0 : index
    %602 = vector.load %arg7[%c0_289, %c0_290] : memref<8x32xf32, #tpu.memory_space<vmem>>, vector<8x32xf32>
    tpu.vector_store %arg7[%c0_289, %c0_290], %601 {strides = array<i32>} : memref<8x32xf32, #tpu.memory_space<vmem>>, vector<8x32xf32>,
    %c0_291 = arith.constant 0 : index
    %c0_292 = arith.constant 0 : index
    %603 = vector.load %arg8[%c0_291, %c0_292] : memref<8x32xf32, #tpu.memory_space<vmem>>, vector<8x32xf32>
    tpu.vector_store %arg8[%c0_291, %c0_292], %599 {strides = array<i32>} : memref<8x32xf32, #tpu.memory_space<vmem>>, vector<8x32xf32>,
    %604 = arith.truncf %601 : vector<8x32xf32> to vector<8x32xbf16>
    %605 = arith.index_cast %c6_i32 : i32 to index
    %c0_293 = arith.constant 0 : index
    %c0_294 = arith.constant 0 : index
    %606 = vector.load %arg5[%605, %c0_293, %c0_294] : memref<8x8x32xbf16, #tpu.memory_space<vmem>>, vector<1x8x32xbf16>
    %607 = vector.shape_cast %606 : vector<1x8x32xbf16> to vector<8x32xbf16>
    %608 = vector.shape_cast %604 : vector<8x32xbf16> to vector<1x8x32xbf16>
    tpu.vector_store %arg5[%605, %c0_293, %c0_294], %608 {strides = array<i32>} : memref<8x8x32xbf16, #tpu.memory_space<vmem>>, vector<1x8x32xbf16>,
    %c7_i32_295 = arith.constant 7 : i32
    %609 = arith.subi %c7_i32_295, %c6_i32 : i32
    %c0_296 = arith.constant 0 : index
    %c0_297 = arith.constant 0 : index
    %610 = vector.load %arg9[%c0_296, %c0_297] : memref<8x32xf32, #tpu.memory_space<vmem>>, vector<8x32xf32>
    %c0_298 = arith.constant 0 : index
    %c0_299 = arith.constant 0 : index
    %611 = vector.load %arg10[%c0_298, %c0_299] : memref<8x32xf32, #tpu.memory_space<vmem>>, vector<8x32xf32>
    %612 = arith.index_cast %609 : i32 to index
    %c0_300 = arith.constant 0 : index
    %c0_301 = arith.constant 0 : index
    %613 = vector.load %arg2[%612, %c0_300, %c0_301] : memref<8x8x128xf32, #tpu.memory_space<vmem>>, vector<1x8x128xf32>
    %614 = vector.shape_cast %613 : vector<1x8x128xf32> to vector<8x128xf32>
    %615 = arith.truncf %610 : vector<8x32xf32> to vector<8x32xbf16>
    %cst_302 = arith.constant dense<0.000000e+00> : vector<8x128xf32>
    %616 = tpu.matmul %615, %4, %cst_302 {dimension_numbers = #tpu.dot_dimension_numbers<[1], [0], [0], [1], [0, 0, 1, 1], [], []>} : vector<8x32xbf16>, vector<32x128xbf16>, vector<8x128xf32> -> vector<8x128xf32>
    %617 = arith.addf %614, %616 : vector<8x128xf32>
    %618 = vector.extract_strided_slice %617 {offsets = [0, 0], sizes = [8, 32], strides = [1, 1]} : vector<8x128xf32> to vector<8x32xf32>
    %cst_303 = arith.constant 5.000000e-01 : f32
    %619 = vector.broadcast %cst_303 : f32 to vector<8x32xf32>
    %620 = arith.mulf %619, %618 : vector<8x32xf32>
    %621 = math.tanh %620 : vector<8x32xf32>
    %cst_304 = arith.constant 1.000000e+00 : f32
    %622 = vector.broadcast %cst_304 : f32 to vector<8x32xf32>
    %623 = arith.addf %622, %621 : vector<8x32xf32>
    %cst_305 = arith.constant 5.000000e-01 : f32
    %624 = vector.broadcast %cst_305 : f32 to vector<8x32xf32>
    %625 = arith.mulf %624, %623 : vector<8x32xf32>
    %626 = vector.extract_strided_slice %617 {offsets = [0, 32], sizes = [8, 32], strides = [1, 1]} : vector<8x128xf32> to vector<8x32xf32>
    %cst_306 = arith.constant 5.000000e-01 : f32
    %627 = vector.broadcast %cst_306 : f32 to vector<8x32xf32>
    %628 = arith.mulf %627, %626 : vector<8x32xf32>
    %629 = math.tanh %628 : vector<8x32xf32>
    %cst_307 = arith.constant 1.000000e+00 : f32
    %630 = vector.broadcast %cst_307 : f32 to vector<8x32xf32>
    %631 = arith.addf %630, %629 : vector<8x32xf32>
    %cst_308 = arith.constant 5.000000e-01 : f32
    %632 = vector.broadcast %cst_308 : f32 to vector<8x32xf32>
    %633 = arith.mulf %632, %631 : vector<8x32xf32>
    %634 = vector.extract_strided_slice %617 {offsets = [0, 64], sizes = [8, 32], strides = [1, 1]} : vector<8x128xf32> to vector<8x32xf32>
    %635 = math.tanh %634 : vector<8x32xf32>
    %636 = vector.extract_strided_slice %617 {offsets = [0, 96], sizes = [8, 32], strides = [1, 1]} : vector<8x128xf32> to vector<8x32xf32>
    %cst_309 = arith.constant 5.000000e-01 : f32
    %637 = vector.broadcast %cst_309 : f32 to vector<8x32xf32>
    %638 = arith.mulf %637, %636 : vector<8x32xf32>
    %639 = math.tanh %638 : vector<8x32xf32>
    %cst_310 = arith.constant 1.000000e+00 : f32
    %640 = vector.broadcast %cst_310 : f32 to vector<8x32xf32>
    %641 = arith.addf %640, %639 : vector<8x32xf32>
    %cst_311 = arith.constant 5.000000e-01 : f32
    %642 = vector.broadcast %cst_311 : f32 to vector<8x32xf32>
    %643 = arith.mulf %642, %641 : vector<8x32xf32>
    %644 = arith.mulf %633, %611 : vector<8x32xf32>
    %645 = arith.mulf %625, %635 : vector<8x32xf32>
    %646 = arith.addf %644, %645 : vector<8x32xf32>
    %647 = math.tanh %646 : vector<8x32xf32>
    %648 = arith.mulf %643, %647 : vector<8x32xf32>
    %c0_312 = arith.constant 0 : index
    %c0_313 = arith.constant 0 : index
    %649 = vector.load %arg9[%c0_312, %c0_313] : memref<8x32xf32, #tpu.memory_space<vmem>>, vector<8x32xf32>
    tpu.vector_store %arg9[%c0_312, %c0_313], %648 {strides = array<i32>} : memref<8x32xf32, #tpu.memory_space<vmem>>, vector<8x32xf32>,
    %c0_314 = arith.constant 0 : index
    %c0_315 = arith.constant 0 : index
    %650 = vector.load %arg10[%c0_314, %c0_315] : memref<8x32xf32, #tpu.memory_space<vmem>>, vector<8x32xf32>
    tpu.vector_store %arg10[%c0_314, %c0_315], %646 {strides = array<i32>} : memref<8x32xf32, #tpu.memory_space<vmem>>, vector<8x32xf32>,
    %651 = arith.truncf %648 : vector<8x32xf32> to vector<8x32xbf16>
    %652 = arith.index_cast %609 : i32 to index
    %c0_316 = arith.constant 0 : index
    %c0_317 = arith.constant 0 : index
    %653 = vector.load %arg6[%652, %c0_316, %c0_317] : memref<8x8x32xbf16, #tpu.memory_space<vmem>>, vector<1x8x32xbf16>
    %654 = vector.shape_cast %653 : vector<1x8x32xbf16> to vector<8x32xbf16>
    %655 = vector.shape_cast %651 : vector<8x32xbf16> to vector<1x8x32xbf16>
    tpu.vector_store %arg6[%652, %c0_316, %c0_317], %655 {strides = array<i32>} : memref<8x8x32xbf16, #tpu.memory_space<vmem>>, vector<1x8x32xbf16>,
    %c7_i32_318 = arith.constant 7 : i32
    %656 = arith.index_cast %c7_i32_318 : i32 to index
    %c0_319 = arith.constant 0 : index
    %c0_320 = arith.constant 0 : index
    %657 = vector.load %arg1[%656, %c0_319, %c0_320] : memref<8x8x128xf32, #tpu.memory_space<vmem>>, vector<1x8x128xf32>
    %658 = vector.shape_cast %657 : vector<1x8x128xf32> to vector<8x128xf32>
    %c0_321 = arith.constant 0 : index
    %c0_322 = arith.constant 0 : index
    %659 = vector.load %arg7[%c0_321, %c0_322] : memref<8x32xf32, #tpu.memory_space<vmem>>, vector<8x32xf32>
    %c0_323 = arith.constant 0 : index
    %c0_324 = arith.constant 0 : index
    %660 = vector.load %arg8[%c0_323, %c0_324] : memref<8x32xf32, #tpu.memory_space<vmem>>, vector<8x32xf32>
    %661 = arith.truncf %659 : vector<8x32xf32> to vector<8x32xbf16>
    %cst_325 = arith.constant dense<0.000000e+00> : vector<8x128xf32>
    %662 = tpu.matmul %661, %3, %cst_325 {dimension_numbers = #tpu.dot_dimension_numbers<[1], [0], [0], [1], [0, 0, 1, 1], [], []>} : vector<8x32xbf16>, vector<32x128xbf16>, vector<8x128xf32> -> vector<8x128xf32>
    %663 = arith.addf %658, %662 : vector<8x128xf32>
    %664 = vector.extract_strided_slice %663 {offsets = [0, 0], sizes = [8, 32], strides = [1, 1]} : vector<8x128xf32> to vector<8x32xf32>
    %cst_326 = arith.constant 5.000000e-01 : f32
    %665 = vector.broadcast %cst_326 : f32 to vector<8x32xf32>
    %666 = arith.mulf %665, %664 : vector<8x32xf32>
    %667 = math.tanh %666 : vector<8x32xf32>
    %cst_327 = arith.constant 1.000000e+00 : f32
    %668 = vector.broadcast %cst_327 : f32 to vector<8x32xf32>
    %669 = arith.addf %668, %667 : vector<8x32xf32>
    %cst_328 = arith.constant 5.000000e-01 : f32
    %670 = vector.broadcast %cst_328 : f32 to vector<8x32xf32>
    %671 = arith.mulf %670, %669 : vector<8x32xf32>
    %672 = vector.extract_strided_slice %663 {offsets = [0, 32], sizes = [8, 32], strides = [1, 1]} : vector<8x128xf32> to vector<8x32xf32>
    %cst_329 = arith.constant 5.000000e-01 : f32
    %673 = vector.broadcast %cst_329 : f32 to vector<8x32xf32>
    %674 = arith.mulf %673, %672 : vector<8x32xf32>
    %675 = math.tanh %674 : vector<8x32xf32>
    %cst_330 = arith.constant 1.000000e+00 : f32
    %676 = vector.broadcast %cst_330 : f32 to vector<8x32xf32>
    %677 = arith.addf %676, %675 : vector<8x32xf32>
    %cst_331 = arith.constant 5.000000e-01 : f32
    %678 = vector.broadcast %cst_331 : f32 to vector<8x32xf32>
    %679 = arith.mulf %678, %677 : vector<8x32xf32>
    %680 = vector.extract_strided_slice %663 {offsets = [0, 64], sizes = [8, 32], strides = [1, 1]} : vector<8x128xf32> to vector<8x32xf32>
    %681 = math.tanh %680 : vector<8x32xf32>
    %682 = vector.extract_strided_slice %663 {offsets = [0, 96], sizes = [8, 32], strides = [1, 1]} : vector<8x128xf32> to vector<8x32xf32>
    %cst_332 = arith.constant 5.000000e-01 : f32
    %683 = vector.broadcast %cst_332 : f32 to vector<8x32xf32>
    %684 = arith.mulf %683, %682 : vector<8x32xf32>
    %685 = math.tanh %684 : vector<8x32xf32>
    %cst_333 = arith.constant 1.000000e+00 : f32
    %686 = vector.broadcast %cst_333 : f32 to vector<8x32xf32>
    %687 = arith.addf %686, %685 : vector<8x32xf32>
    %cst_334 = arith.constant 5.000000e-01 : f32
    %688 = vector.broadcast %cst_334 : f32 to vector<8x32xf32>
    %689 = arith.mulf %688, %687 : vector<8x32xf32>
    %690 = arith.mulf %679, %660 : vector<8x32xf32>
    %691 = arith.mulf %671, %681 : vector<8x32xf32>
    %692 = arith.addf %690, %691 : vector<8x32xf32>
    %693 = math.tanh %692 : vector<8x32xf32>
    %694 = arith.mulf %689, %693 : vector<8x32xf32>
    %c0_335 = arith.constant 0 : index
    %c0_336 = arith.constant 0 : index
    %695 = vector.load %arg7[%c0_335, %c0_336] : memref<8x32xf32, #tpu.memory_space<vmem>>, vector<8x32xf32>
    tpu.vector_store %arg7[%c0_335, %c0_336], %694 {strides = array<i32>} : memref<8x32xf32, #tpu.memory_space<vmem>>, vector<8x32xf32>,
    %c0_337 = arith.constant 0 : index
    %c0_338 = arith.constant 0 : index
    %696 = vector.load %arg8[%c0_337, %c0_338] : memref<8x32xf32, #tpu.memory_space<vmem>>, vector<8x32xf32>
    tpu.vector_store %arg8[%c0_337, %c0_338], %692 {strides = array<i32>} : memref<8x32xf32, #tpu.memory_space<vmem>>, vector<8x32xf32>,
    %697 = arith.truncf %694 : vector<8x32xf32> to vector<8x32xbf16>
    %698 = arith.index_cast %c7_i32_318 : i32 to index
    %c0_339 = arith.constant 0 : index
    %c0_340 = arith.constant 0 : index
    %699 = vector.load %arg5[%698, %c0_339, %c0_340] : memref<8x8x32xbf16, #tpu.memory_space<vmem>>, vector<1x8x32xbf16>
    %700 = vector.shape_cast %699 : vector<1x8x32xbf16> to vector<8x32xbf16>
    %701 = vector.shape_cast %697 : vector<8x32xbf16> to vector<1x8x32xbf16>
    tpu.vector_store %arg5[%698, %c0_339, %c0_340], %701 {strides = array<i32>} : memref<8x8x32xbf16, #tpu.memory_space<vmem>>, vector<1x8x32xbf16>,
    %c7_i32_341 = arith.constant 7 : i32
    %702 = arith.subi %c7_i32_341, %c7_i32_318 : i32
    %c0_342 = arith.constant 0 : index
    %c0_343 = arith.constant 0 : index
    %703 = vector.load %arg9[%c0_342, %c0_343] : memref<8x32xf32, #tpu.memory_space<vmem>>, vector<8x32xf32>
    %c0_344 = arith.constant 0 : index
    %c0_345 = arith.constant 0 : index
    %704 = vector.load %arg10[%c0_344, %c0_345] : memref<8x32xf32, #tpu.memory_space<vmem>>, vector<8x32xf32>
    %705 = arith.index_cast %702 : i32 to index
    %c0_346 = arith.constant 0 : index
    %c0_347 = arith.constant 0 : index
    %706 = vector.load %arg2[%705, %c0_346, %c0_347] : memref<8x8x128xf32, #tpu.memory_space<vmem>>, vector<1x8x128xf32>
    %707 = vector.shape_cast %706 : vector<1x8x128xf32> to vector<8x128xf32>
    %708 = arith.truncf %703 : vector<8x32xf32> to vector<8x32xbf16>
    %cst_348 = arith.constant dense<0.000000e+00> : vector<8x128xf32>
    %709 = tpu.matmul %708, %4, %cst_348 {dimension_numbers = #tpu.dot_dimension_numbers<[1], [0], [0], [1], [0, 0, 1, 1], [], []>} : vector<8x32xbf16>, vector<32x128xbf16>, vector<8x128xf32> -> vector<8x128xf32>
    %710 = arith.addf %707, %709 : vector<8x128xf32>
    %711 = vector.extract_strided_slice %710 {offsets = [0, 0], sizes = [8, 32], strides = [1, 1]} : vector<8x128xf32> to vector<8x32xf32>
    %cst_349 = arith.constant 5.000000e-01 : f32
    %712 = vector.broadcast %cst_349 : f32 to vector<8x32xf32>
    %713 = arith.mulf %712, %711 : vector<8x32xf32>
    %714 = math.tanh %713 : vector<8x32xf32>
    %cst_350 = arith.constant 1.000000e+00 : f32
    %715 = vector.broadcast %cst_350 : f32 to vector<8x32xf32>
    %716 = arith.addf %715, %714 : vector<8x32xf32>
    %cst_351 = arith.constant 5.000000e-01 : f32
    %717 = vector.broadcast %cst_351 : f32 to vector<8x32xf32>
    %718 = arith.mulf %717, %716 : vector<8x32xf32>
    %719 = vector.extract_strided_slice %710 {offsets = [0, 32], sizes = [8, 32], strides = [1, 1]} : vector<8x128xf32> to vector<8x32xf32>
    %cst_352 = arith.constant 5.000000e-01 : f32
    %720 = vector.broadcast %cst_352 : f32 to vector<8x32xf32>
    %721 = arith.mulf %720, %719 : vector<8x32xf32>
    %722 = math.tanh %721 : vector<8x32xf32>
    %cst_353 = arith.constant 1.000000e+00 : f32
    %723 = vector.broadcast %cst_353 : f32 to vector<8x32xf32>
    %724 = arith.addf %723, %722 : vector<8x32xf32>
    %cst_354 = arith.constant 5.000000e-01 : f32
    %725 = vector.broadcast %cst_354 : f32 to vector<8x32xf32>
    %726 = arith.mulf %725, %724 : vector<8x32xf32>
    %727 = vector.extract_strided_slice %710 {offsets = [0, 64], sizes = [8, 32], strides = [1, 1]} : vector<8x128xf32> to vector<8x32xf32>
    %728 = math.tanh %727 : vector<8x32xf32>
    %729 = vector.extract_strided_slice %710 {offsets = [0, 96], sizes = [8, 32], strides = [1, 1]} : vector<8x128xf32> to vector<8x32xf32>
    %cst_355 = arith.constant 5.000000e-01 : f32
    %730 = vector.broadcast %cst_355 : f32 to vector<8x32xf32>
    %731 = arith.mulf %730, %729 : vector<8x32xf32>
    %732 = math.tanh %731 : vector<8x32xf32>
    %cst_356 = arith.constant 1.000000e+00 : f32
    %733 = vector.broadcast %cst_356 : f32 to vector<8x32xf32>
    %734 = arith.addf %733, %732 : vector<8x32xf32>
    %cst_357 = arith.constant 5.000000e-01 : f32
    %735 = vector.broadcast %cst_357 : f32 to vector<8x32xf32>
    %736 = arith.mulf %735, %734 : vector<8x32xf32>
    %737 = arith.mulf %726, %704 : vector<8x32xf32>
    %738 = arith.mulf %718, %728 : vector<8x32xf32>
    %739 = arith.addf %737, %738 : vector<8x32xf32>
    %740 = math.tanh %739 : vector<8x32xf32>
    %741 = arith.mulf %736, %740 : vector<8x32xf32>
    %c0_358 = arith.constant 0 : index
    %c0_359 = arith.constant 0 : index
    %742 = vector.load %arg9[%c0_358, %c0_359] : memref<8x32xf32, #tpu.memory_space<vmem>>, vector<8x32xf32>
    tpu.vector_store %arg9[%c0_358, %c0_359], %741 {strides = array<i32>} : memref<8x32xf32, #tpu.memory_space<vmem>>, vector<8x32xf32>,
    %c0_360 = arith.constant 0 : index
    %c0_361 = arith.constant 0 : index
    %743 = vector.load %arg10[%c0_360, %c0_361] : memref<8x32xf32, #tpu.memory_space<vmem>>, vector<8x32xf32>
    tpu.vector_store %arg10[%c0_360, %c0_361], %739 {strides = array<i32>} : memref<8x32xf32, #tpu.memory_space<vmem>>, vector<8x32xf32>,
    %744 = arith.truncf %741 : vector<8x32xf32> to vector<8x32xbf16>
    %745 = arith.index_cast %702 : i32 to index
    %c0_362 = arith.constant 0 : index
    %c0_363 = arith.constant 0 : index
    %746 = vector.load %arg6[%745, %c0_362, %c0_363] : memref<8x8x32xbf16, #tpu.memory_space<vmem>>, vector<1x8x32xbf16>
    %747 = vector.shape_cast %746 : vector<1x8x32xbf16> to vector<8x32xbf16>
    %748 = vector.shape_cast %744 : vector<8x32xbf16> to vector<1x8x32xbf16>
    tpu.vector_store %arg6[%745, %c0_362, %c0_363], %748 {strides = array<i32>} : memref<8x8x32xbf16, #tpu.memory_space<vmem>>, vector<1x8x32xbf16>,
    %c8_i32 = arith.constant 8 : i32
    return
  }
  func.func @transform_0(%arg0: i32) -> (i32, i32, i32) {
    %c0_i32 = arith.constant 0 : i32
    %c0_i32_0 = arith.constant 0 : i32
    %c0_i32_1 = arith.constant 0 : i32
    return %arg0, %c0_i32, %c0_i32_0 : i32, i32, i32
  }
  func.func @transform_1(%arg0: i32) -> (i32, i32, i32) {
    %c0_i32 = arith.constant 0 : i32
    %0 = arith.subi %c0_i32, %arg0 : i32
    %c0_i32_0 = arith.constant 0 : i32
    %c0_i32_1 = arith.constant 0 : i32
    %c0_i32_2 = arith.constant 0 : i32
    return %0, %c0_i32_0, %c0_i32_1 : i32, i32, i32
  }
  func.func @transform_2(%arg0: i32) -> (i32, i32) {
    %c0_i32 = arith.constant 0 : i32
    %c0_i32_0 = arith.constant 0 : i32
    %c0_i32_1 = arith.constant 0 : i32
    return %c0_i32, %c0_i32_0 : i32, i32
  }
  func.func @transform_3(%arg0: i32) -> (i32, i32) {
    %c0_i32 = arith.constant 0 : i32
    %c0_i32_0 = arith.constant 0 : i32
    %c0_i32_1 = arith.constant 0 : i32
    return %c0_i32, %c0_i32_0 : i32, i32
  }
  func.func @transform_4(%arg0: i32) -> (i32, i32, i32) {
    %c0_i32 = arith.constant 0 : i32
    %c0_i32_0 = arith.constant 0 : i32
    %c0_i32_1 = arith.constant 0 : i32
    return %arg0, %c0_i32, %c0_i32_0 : i32, i32, i32
  }
  func.func @transform_5(%arg0: i32) -> (i32, i32, i32) {
    %c0_i32 = arith.constant 0 : i32
    %0 = arith.subi %c0_i32, %arg0 : i32
    %c0_i32_0 = arith.constant 0 : i32
    %c0_i32_1 = arith.constant 0 : i32
    %c0_i32_2 = arith.constant 0 : i32
    return %0, %c0_i32_0, %c0_i32_1 : i32, i32, i32
  }
}

module attributes {stable_mosaic.version = 11 : i64} {
  func.func @kernel(%arg0: i32, %arg1: memref<64x32xbf16, #tpu.memory_space<vmem>>, %arg2: memref<64x32xbf16, #tpu.memory_space<vmem>>, %arg3: memref<32x128xbf16, #tpu.memory_space<vmem>>, %arg4: memref<32x128xbf16, #tpu.memory_space<vmem>>, %arg5: memref<32x128xbf16, #tpu.memory_space<vmem>>, %arg6: memref<32x128xbf16, #tpu.memory_space<vmem>>, %arg7: memref<1x128xf32, #tpu.memory_space<vmem>>, %arg8: memref<1x128xf32, #tpu.memory_space<vmem>>, %arg9: memref<64x128xf32, #tpu.memory_space<vmem>>, %arg10: memref<64x128xf32, #tpu.memory_space<vmem>>) attributes {dimension_semantics = [#tpu.dimension_semantics<parallel>], iteration_bounds = array<i64: 1>, scalar_prefetch = 0 : i64, scratch_operands = 0 : i64, tpu.core_type = #tpu.core_type<tc>, window_params = [{transform_indices = @transform_0, window_bounds = array<i64: 64, 32>}, {transform_indices = @transform_1, window_bounds = array<i64: 64, 32>}, {pipeline_mode = #tpu.pipeline_mode<synchronous>, transform_indices = @transform_2, window_bounds = array<i64: 32, 128>}, {pipeline_mode = #tpu.pipeline_mode<synchronous>, transform_indices = @transform_3, window_bounds = array<i64: 32, 128>}, {pipeline_mode = #tpu.pipeline_mode<synchronous>, transform_indices = @transform_4, window_bounds = array<i64: 32, 128>}, {pipeline_mode = #tpu.pipeline_mode<synchronous>, transform_indices = @transform_5, window_bounds = array<i64: 32, 128>}, {pipeline_mode = #tpu.pipeline_mode<synchronous>, transform_indices = @transform_6, window_bounds = array<i64: 1, 128>}, {pipeline_mode = #tpu.pipeline_mode<synchronous>, transform_indices = @transform_7, window_bounds = array<i64: 1, 128>}, {transform_indices = @transform_8, window_bounds = array<i64: 64, 128>}, {transform_indices = @transform_9, window_bounds = array<i64: 64, 128>}]} {
    %c0 = arith.constant 0 : index
    %c0_0 = arith.constant 0 : index
    %0 = vector.load %arg1[%c0, %c0_0] : memref<64x32xbf16, #tpu.memory_space<vmem>>, vector<64x32xbf16>
    %c0_1 = arith.constant 0 : index
    %c0_2 = arith.constant 0 : index
    %1 = vector.load %arg2[%c0_1, %c0_2] : memref<64x32xbf16, #tpu.memory_space<vmem>>, vector<64x32xbf16>
    %c0_3 = arith.constant 0 : index
    %c0_4 = arith.constant 0 : index
    %2 = vector.load %arg3[%c0_3, %c0_4] : memref<32x128xbf16, #tpu.memory_space<vmem>>, vector<32x128xbf16>
    %cst = arith.constant dense<0.000000e+00> : vector<64x128xf32>
    %3 = tpu.matmul %0, %2, %cst {dimension_numbers = #tpu.dot_dimension_numbers<[1], [0], [0], [1], [0, 0, 1, 1], [], []>} : vector<64x32xbf16>, vector<32x128xbf16>, vector<64x128xf32> -> vector<64x128xf32>
    %c0_5 = arith.constant 0 : index
    %c0_6 = arith.constant 0 : index
    %4 = vector.load %arg4[%c0_5, %c0_6] : memref<32x128xbf16, #tpu.memory_space<vmem>>, vector<32x128xbf16>
    %cst_7 = arith.constant dense<0.000000e+00> : vector<64x128xf32>
    %5 = tpu.matmul %1, %4, %cst_7 {dimension_numbers = #tpu.dot_dimension_numbers<[1], [0], [0], [1], [0, 0, 1, 1], [], []>} : vector<64x32xbf16>, vector<32x128xbf16>, vector<64x128xf32> -> vector<64x128xf32>
    %6 = arith.addf %3, %5 : vector<64x128xf32>
    %c0_8 = arith.constant 0 : index
    %c0_9 = arith.constant 0 : index
    %7 = vector.load %arg7[%c0_8, %c0_9] : memref<1x128xf32, #tpu.memory_space<vmem>>, vector<1x128xf32>
    %8 = vector.broadcast %7 : vector<1x128xf32> to vector<64x128xf32>
    %9 = arith.addf %6, %8 : vector<64x128xf32>
    %c0_10 = arith.constant 0 : index
    %c0_11 = arith.constant 0 : index
    %10 = vector.load %arg9[%c0_10, %c0_11] : memref<64x128xf32, #tpu.memory_space<vmem>>, vector<64x128xf32>
    tpu.vector_store %arg9[%c0_10, %c0_11], %9 {strides = array<i32>} : memref<64x128xf32, #tpu.memory_space<vmem>>, vector<64x128xf32>,
    %c0_12 = arith.constant 0 : index
    %c0_13 = arith.constant 0 : index
    %11 = vector.load %arg5[%c0_12, %c0_13] : memref<32x128xbf16, #tpu.memory_space<vmem>>, vector<32x128xbf16>
    %cst_14 = arith.constant dense<0.000000e+00> : vector<64x128xf32>
    %12 = tpu.matmul %0, %11, %cst_14 {dimension_numbers = #tpu.dot_dimension_numbers<[1], [0], [0], [1], [0, 0, 1, 1], [], []>} : vector<64x32xbf16>, vector<32x128xbf16>, vector<64x128xf32> -> vector<64x128xf32>
    %c0_15 = arith.constant 0 : index
    %c0_16 = arith.constant 0 : index
    %13 = vector.load %arg6[%c0_15, %c0_16] : memref<32x128xbf16, #tpu.memory_space<vmem>>, vector<32x128xbf16>
    %cst_17 = arith.constant dense<0.000000e+00> : vector<64x128xf32>
    %14 = tpu.matmul %1, %13, %cst_17 {dimension_numbers = #tpu.dot_dimension_numbers<[1], [0], [0], [1], [0, 0, 1, 1], [], []>} : vector<64x32xbf16>, vector<32x128xbf16>, vector<64x128xf32> -> vector<64x128xf32>
    %15 = arith.addf %12, %14 : vector<64x128xf32>
    %c0_18 = arith.constant 0 : index
    %c0_19 = arith.constant 0 : index
    %16 = vector.load %arg8[%c0_18, %c0_19] : memref<1x128xf32, #tpu.memory_space<vmem>>, vector<1x128xf32>
    %17 = vector.broadcast %16 : vector<1x128xf32> to vector<64x128xf32>
    %18 = arith.addf %15, %17 : vector<64x128xf32>
    %c0_20 = arith.constant 0 : index
    %c0_21 = arith.constant 0 : index
    %19 = vector.load %arg10[%c0_20, %c0_21] : memref<64x128xf32, #tpu.memory_space<vmem>>, vector<64x128xf32>
    tpu.vector_store %arg10[%c0_20, %c0_21], %18 {strides = array<i32>} : memref<64x128xf32, #tpu.memory_space<vmem>>, vector<64x128xf32>,
    return
  }
  func.func @transform_0(%arg0: i32) -> (i32, i32) {
    %c0_i32 = arith.constant 0 : i32
    %c0_i32_0 = arith.constant 0 : i32
    return %arg0, %c0_i32 : i32, i32
  }
  func.func @transform_1(%arg0: i32) -> (i32, i32) {
    %c0_i32 = arith.constant 0 : i32
    %c0_i32_0 = arith.constant 0 : i32
    return %arg0, %c0_i32 : i32, i32
  }
  func.func @transform_2(%arg0: i32) -> (i32, i32) {
    %c0_i32 = arith.constant 0 : i32
    %c0_i32_0 = arith.constant 0 : i32
    %c0_i32_1 = arith.constant 0 : i32
    return %c0_i32, %c0_i32_0 : i32, i32
  }
  func.func @transform_3(%arg0: i32) -> (i32, i32) {
    %c0_i32 = arith.constant 0 : i32
    %c0_i32_0 = arith.constant 0 : i32
    %c0_i32_1 = arith.constant 0 : i32
    return %c0_i32, %c0_i32_0 : i32, i32
  }
  func.func @transform_4(%arg0: i32) -> (i32, i32) {
    %c0_i32 = arith.constant 0 : i32
    %c0_i32_0 = arith.constant 0 : i32
    %c0_i32_1 = arith.constant 0 : i32
    return %c0_i32, %c0_i32_0 : i32, i32
  }
  func.func @transform_5(%arg0: i32) -> (i32, i32) {
    %c0_i32 = arith.constant 0 : i32
    %c0_i32_0 = arith.constant 0 : i32
    %c0_i32_1 = arith.constant 0 : i32
    return %c0_i32, %c0_i32_0 : i32, i32
  }
  func.func @transform_6(%arg0: i32) -> (i32, i32) {
    %c0_i32 = arith.constant 0 : i32
    %c0_i32_0 = arith.constant 0 : i32
    %c0_i32_1 = arith.constant 0 : i32
    return %c0_i32, %c0_i32_0 : i32, i32
  }
  func.func @transform_7(%arg0: i32) -> (i32, i32) {
    %c0_i32 = arith.constant 0 : i32
    %c0_i32_0 = arith.constant 0 : i32
    %c0_i32_1 = arith.constant 0 : i32
    return %c0_i32, %c0_i32_0 : i32, i32
  }
  func.func @transform_8(%arg0: i32) -> (i32, i32) {
    %c0_i32 = arith.constant 0 : i32
    %c0_i32_0 = arith.constant 0 : i32
    return %arg0, %c0_i32 : i32, i32
  }
  func.func @transform_9(%arg0: i32) -> (i32, i32) {
    %c0_i32 = arith.constant 0 : i32
    %c0_i32_0 = arith.constant 0 : i32
    return %arg0, %c0_i32 : i32, i32
  }
}

module attributes {stable_mosaic.version = 11 : i64} {
  func.func @kernel(%arg0: i32, %arg1: memref<64x32xbf16, #tpu.memory_space<vmem>>, %arg2: memref<64x32xbf16, #tpu.memory_space<vmem>>, %arg3: memref<32x128xbf16, #tpu.memory_space<vmem>>, %arg4: memref<32x128xbf16, #tpu.memory_space<vmem>>, %arg5: memref<1x128xf32, #tpu.memory_space<vmem>>, %arg6: memref<64x128xf32, #tpu.memory_space<vmem>>) attributes {dimension_semantics = [#tpu.dimension_semantics<parallel>], iteration_bounds = array<i64: 1>, scalar_prefetch = 0 : i64, scratch_operands = 0 : i64, tpu.core_type = #tpu.core_type<tc>, window_params = [{transform_indices = @transform_0, window_bounds = array<i64: 64, 32>}, {transform_indices = @transform_1, window_bounds = array<i64: 64, 32>}, {pipeline_mode = #tpu.pipeline_mode<synchronous>, transform_indices = @transform_2, window_bounds = array<i64: 32, 128>}, {pipeline_mode = #tpu.pipeline_mode<synchronous>, transform_indices = @transform_3, window_bounds = array<i64: 32, 128>}, {pipeline_mode = #tpu.pipeline_mode<synchronous>, transform_indices = @transform_4, window_bounds = array<i64: 1, 128>}, {transform_indices = @transform_5, window_bounds = array<i64: 64, 128>}]} {
    %c0 = arith.constant 0 : index
    %c0_0 = arith.constant 0 : index
    %0 = vector.load %arg1[%c0, %c0_0] : memref<64x32xbf16, #tpu.memory_space<vmem>>, vector<64x32xbf16>
    %c0_1 = arith.constant 0 : index
    %c0_2 = arith.constant 0 : index
    %1 = vector.load %arg2[%c0_1, %c0_2] : memref<64x32xbf16, #tpu.memory_space<vmem>>, vector<64x32xbf16>
    %c0_3 = arith.constant 0 : index
    %c0_4 = arith.constant 0 : index
    %2 = vector.load %arg3[%c0_3, %c0_4] : memref<32x128xbf16, #tpu.memory_space<vmem>>, vector<32x128xbf16>
    %cst = arith.constant dense<0.000000e+00> : vector<64x128xf32>
    %3 = tpu.matmul %0, %2, %cst {dimension_numbers = #tpu.dot_dimension_numbers<[1], [0], [0], [1], [0, 0, 1, 1], [], []>} : vector<64x32xbf16>, vector<32x128xbf16>, vector<64x128xf32> -> vector<64x128xf32>
    %c0_5 = arith.constant 0 : index
    %c0_6 = arith.constant 0 : index
    %4 = vector.load %arg4[%c0_5, %c0_6] : memref<32x128xbf16, #tpu.memory_space<vmem>>, vector<32x128xbf16>
    %cst_7 = arith.constant dense<0.000000e+00> : vector<64x128xf32>
    %5 = tpu.matmul %1, %4, %cst_7 {dimension_numbers = #tpu.dot_dimension_numbers<[1], [0], [0], [1], [0, 0, 1, 1], [], []>} : vector<64x32xbf16>, vector<32x128xbf16>, vector<64x128xf32> -> vector<64x128xf32>
    %6 = arith.addf %3, %5 : vector<64x128xf32>
    %c0_8 = arith.constant 0 : index
    %c0_9 = arith.constant 0 : index
    %7 = vector.load %arg5[%c0_8, %c0_9] : memref<1x128xf32, #tpu.memory_space<vmem>>, vector<1x128xf32>
    %8 = vector.broadcast %7 : vector<1x128xf32> to vector<64x128xf32>
    %9 = arith.addf %6, %8 : vector<64x128xf32>
    %c0_10 = arith.constant 0 : index
    %c0_11 = arith.constant 0 : index
    %10 = vector.load %arg6[%c0_10, %c0_11] : memref<64x128xf32, #tpu.memory_space<vmem>>, vector<64x128xf32>
    tpu.vector_store %arg6[%c0_10, %c0_11], %9 {strides = array<i32>} : memref<64x128xf32, #tpu.memory_space<vmem>>, vector<64x128xf32>,
    return
  }
  func.func @transform_0(%arg0: i32) -> (i32, i32) {
    %c0_i32 = arith.constant 0 : i32
    %c0_i32_0 = arith.constant 0 : i32
    return %arg0, %c0_i32 : i32, i32
  }
  func.func @transform_1(%arg0: i32) -> (i32, i32) {
    %c0_i32 = arith.constant 0 : i32
    %c0_i32_0 = arith.constant 0 : i32
    return %arg0, %c0_i32 : i32, i32
  }
  func.func @transform_2(%arg0: i32) -> (i32, i32) {
    %c0_i32 = arith.constant 0 : i32
    %c0_i32_0 = arith.constant 0 : i32
    %c0_i32_1 = arith.constant 0 : i32
    return %c0_i32, %c0_i32_0 : i32, i32
  }
  func.func @transform_3(%arg0: i32) -> (i32, i32) {
    %c0_i32 = arith.constant 0 : i32
    %c0_i32_0 = arith.constant 0 : i32
    %c0_i32_1 = arith.constant 0 : i32
    return %c0_i32, %c0_i32_0 : i32, i32
  }
  func.func @transform_4(%arg0: i32) -> (i32, i32) {
    %c0_i32 = arith.constant 0 : i32
    %c0_i32_0 = arith.constant 0 : i32
    %c0_i32_1 = arith.constant 0 : i32
    return %c0_i32, %c0_i32_0 : i32, i32
  }
  func.func @transform_5(%arg0: i32) -> (i32, i32) {
    %c0_i32 = arith.constant 0 : i32
    %c0_i32_0 = arith.constant 0 : i32
    return %arg0, %c0_i32 : i32, i32
  }
}

</mosaic_0001>

<bundles_post_ra>
// kernel: bayesian_blstm_forward.5
= control target key start
LH: loop header
LB: loop body
LE: loop exit
PB: predicated region body
PF: predicated region fallthrough
CT: control target
= control target key end

     0   :  { %vm56_vm0 = vcmask 1041408   ;;  %vm43_vm1 = vcmask 31744   ;;  %s394_s1 = inlined_call_operand.vmem [shape: bf16[4,128], index: 1, kind: input, shape index: {}]   ;;  %s395_s2 = inlined_call_operand.vmem [shape: bf16[4,128], index: 2, kind: input, shape index: {}]   ;;  %s396_s0 = inlined_call_operand.vmem [shape: f32[64,4], index: 0, kind: input, shape index: {}]   ;;  %s397_s3 = inlined_call_operand.vmem [shape: f32[1,128], index: 3, kind: input, shape index: {}]   ;;  %s398_s4 = inlined_call_operand.vmem [shape: f32[1,128], index: 4, kind: input, shape index: {}]   ;;  %s399_s5 = inlined_call_operand.vmem [shape: f32[64,128], index: 5, kind: output, shape index: {0}]   ;;  %s400_s6 = inlined_call_operand.vmem [shape: f32[64,128], index: 6, kind: output, shape index: {1}]  }
   0x1   :  { %v35_v0 = vld [vmem:[%s394_s1] sm:$0x3]  ;;  %v24_v5 = vld [vmem:[%s396_s0 + $0x8] sm:$0xff]  ;;  %v25_v6 = vld [vmem:[%s396_s0 + $0x10] sm:$0xff] }
   0x2   :  { %v133_v1 = vld [vmem:[%s395_s2] sm:$0x3]  ;;  %265 = vmatprep.subr.msk.bf16.mxu0 %vm56_vm0, %v35_v0  ;;  %v58_v3 = vsel %vm56_vm0, %v35_v0, 0  ;;  %v26_v7 = vld [vmem:[%s396_s0 + $0x18] sm:$0xff]  ;;  %v28_v11 = vld [vmem:[%s396_s0 + $0x28] sm:$0xff] }
   0x3   :  { %v23_v2 = vld [vmem:[%s396_s0] sm:$0xff]  ;;  %266 = vmatprep.subr.msk.bf16.mxu1 %vm56_vm0, %v133_v1  ;;  %v142_v4 = vsel %vm56_vm0, %v133_v1, 0  ;;  %246 = vmatpush3.bf16.msra.mxu0 %v58_v3  ;;  %v32_v9 = vpack.c.bf16 %v26_v7, %v25_v6  ;;  %v29_v13 = vld [vmem:[%s396_s0 + $0x30] sm:$0xff]  ;;  %v30_v14 = vld [vmem:[%s396_s0 + $0x38] sm:$0xff] }
   0x4   :  { %256 = vmatpush3.bf16.msra.mxu1 %v142_v4  ;;  %v31_v8 = vpack.c.bf16 %v24_v5, %v23_v2  ;;  %v27_v10 = vld [vmem:[%s396_s0 + $0x20] sm:$0xff]  ;;  %v34_v15 = vpack.c.bf16 %v30_v14, %v29_v13 }
   0x5   :  { %v33_v12 = vpack.c.bf16 %v28_v11, %v27_v10  ;;  %v225_v16 = vld [vmem:[%s397_s3] ss:$0 sm:$0xff] }
   0x6   :  { %247 = vmatprep.mubr.msk.bf16.mxu0 %vm43_vm1, %v31_v8  ;;  %257 = vmatprep.mubr.msk.bf16.mxu1 %vm43_vm1, %v31_v8  ;;  %v230_v17 = vld [vmem:[%s398_s4] ss:$0 sm:$0xff] }
   0x7   :  { %248 = vmatmul.mubr.msk.bf16.vlgmr.msra.gmra.mrb[0].mxu0 %vm43_vm1, %v32_v9  ;;  %258 = vmatmul.mubr.msk.bf16.vlgmr.msra.gmra.mrb[0].mxu1 %vm43_vm1, %v32_v9 }
   0x8   :  { %251 = vmatprep.mubr.msk.bf16.mxu0 %vm43_vm1, %v33_v12  ;;  %261 = vmatprep.mubr.msk.bf16.mxu1 %vm43_vm1, %v33_v12 }
   0xf   :  { %252 = vmatmul.mubr.msk.bf16.gmra.mrb[4].mxu0 %vm43_vm1, %v34_v15  ;;  %262 = vmatmul.mubr.msk.bf16.gmra.mrb[4].mxu1 %vm43_vm1, %v34_v15 }
  0xda   :  { %v249_v18 = vpop.f32.mrb[0].mxu0  ;;  %v259_v19 = vpop.f32.mrb[0].mxu1 }
  0xdb   :  { %v103_v20 = vadd.f32 %v249_v18, %v225_v16  ;;  %v187_v21 = vadd.f32 %v259_v19, %v230_v17  ;;  %v94_v22 = vpop.f32.mrb[1].mxu0  ;;  %v178_v23 = vpop.f32.mrb[1].mxu1 }
  0xdc   :  { %v95_v24 = vadd.f32 %v225_v16, %v94_v22  ;;  %v179_v25 = vadd.f32 %v230_v17, %v178_v23  ;;  %v250_v26 = vpop.f32.mrb[2].mxu0  ;;  %v260_v27 = vpop.f32.mrb[2].mxu1 }
  0xdd   :  { %127 = vst [vmem:[%s399_s5 + $0x10] sm:$0xff] %v103_v20  ;;  %211 = vst [vmem:[%s400_s6 + $0x10] sm:$0xff] %v187_v21  ;;  %v106_v28 = vadd.f32 %v250_v26, %v225_v16  ;;  %v190_v29 = vadd.f32 %v260_v27, %v230_v17  ;;  %v97_v30 = vpop.f32.mrb[3].mxu0  ;;  %v181_v31 = vpop.f32.mrb[3].mxu1 }
  0xde   :  { %125 = vst [vmem:[%s399_s5] sm:$0xff] %v95_v24  ;;  %209 = vst [vmem:[%s400_s6] sm:$0xff] %v179_v25  ;;  %v98_v32 = vadd.f32 %v225_v16, %v97_v30  ;;  %v182_v33 = vadd.f32 %v230_v17, %v181_v31 }
  0xdf   :  { %128 = vst [vmem:[%s399_s5 + $0x18] sm:$0xff] %v106_v28  ;;  %212 = vst [vmem:[%s400_s6 + $0x18] sm:$0xff] %v190_v29 }
  0xe0   :  { %126 = vst [vmem:[%s399_s5 + $0x8] sm:$0xff] %v98_v32  ;;  %210 = vst [vmem:[%s400_s6 + $0x8] sm:$0xff] %v182_v33 }
  0xe2   :  { %v253_v34 = vpop.f32.mrb[4].mxu0  ;;  %v263_v35 = vpop.f32.mrb[4].mxu1 }
  0xe3   :  { %v119_v36 = vadd.f32 %v253_v34, %v225_v16  ;;  %v203_v37 = vadd.f32 %v263_v35, %v230_v17  ;;  %v110_v38 = vpop.f32.mrb[5].mxu0  ;;  %v194_v39 = vpop.f32.mrb[5].mxu1 }
  0xe4   :  { %v111_v40 = vadd.f32 %v225_v16, %v110_v38  ;;  %v195_v41 = vadd.f32 %v230_v17, %v194_v39  ;;  %v254_v42 = vpop.f32.mrb[6].mxu0  ;;  %v264_v43 = vpop.f32.mrb[6].mxu1 }
  0xe5   :  { %131 = vst [vmem:[%s399_s5 + $0x30] sm:$0xff] %v119_v36  ;;  %215 = vst [vmem:[%s400_s6 + $0x30] sm:$0xff] %v203_v37  ;;  %v122_v44 = vadd.f32 %v254_v42, %v225_v16  ;;  %v206_v45 = vadd.f32 %v264_v43, %v230_v17  ;;  %v113_v46 = vpop.f32.mrb[7].mxu0  ;;  %v197_v47 = vpop.f32.mrb[7].mxu1 }
  0xe6   :  { %129 = vst [vmem:[%s399_s5 + $0x20] sm:$0xff] %v111_v40  ;;  %213 = vst [vmem:[%s400_s6 + $0x20] sm:$0xff] %v195_v41  ;;  %v114_v48 = vadd.f32 %v225_v16, %v113_v46  ;;  %v198_v49 = vadd.f32 %v230_v17, %v197_v47 }
  0xe7   :  { %132 = vst [vmem:[%s399_s5 + $0x38] sm:$0xff] %v122_v44  ;;  %216 = vst [vmem:[%s400_s6 + $0x38] sm:$0xff] %v206_v45 }
  0xe8   :  { %130 = vst [vmem:[%s399_s5 + $0x28] sm:$0xff] %v114_v48  ;;  %214 = vst [vmem:[%s400_s6 + $0x28] sm:$0xff] %v198_v49 }

// kernel: bayesian_blstm_forward.9
= control target key start
LH: loop header
LB: loop body
LE: loop exit
PB: predicated region body
PF: predicated region fallthrough
CT: control target
= control target key end

     0   :  { %vm77_vm0 = vcmask 261120   ;;  %s469_s3 = inlined_call_operand.vmem [shape: bf16[32,128], index: 3, kind: input, shape index: {}]   ;;  %s470_s2 = inlined_call_operand.vmem [shape: bf16[32,128], index: 2, kind: input, shape index: {}]   ;;  %s471_s1 = inlined_call_operand.vmem [shape: bf16[64,32], index: 1, kind: input, shape index: {}]   ;;  %s472_s0 = inlined_call_operand.vmem [shape: bf16[64,32], index: 0, kind: input, shape index: {}]   ;;  %s473_s4 = inlined_call_operand.vmem [shape: f32[1,128], index: 4, kind: input, shape index: {}]   ;;  %s474_s5 = inlined_call_operand.vmem [shape: f32[64,128], index: 5, kind: output, shape index: {}]  }
   0x1   :  { %v356_v0 = vld [vmem:[%s469_s3] sm:$0xff]   ;;  %v358_v2 = vld [vmem:[%s469_s3 + $0x8] sm:$0xff]   ;;  %v364_v8 = vld [vmem:[%s471_s1 + $0x10] sm:$0xff]  }
   0x2   :  { %v357_v1 = vld [vmem:[%s470_s2] sm:$0xff]   ;;  %324 = vmatprep.subr.bf16.mxu1 %v356_v0  ;;  %v359_v3 = vld [vmem:[%s470_s2 + $0x8] sm:$0xff]   ;;  %v365_v9 = vld [vmem:[%s472_s0 + $0x10] sm:$0xff]  }
   0x3   :  { %336 = vmatprep.subr.bf16.mxu0 %v357_v1  ;;  %325 = vmatpush3.bf16.msra.mxu1 %v356_v0  ;;  %v360_v4 = vld [vmem:[%s471_s1] sm:$0xff]   ;;  %v362_v6 = vld [vmem:[%s471_s1 + $0x8] sm:$0xff]   ;;  %v366_v10 = vld [vmem:[%s471_s1 + $0x18] sm:$0xff]  }
   0x4   :  { %337 = vmatpush3.bf16.msra.mxu0 %v357_v1  ;;  %326 = vmatprep.subr.bf16.mxu1 %v358_v2  ;;  %v361_v5 = vld [vmem:[%s472_s0] sm:$0xff]   ;;  %v363_v7 = vld [vmem:[%s472_s0 + $0x8] sm:$0xff]   ;;  %v367_v11 = vld [vmem:[%s472_s0 + $0x18] sm:$0xff]  }
   0x5   :  { %338 = vmatprep.subr.bf16.mxu0 %v359_v3  ;;  %328 = vmatprep.mubr.msk.bf16.mxu1 %vm77_vm0, %v360_v4  ;;  %v311_v14 = vld [vmem:[%s473_s4] ss:$0 sm:$0xff] }
   0x6   :  { %340 = vmatprep.mubr.msk.bf16.mxu0 %vm77_vm0, %v361_v5 }
   0x7   :  { %327 = vmatpush3.bf16.msra.mxu1 %v358_v2 }
   0x8   :  { %339 = vmatpush3.bf16.msra.mxu0 %v359_v3 }
   0xa   :  { %329 = vmatmul.mubr.msk.bf16.vlgmr.msra.gmra.mrb[0].mxu1 %vm77_vm0, %v362_v6 }
   0xb   :  { %341 = vmatmul.mubr.msk.bf16.vlgmr.msra.gmra.mrb[0].mxu0 %vm77_vm0, %v363_v7  ;;  %332 = vmatprep.mubr.msk.bf16.mxu1 %vm77_vm0, %v364_v8 }
   0xc   :  { %344 = vmatprep.mubr.msk.bf16.mxu0 %vm77_vm0, %v365_v9 }
  0x12   :  { %333 = vmatmul.mubr.msk.bf16.gmra.mrb[4].mxu1 %vm77_vm0, %v366_v10 }
  0x13   :  { %345 = vmatmul.mubr.msk.bf16.gmra.mrb[4].mxu0 %vm77_vm0, %v367_v11 }
  0xdd   :  { %v330_v12 = vpop.f32.mrb[0].mxu1 }
  0xde   :  { %v342_v13 = vpop.f32.mrb[0].mxu0  ;;  %v124_v15 = vpop.f32.mrb[1].mxu1 }
  0xdf   :  { %v242_v16 = vadd.f32 %v342_v13, %v330_v12  ;;  %v233_v17 = vpop.f32.mrb[1].mxu0  ;;  %v331_v18 = vpop.f32.mrb[2].mxu1 }
  0xe0   :  { %v234_v19 = vadd.f32 %v233_v17, %v124_v15  ;;  %v343_v20 = vpop.f32.mrb[2].mxu0  ;;  %v127_v21 = vpop.f32.mrb[3].mxu1 }
  0xe1   :  { %v273_v22 = vadd.f32 %v311_v14, %v242_v16  ;;  %v245_v23 = vadd.f32 %v343_v20, %v331_v18  ;;  %v236_v24 = vpop.f32.mrb[3].mxu0 }
  0xe2   :  { %v271_v25 = vadd.f32 %v311_v14, %v234_v19  ;;  %v237_v26 = vadd.f32 %v236_v24, %v127_v21 }
  0xe3   :  { %281 = vst [vmem:[%s474_s5 + $0x10] sm:$0xff] %v273_v22  ;;  %v274_v27 = vadd.f32 %v311_v14, %v245_v23 }
  0xe4   :  { %279 = vst [vmem:[%s474_s5] sm:$0xff] %v271_v25  ;;  %v272_v28 = vadd.f32 %v311_v14, %v237_v26 }
  0xe5   :  { %282 = vst [vmem:[%s474_s5 + $0x18] sm:$0xff] %v274_v27  ;;  %v334_v29 = vpop.f32.mrb[4].mxu1 }
  0xe6   :  { %280 = vst [vmem:[%s474_s5 + $0x8] sm:$0xff] %v272_v28  ;;  %v346_v30 = vpop.f32.mrb[4].mxu0  ;;  %v140_v31 = vpop.f32.mrb[5].mxu1 }
  0xe7   :  { %v258_v32 = vadd.f32 %v346_v30, %v334_v29  ;;  %v249_v33 = vpop.f32.mrb[5].mxu0  ;;  %v335_v34 = vpop.f32.mrb[6].mxu1 }
  0xe8   :  { %v250_v35 = vadd.f32 %v249_v33, %v140_v31  ;;  %v347_v36 = vpop.f32.mrb[6].mxu0  ;;  %v143_v37 = vpop.f32.mrb[7].mxu1 }
  0xe9   :  { %v277_v38 = vadd.f32 %v311_v14, %v258_v32  ;;  %v261_v39 = vadd.f32 %v347_v36, %v335_v34  ;;  %v252_v40 = vpop.f32.mrb[7].mxu0 }
  0xea   :  { %v275_v41 = vadd.f32 %v311_v14, %v250_v35  ;;  %v253_v42 = vadd.f32 %v252_v40, %v143_v37 }
  0xeb   :  { %285 = vst [vmem:[%s474_s5 + $0x30] sm:$0xff] %v277_v38  ;;  %v278_v43 = vadd.f32 %v311_v14, %v261_v39 }
  0xec   :  { %283 = vst [vmem:[%s474_s5 + $0x20] sm:$0xff] %v275_v41  ;;  %v276_v44 = vadd.f32 %v311_v14, %v253_v42 }
  0xed   :  { %286 = vst [vmem:[%s474_s5 + $0x38] sm:$0xff] %v278_v43 }
  0xee   :  { %284 = vst [vmem:[%s474_s5 + $0x28] sm:$0xff] %v276_v44 }

// kernel: bayesian_blstm_forward.7
= control target key start
LH: loop header
LB: loop body
LE: loop exit
PB: predicated region body
PF: predicated region fallthrough
CT: control target
= control target key end

     0   :  { %vm88_vm0 = vcmask 261120   ;;  %s797_s3 = inlined_call_operand.vmem [shape: bf16[32,128], index: 3, kind: input, shape index: {}]   ;;  %s798_s5 = inlined_call_operand.vmem [shape: bf16[32,128], index: 5, kind: input, shape index: {}]   ;;  %s799_s1 = inlined_call_operand.vmem [shape: bf16[64,32], index: 1, kind: input, shape index: {}]   ;;  %s800_s2 = inlined_call_operand.vmem [shape: bf16[32,128], index: 2, kind: input, shape index: {}]   ;;  %s801_s4 = inlined_call_operand.vmem [shape: bf16[32,128], index: 4, kind: input, shape index: {}]   ;;  %s802_s0 = inlined_call_operand.vmem [shape: bf16[64,32], index: 0, kind: input, shape index: {}]   ;;  %s803_s6 = inlined_call_operand.vmem [shape: f32[1,128], index: 6, kind: input, shape index: {}]   ;;  %s804_s7 = inlined_call_operand.vmem [shape: f32[1,128], index: 7, kind: input, shape index: {}]   ;;  %s805_s8 = inlined_call_operand.vmem [shape: f32[64,128], index: 8, kind: output, shape index: {0}]   ;;  %s806_s9 = inlined_call_operand.vmem [shape: f32[64,128], index: 9, kind: output, shape index: {1}]  }
   0x1   :  { %v613_v0 = vld [vmem:[%s797_s3] sm:$0xff]   ;;  %v615_v2 = vld [vmem:[%s797_s3 + $0x8] sm:$0xff]   ;;  %v621_v8 = vld [vmem:[%s799_s1 + $0x10] sm:$0xff]  }
   0x2   :  { %v614_v1 = vld [vmem:[%s798_s5] sm:$0xff]   ;;  %549 = vmatprep.subr.bf16.mxu0 %v613_v0  ;;  %v616_v3 = vld [vmem:[%s798_s5 + $0x8] sm:$0xff]   ;;  %v622_v11 = vld [vmem:[%s799_s1 + $0x18] sm:$0xff]  }
   0x3   :  { %573 = vmatprep.subr.bf16.mxu1 %v614_v1  ;;  %550 = vmatpush3.bf16.msra.mxu0 %v613_v0  ;;  %v617_v4 = vld [vmem:[%s799_s1] sm:$0xff]   ;;  %v618_v5 = vld [vmem:[%s799_s1 + $0x8] sm:$0xff]   ;;  %v627_v14 = vld [vmem:[%s802_s0 + $0x10] sm:$0xff]  }
   0x4   :  { %574 = vmatpush3.bf16.msra.mxu1 %v614_v1  ;;  %551 = vmatprep.subr.bf16.mxu0 %v615_v2  ;;  %v619_v6 = vld [vmem:[%s800_s2] sm:$0xff]   ;;  %v623_v9 = vld [vmem:[%s800_s2 + $0x8] sm:$0xff]   ;;  %v628_v15 = vld [vmem:[%s802_s0 + $0x18] sm:$0xff]  }
   0x5   :  { %575 = vmatprep.subr.bf16.mxu1 %v616_v3  ;;  %553 = vmatprep.mubr.msk.bf16.mxu0 %vm88_vm0, %v617_v4  ;;  %v620_v7 = vld [vmem:[%s801_s4] sm:$0xff]   ;;  %v624_v10 = vld [vmem:[%s801_s4 + $0x8] sm:$0xff]  }
   0x6   :  { %577 = vmatprep.mubr.msk.bf16.mxu1 %vm88_vm0, %v617_v4  ;;  %v625_v12 = vld [vmem:[%s802_s0] sm:$0xff]   ;;  %v626_v13 = vld [vmem:[%s802_s0 + $0x8] sm:$0xff]  }
   0x7   :  { %552 = vmatpush3.bf16.msra.mxu0 %v615_v2  ;;  %v511_v16 = vld [vmem:[%s803_s6] ss:$0 sm:$0xff] }
   0x8   :  { %576 = vmatpush3.bf16.msra.mxu1 %v616_v3  ;;  %561 = vmatprep.subr.bf16.mxu0 %v619_v6  ;;  %v524_v17 = vld [vmem:[%s804_s7] ss:$0 sm:$0xff] }
   0x9   :  { %585 = vmatprep.subr.bf16.mxu1 %v620_v7 }
   0xa   :  { %554 = vmatmul.mubr.msk.bf16.vlgmr.msra.gmra.mrb[0].mxu0 %vm88_vm0, %v618_v5 }
   0xb   :  { %578 = vmatmul.mubr.msk.bf16.vlgmr.msra.gmra.mrb[0].mxu1 %vm88_vm0, %v618_v5  ;;  %562 = vmatpush3.bf16.msra.mxu0 %v619_v6 }
   0xc   :  { %586 = vmatpush3.bf16.msra.mxu1 %v620_v7  ;;  %557 = vmatprep.mubr.msk.bf16.mxu0 %vm88_vm0, %v621_v8 }
   0xd   :  { %581 = vmatprep.mubr.msk.bf16.mxu1 %vm88_vm0, %v621_v8  ;;  %563 = vmatprep.subr.bf16.mxu0 %v623_v9 }
   0xe   :  { %587 = vmatprep.subr.bf16.mxu1 %v624_v10 }
   0xf   :  { %564 = vmatpush3.bf16.msra.mxu0 %v623_v9 }
  0x10   :  { %588 = vmatpush3.bf16.msra.mxu1 %v624_v10 }
  0x12   :  { %558 = vmatmul.mubr.msk.bf16.gmra.mrb[4].mxu0 %vm88_vm0, %v622_v11 }
  0x13   :  { %582 = vmatmul.mubr.msk.bf16.gmra.mrb[4].mxu1 %vm88_vm0, %v622_v11  ;;  %565 = vmatprep.mubr.msk.bf16.mxu0 %vm88_vm0, %v625_v12 }
  0x14   :  { %589 = vmatprep.mubr.msk.bf16.mxu1 %vm88_vm0, %v625_v12 }
  0x1a   :  { %566 = vmatmul.mubr.msk.bf16.vlgmr.msra.gmra.mrb[0].mxu0 %vm88_vm0, %v626_v13 }
  0x1b   :  { %590 = vmatmul.mubr.msk.bf16.vlgmr.msra.gmra.mrb[0].mxu1 %vm88_vm0, %v626_v13  ;;  %569 = vmatprep.mubr.msk.bf16.mxu0 %vm88_vm0, %v627_v14 }
  0x1c   :  { %593 = vmatprep.mubr.msk.bf16.mxu1 %vm88_vm0, %v627_v14 }
  0x22   :  { %570 = vmatmul.mubr.msk.bf16.gmra.mrb[4].mxu0 %vm88_vm0, %v628_v15 }
  0x23   :  { %594 = vmatmul.mubr.msk.bf16.gmra.mrb[4].mxu1 %vm88_vm0, %v628_v15 }
  0xed   :  { %v567_v18 = vpop.f32.mrb[0].mxu0 }
  0xee   :  { %v284_v19 = vadd.f32 %v567_v18, %v511_v16  ;;  %v591_v20 = vpop.f32.mrb[0].mxu1  ;;  %v244_v21 = vpop.f32.mrb[1].mxu0 }
  0xef   :  { %v469_v22 = vadd.f32 %v591_v20, %v524_v17  ;;  %v282_v23 = vadd.f32 %v511_v16, %v244_v21  ;;  %v429_v24 = vpop.f32.mrb[1].mxu1  ;;  %v568_v25 = vpop.f32.mrb[2].mxu0 }
  0xf0   :  { %292 = vst [vmem:[%s805_s8 + $0x10] sm:$0xff] %v284_v19  ;;  %v467_v26 = vadd.f32 %v524_v17, %v429_v24  ;;  %v285_v27 = vadd.f32 %v568_v25, %v511_v16  ;;  %v592_v28 = vpop.f32.mrb[2].mxu1  ;;  %v247_v29 = vpop.f32.mrb[3].mxu0 }
  0xf1   :  { %477 = vst [vmem:[%s806_s9 + $0x10] sm:$0xff] %v469_v22  ;;  %290 = vst [vmem:[%s805_s8] sm:$0xff] %v282_v23  ;;  %v470_v30 = vadd.f32 %v592_v28, %v524_v17  ;;  %v283_v31 = vadd.f32 %v511_v16, %v247_v29  ;;  %v432_v32 = vpop.f32.mrb[3].mxu1 }
  0xf2   :  { %475 = vst [vmem:[%s806_s9] sm:$0xff] %v467_v26  ;;  %293 = vst [vmem:[%s805_s8 + $0x18] sm:$0xff] %v285_v27  ;;  %v468_v33 = vadd.f32 %v524_v17, %v432_v32 }
  0xf3   :  { %478 = vst [vmem:[%s806_s9 + $0x18] sm:$0xff] %v470_v30  ;;  %291 = vst [vmem:[%s805_s8 + $0x8] sm:$0xff] %v283_v31 }
  0xf4   :  { %476 = vst [vmem:[%s806_s9 + $0x8] sm:$0xff] %v468_v33 }
  0xf5   :  { %v571_v34 = vpop.f32.mrb[4].mxu0 }
  0xf6   :  { %v288_v35 = vadd.f32 %v571_v34, %v511_v16  ;;  %v595_v36 = vpop.f32.mrb[4].mxu1  ;;  %v260_v37 = vpop.f32.mrb[5].mxu0 }
  0xf7   :  { %v473_v38 = vadd.f32 %v595_v36, %v524_v17  ;;  %v286_v39 = vadd.f32 %v511_v16, %v260_v37  ;;  %v445_v40 = vpop.f32.mrb[5].mxu1  ;;  %v572_v41 = vpop.f32.mrb[6].mxu0 }
  0xf8   :  { %296 = vst [vmem:[%s805_s8 + $0x30] sm:$0xff] %v288_v35  ;;  %v471_v42 = vadd.f32 %v524_v17, %v445_v40  ;;  %v289_v43 = vadd.f32 %v572_v41, %v511_v16  ;;  %v596_v44 = vpop.f32.mrb[6].mxu1  ;;  %v263_v45 = vpop.f32.mrb[7].mxu0 }
  0xf9   :  { %481 = vst [vmem:[%s806_s9 + $0x30] sm:$0xff] %v473_v38  ;;  %294 = vst [vmem:[%s805_s8 + $0x20] sm:$0xff] %v286_v39  ;;  %v474_v46 = vadd.f32 %v596_v44, %v524_v17  ;;  %v287_v47 = vadd.f32 %v511_v16, %v263_v45  ;;  %v448_v48 = vpop.f32.mrb[7].mxu1 }
  0xfa   :  { %479 = vst [vmem:[%s806_s9 + $0x20] sm:$0xff] %v471_v42  ;;  %297 = vst [vmem:[%s805_s8 + $0x38] sm:$0xff] %v289_v43  ;;  %v472_v49 = vadd.f32 %v524_v17, %v448_v48 }
  0xfb   :  { %482 = vst [vmem:[%s806_s9 + $0x38] sm:$0xff] %v474_v46  ;;  %295 = vst [vmem:[%s805_s8 + $0x28] sm:$0xff] %v287_v47 }
  0xfc   :  { %480 = vst [vmem:[%s806_s9 + $0x28] sm:$0xff] %v472_v49 }

// kernel: bayesian_blstm_forward.6
= control target key start
LH: loop header
LB: loop body
LE: loop exit
PB: predicated region body
PF: predicated region fallthrough
CT: control target
= control target key end

     0   :  { %vm60_vm0 = vcmask 261120   ;;  %v2000_v0 = vmov 0.0   ;;  %vm2001_vm1 = vmmov 0   ;;  %s2002_s26 = smov 32   ;;  %s2003_s6 = smov 64   ;;  %vm177_vm2 = vcmask 257024   ;;  %s2509_s2 = inlined_call_operand.vmem [shape: bf16[32,128], index: 2, kind: input, shape index: {}]   ;;  %s2510_s3 = inlined_call_operand.vmem [shape: bf16[32,128], index: 3, kind: input, shape index: {}]   ;;  %s2511_s0 = inlined_call_operand.vmem [shape: f32[8,8,128], index: 0, kind: input, shape index: {}]   ;;  %s2512_s1 = inlined_call_operand.vmem [shape: f32[8,8,128], index: 1, kind: input, shape index: {}]   ;;  %s2513_s4 = inlined_call_operand.vmem [shape: bf16[8,8,32], index: 4, kind: output, shape index: {0}]   ;;  %s2514_s5 = inlined_call_operand.vmem [shape: bf16[8,8,32], index: 5, kind: output, shape index: {1}]  }
   0x1   :  { %1763 = vmatprep.subr.bf16.mxu0 %v2000_v0  ;;  %v2039_v1 = vld [vmem:[%s2509_s2] sm:$0xff]   ;;  %1771 = vmatprep.subr.bf16.mxu1 %v2000_v0  ;;  %61 = vst.msk [vmem:[#allocation2] sm:$0xff] %vm60_vm0, %v2000_v0  ;;  %62 = vst.msk [vmem:[#allocation3] sm:$0xff] %vm60_vm0, %v2000_v0  ;;  %v2063_v3 = vld [vmem:[%s2509_s2 + $0x8] sm:$0xff]   ;;  %s2004_s7 = smov 96  }
   0x2   :  { %63 = vst.msk [vmem:[#allocation4] sm:$0xff] %vm60_vm0, %v2000_v0  ;;  %64 = vst.msk [vmem:[#allocation5] sm:$0xff] %vm60_vm0, %v2000_v0  ;;  %v2053_v2 = vld [vmem:[%s2510_s3] sm:$0xff]   ;;  %1767 = vmatprep.mubr.msk.bf16.mxu0 %vm2001_vm1, %v2000_v0  ;;  %1775 = vmatprep.mubr.msk.bf16.mxu1 %vm2001_vm1, %v2000_v0  ;;  %v2070_v4 = vld [vmem:[%s2510_s3 + $0x8] sm:$0xff]  }
   0x3   :  { %1764 = vmatpush3.bf16.msra.mxu0 %v2039_v1  ;;  %1772 = vmatpush3.bf16.msra.mxu1 %v2053_v2  ;;  %v73_v11 = vld [vmem:[%s2511_s0] sm:$0xff]  ;;  %v1639_v12 = vld [vmem:[%s2512_s1 + $0x38] sm:$0xff]  ;;  %v1645_v59 = vld [vmem:[%s2511_s0 + $0x8] sm:$0xff] }
   0x4   :  { %1765 = vmatprep.subr.bf16.mxu0 %v2000_v0  ;;  %1773 = vmatprep.subr.bf16.mxu1 %v2000_v0 }
   0x7   :  { %1766 = vmatpush3.bf16.msra.mxu0 %v2063_v3  ;;  %1774 = vmatpush3.bf16.msra.mxu1 %v2070_v4 }
   0x8   :  { %v74_v5 = vld [vmem:[#allocation2] sm:$0xff]  ;;  %v75_v7 = vld [vmem:[#allocation3] sm:$0xff]  ;;  %1779 = vmatprep.subr.bf16.mxu0 %v2000_v0  ;;  %1787 = vmatprep.subr.bf16.mxu1 %v2000_v0 }
   0x9   :  { %v179_v6 = vld [vmem:[#allocation4] sm:$0xff]  ;;  %v76_v8 = vpack.c.bf16 %v74_v5, %v74_v5  ;;  %140 = vrot.lane.b32.xlu1 %v75_v7, %s2002_s26  ;;  %v180_v10 = vld [vmem:[#allocation5] sm:$0xff] }
   0xa   :  { %v183_v9 = vpack.c.bf16 %v179_v6, %v179_v6  ;;  %v1649_v5 = vld [vmem:[%s2512_s1 + $0x30] sm:$0xff] }
   0xb   :  { %1768 = vmatmul.mubr.msk.bf16.vlgmr.msra.gmra.mrb[0].mxu0 %vm60_vm0, %v76_v8 }
   0xc   :  { %1776 = vmatmul.mubr.msk.bf16.vlgmr.msra.gmra.mrb[0].mxu1 %vm60_vm0, %v183_v9  ;;  %1780 = vmatpush3.bf16.msra.mxu0 %v2039_v1 }
   0xd   :  { %1788 = vmatpush3.bf16.msra.mxu1 %v2053_v2  ;;  %246 = vrot.lane.b32.xlu1 %v180_v10, %s2002_s26 }
   0xe   :  { %1781 = vmatprep.subr.bf16.mxu0 %v2000_v0  ;;  %1783 = vmatprep.mubr.msk.bf16.mxu0 %vm2001_vm1, %v2000_v0 }
   0xf   :  { %1789 = vmatprep.subr.bf16.mxu1 %v2000_v0  ;;  %1791 = vmatprep.mubr.msk.bf16.mxu1 %vm2001_vm1, %v2000_v0 }
  0x10   :  { %1782 = vmatpush3.bf16.msra.mxu0 %v2063_v3 }
  0x11   :  { %1790 = vmatpush3.bf16.msra.mxu1 %v2070_v4  ;;  %1795 = vmatprep.subr.bf16.mxu0 %v2000_v0 }
  0x12   :  { %1803 = vmatprep.subr.bf16.mxu1 %v2000_v0 }
  0x7b   :  { %v141_v37 = vpop.permute.xlu1 %140 }
  0x7f   :  { %v247_v39 = vpop.permute.xlu1 %246 }
  0xde   :  { %v127_v13 = vpop.f32.mrb[0].mxu0 }
  0xdf   :  { %v233_v14 = vpop.f32.mrb[0].mxu1  ;;  %v133_v15 = vadd.f32 %v127_v13, %v73_v11  ;;  %v1769_v16 = vpop.f32.mrb[1].mxu0 }
  0xe0   :  { %v239_v17 = vadd.f32 %v1639_v12, %v233_v14  ;;  %v1777_v18 = vpop.f32.mrb[1].mxu1  ;;  %v130_v19 = vpop.f32.mrb[2].mxu0 }
  0xe1   :  { %v236_v20 = vpop.f32.mrb[2].mxu1  ;;  %1900 = vtanh.f32 %v133_v15  ;;  %v1770_v21 = vpop.f32.mrb[3].mxu0  ;;  %v134_v25 = vmul.f32 0.5, %v133_v15 }
  0xe2   :  { %v1778_v22 = vpop.f32.mrb[3].mxu1  ;;  %1902 = vtanh.f32 %v239_v17  ;;  %v240_v26 = vmul.f32 0.5, %v239_v17 }
  0xe3   :  { %1904 = vtanh.f32 %v134_v25 }
  0xe4   :  { %1906 = vtanh.f32 %v240_v26 }
  0xeb   :  { %v1901_v23 = vpop.eup %1900 }
  0xec   :  { %145 = vrot.lane.b32.xlu0 %v1901_v23, %s2003_s6  ;;  %v1903_v24 = vpop.eup %1902 }
  0xed   :  { %v1905_v27 = vpop.eup %1904 }
  0xee   :  { %v136_v28 = vadd.f32 1.0, %v1905_v27  ;;  %v1907_v29 = vpop.eup %1906 }
  0xef   :  { %v242_v30 = vadd.f32 1.0, %v1907_v29 }
  0xf0   :  { %251 = vrot.lane.b32.xlu0 %v1903_v24, %s2003_s6  ;;  %v137_v31 = vmul.f32 0.5, %v136_v28 }
  0xf1   :  { %v243_v34 = vmul.f32 0.5, %v242_v30 }
  0xf2   :  { %v143_v38 = vmul.f32 %v141_v37, %v137_v31 }
  0xf3   :  { %v249_v42 = vmul.f32 %v247_v39, %v243_v34 }
 0x15e   :  { %v146_v32 = vpop.permute.xlu0 %145 }
 0x15f   :  { %v148_v33 = vmul.f32 %v146_v32, %v137_v31 }
 0x161   :  { %150 = vrot.lane.b32.xlu0 %v148_v33, %s2002_s26 }
 0x162   :  { %v252_v35 = vpop.permute.xlu0 %251 }
 0x163   :  { %v254_v36 = vmul.f32 %v252_v35, %v243_v34 }
 0x165   :  { %256 = vrot.lane.b32.xlu1 %v254_v36, %s2002_s26 }
 0x1d3   :  { %v151_v40 = vpop.permute.xlu0 %150 }
 0x1d4   :  { %v153_v41 = vadd.f32 %v151_v40, %v143_v38 }
 0x1d6   :  { %1908 = vtanh.f32 %v153_v41 }
 0x1d7   :  { %v257_v43 = vpop.permute.xlu1 %256 }
 0x1d8   :  { %v259_v44 = vadd.f32 %v257_v43, %v249_v42 }
 0x1da   :  { %1910 = vtanh.f32 %v259_v44 }
 0x1e0   :  { %v1909_v45 = vpop.eup %1908 }
 0x1e1   :  { %156 = vrot.lane.b32.xlu0 %v1909_v45, %s2003_s6 }
 0x1e4   :  { %v1911_v46 = vpop.eup %1910 }
 0x1e5   :  { %262 = vrot.lane.b32.xlu1 %v1911_v46, %s2003_s6 }
 0x253   :  { %v157_v47 = vpop.permute.xlu0 %156 }
 0x254   :  { %v2105_v48 = vmul.f32 %v157_v47, %v137_v31 }
 0x256   :  { %161 = vrot.lane.b32.xlu0 %v2105_v48, %s2002_s26 }
 0x257   :  { %v263_v49 = vpop.permute.xlu1 %262 }
 0x258   :  { %v2109_v50 = vmul.f32 %v263_v49, %v243_v34 }
 0x25a   :  { %267 = vrot.lane.b32.xlu1 %v2109_v50, %s2002_s26  ;;  %166 = vrot.lane.b32.xlu0 %v153_v41, %s2004_s7 }
 0x25e   :  { %272 = vrot.lane.b32.xlu1 %v259_v44, %s2004_s7 }
 0x2c8   :  { %v162_v51 = vpop.permute.xlu0 %161 }
 0x2c9   :  { %164 = vst.msk [vmem:[#allocation2] sm:$0xff] %vm60_vm0, %v162_v51 }
 0x2cc   :  { %v268_v52 = vpop.permute.xlu1 %267  ;;  %v167_v53 = vpop.permute.xlu0 %166 }
 0x2cd   :  { %270 = vst.msk [vmem:[#allocation4] sm:$0xff] %vm60_vm0, %v268_v52  ;;  %169 = vst.msk [vmem:[#allocation3] sm:$0xff] %vm60_vm0, %v167_v53  ;;  %v1653_v52 = vld [vmem:[%s2511_s0 + $0x10] sm:$0xff] }
 0x2d0   :  { %v273_v54 = vpop.permute.xlu1 %272  ;;  %v287_v55 = vld [vmem:[#allocation2] sm:$0xff] }
 0x2d1   :  { %275 = vst.msk [vmem:[#allocation5] sm:$0xff] %vm60_vm0, %v273_v54  ;;  %v289_v56 = vpack.c.bf16 %v287_v55, %v287_v55 }
 0x2d3   :  { %1784 = vmatmul.mubr.msk.bf16.vlgmr.msra.gmra.mrb[4].mxu0 %vm60_vm0, %v289_v56 }
 0x2d4   :  { %v379_v57 = vld [vmem:[#allocation4] sm:$0xff]  ;;  %1796 = vmatpush3.bf16.msra.mxu0 %v2039_v1  ;;  %1799 = vmatprep.mubr.msk.bf16.mxu0 %vm2001_vm1, %v2000_v0  ;;  %v288_v14 = vld [vmem:[#allocation3] sm:$0xff] }
 0x2d5   :  { %v383_v58 = vpack.c.bf16 %v379_v57, %v379_v57  ;;  %1797 = vmatprep.subr.bf16.mxu0 %v2000_v0  ;;  %v1657_v57 = vld [vmem:[%s2512_s1 + $0x28] sm:$0xff] }
 0x2d7   :  { %1792 = vmatmul.mubr.msk.bf16.vlgmr.msra.gmra.mrb[4].mxu1 %vm60_vm0, %v383_v58 }
 0x2d8   :  { %1798 = vmatpush3.bf16.msra.mxu0 %v2063_v3  ;;  %1804 = vmatpush3.bf16.msra.mxu1 %v2053_v2  ;;  %v380_v15 = vld [vmem:[#allocation5] sm:$0xff] }
 0x2d9   :  { %1805 = vmatprep.subr.bf16.mxu1 %v2000_v0  ;;  %1807 = vmatprep.mubr.msk.bf16.mxu1 %vm2001_vm1, %v2000_v0 }
 0x2da   :  { %1811 = vmatprep.subr.bf16.mxu0 %v2000_v0 }
 0x2dc   :  { %1806 = vmatpush3.bf16.msra.mxu1 %v2070_v4 }
 0x2dd   :  { %1819 = vmatprep.subr.bf16.mxu1 %v2000_v0 }
 0x3a6   :  { %v327_v60 = vpop.f32.mrb[4].mxu0 }
 0x3a7   :  { %v333_v61 = vadd.f32 %v1645_v59, %v327_v60  ;;  %v1785_v62 = vpop.f32.mrb[5].mxu0 }
 0x3a8   :  { %v330_v63 = vpop.f32.mrb[6].mxu0 }
 0x3a9   :  { %1912 = vtanh.f32 %v333_v61  ;;  %v1786_v6 = vpop.f32.mrb[7].mxu0  ;;  %v334_v16 = vmul.f32 0.5, %v333_v61 }
 0x3aa   :  { %v421_v7 = vpop.f32.mrb[4].mxu1 }
 0x3ab   :  { %v427_v8 = vadd.f32 %v1649_v5, %v421_v7  ;;  %v1793_v9 = vpop.f32.mrb[5].mxu1 }
 0x3ac   :  { %v424_v10 = vpop.f32.mrb[6].mxu1 }
 0x3ad   :  { %1914 = vtanh.f32 %v427_v8  ;;  %v1794_v11 = vpop.f32.mrb[7].mxu1  ;;  %v428_v17 = vmul.f32 0.5, %v427_v8 }
 0x3ae   :  { %1916 = vtanh.f32 %v334_v16 }
 0x3af   :  { %1918 = vtanh.f32 %v428_v17 }
 0x3b3   :  { %v1913_v12 = vpop.eup %1912 }
 0x3b4   :  { %345 = vrot.lane.b32.xlu0 %v1913_v12, %s2003_s6 }
 0x3b7   :  { %v1915_v13 = vpop.eup %1914 }
 0x3b8   :  { %439 = vrot.lane.b32.xlu1 %v1915_v13, %s2003_s6  ;;  %340 = vrot.lane.b32.xlu0 %v288_v14, %s2002_s26  ;;  %v1917_v18 = vpop.eup %1916 }
 0x3b9   :  { %v336_v19 = vadd.f32 1.0, %v1917_v18  ;;  %v1919_v20 = vpop.eup %1918 }
 0x3ba   :  { %v430_v21 = vadd.f32 1.0, %v1919_v20 }
 0x3bb   :  { %v337_v22 = vmul.f32 0.5, %v336_v19 }
 0x3bc   :  { %434 = vrot.lane.b32.xlu1 %v380_v15, %s2002_s26  ;;  %v431_v25 = vmul.f32 0.5, %v430_v21 }
 0x426   :  { %v346_v23 = vpop.permute.xlu0 %345 }
 0x427   :  { %v348_v24 = vmul.f32 %v346_v23, %v337_v22 }
 0x429   :  { %350 = vrot.lane.b32.xlu0 %v348_v24, %s2002_s26 }
 0x42a   :  { %v440_v26 = vpop.permute.xlu1 %439  ;;  %v341_v28 = vpop.permute.xlu0 %340 }
 0x42b   :  { %v442_v27 = vmul.f32 %v440_v26, %v431_v25  ;;  %v343_v29 = vmul.f32 %v341_v28, %v337_v22 }
 0x42d   :  { %444 = vrot.lane.b32.xlu1 %v442_v27, %s2002_s26 }
 0x42e   :  { %v435_v30 = vpop.permute.xlu1 %434 }
 0x42f   :  { %v437_v33 = vmul.f32 %v435_v30, %v431_v25 }
 0x49b   :  { %v351_v31 = vpop.permute.xlu0 %350 }
 0x49c   :  { %v353_v32 = vadd.f32 %v351_v31, %v343_v29 }
 0x49e   :  { %1920 = vtanh.f32 %v353_v32 }
 0x49f   :  { %v445_v34 = vpop.permute.xlu1 %444 }
 0x4a0   :  { %v447_v35 = vadd.f32 %v445_v34, %v437_v33 }
 0x4a2   :  { %1922 = vtanh.f32 %v447_v35 }
 0x4a8   :  { %v1921_v36 = vpop.eup %1920 }
 0x4a9   :  { %356 = vrot.lane.b32.xlu0 %v1921_v36, %s2003_s6 }
 0x4ac   :  { %v1923_v37 = vpop.eup %1922 }
 0x4ad   :  { %450 = vrot.lane.b32.xlu1 %v1923_v37, %s2003_s6 }
 0x51b   :  { %v357_v38 = vpop.permute.xlu0 %356 }
 0x51c   :  { %v2147_v39 = vmul.f32 %v357_v38, %v337_v22 }
 0x51e   :  { %361 = vrot.lane.b32.xlu0 %v2147_v39, %s2002_s26 }
 0x51f   :  { %v451_v40 = vpop.permute.xlu1 %450 }
 0x520   :  { %v2151_v41 = vmul.f32 %v451_v40, %v431_v25 }
 0x522   :  { %455 = vrot.lane.b32.xlu1 %v2151_v41, %s2002_s26  ;;  %366 = vrot.lane.b32.xlu0 %v353_v32, %s2004_s7 }
 0x526   :  { %460 = vrot.lane.b32.xlu1 %v447_v35, %s2004_s7 }
 0x590   :  { %v362_v42 = vpop.permute.xlu0 %361 }
 0x591   :  { %364 = vst.msk [vmem:[#allocation2] sm:$0xff] %vm60_vm0, %v362_v42 }
 0x594   :  { %v456_v43 = vpop.permute.xlu1 %455  ;;  %v367_v44 = vpop.permute.xlu0 %366 }
 0x595   :  { %458 = vst.msk [vmem:[#allocation4] sm:$0xff] %vm60_vm0, %v456_v43  ;;  %369 = vst.msk [vmem:[#allocation3] sm:$0xff] %vm60_vm0, %v367_v44 }
 0x598   :  { %v461_v45 = vpop.permute.xlu1 %460  ;;  %v475_v46 = vld [vmem:[#allocation2] sm:$0xff] }
 0x599   :  { %463 = vst.msk [vmem:[#allocation5] sm:$0xff] %vm60_vm0, %v461_v45  ;;  %v477_v47 = vpack.c.bf16 %v475_v46, %v475_v46  ;;  %v1661_v45 = vld [vmem:[%s2511_s0 + $0x18] sm:$0xff] }
 0x59b   :  { %1800 = vmatmul.mubr.msk.bf16.vlgmr.msra.gmra.mrb[8].mxu0 %vm60_vm0, %v477_v47 }
 0x59c   :  { %v567_v49 = vld [vmem:[#allocation4] sm:$0xff]  ;;  %1812 = vmatpush3.bf16.msra.mxu0 %v2039_v1  ;;  %1815 = vmatprep.mubr.msk.bf16.mxu0 %vm2001_vm1, %v2000_v0  ;;  %v476_v7 = vld [vmem:[#allocation3] sm:$0xff] }
 0x59d   :  { %v571_v51 = vpack.c.bf16 %v567_v49, %v567_v49  ;;  %1813 = vmatprep.subr.bf16.mxu0 %v2000_v0 }
 0x59f   :  { %1808 = vmatmul.mubr.msk.bf16.vlgmr.msra.gmra.mrb[8].mxu1 %vm60_vm0, %v571_v51 }
 0x5a0   :  { %1814 = vmatpush3.bf16.msra.mxu0 %v2063_v3  ;;  %1820 = vmatpush3.bf16.msra.mxu1 %v2053_v2  ;;  %v568_v8 = vld [vmem:[#allocation5] sm:$0xff] }
 0x5a1   :  { %1821 = vmatprep.subr.bf16.mxu1 %v2000_v0  ;;  %1823 = vmatprep.mubr.msk.bf16.mxu1 %vm2001_vm1, %v2000_v0 }
 0x5a2   :  { %1827 = vmatprep.subr.bf16.mxu0 %v2000_v0 }
 0x5a4   :  { %1822 = vmatpush3.bf16.msra.mxu1 %v2070_v4 }
 0x5a5   :  { %1835 = vmatprep.subr.bf16.mxu1 %v2000_v0 }
 0x66e   :  { %v515_v53 = vpop.f32.mrb[8].mxu0 }
 0x66f   :  { %v521_v54 = vadd.f32 %v1653_v52, %v515_v53  ;;  %v1801_v55 = vpop.f32.mrb[9].mxu0  ;;  %v1665_v52 = vld [vmem:[%s2512_s1 + $0x20] sm:$0xff] }
 0x670   :  { %v518_v56 = vpop.f32.mrb[10].mxu0 }
 0x671   :  { %1924 = vtanh.f32 %v521_v54  ;;  %v1802_v58 = vpop.f32.mrb[11].mxu0  ;;  %v522_v9 = vmul.f32 0.5, %v521_v54 }
 0x672   :  { %v609_v59 = vpop.f32.mrb[8].mxu1 }
 0x673   :  { %v615_v60 = vadd.f32 %v1657_v57, %v609_v59  ;;  %v1809_v61 = vpop.f32.mrb[9].mxu1 }
 0x674   :  { %v612_v62 = vpop.f32.mrb[10].mxu1 }
 0x675   :  { %1926 = vtanh.f32 %v615_v60  ;;  %v1810_v63 = vpop.f32.mrb[11].mxu1  ;;  %v616_v10 = vmul.f32 0.5, %v615_v60 }
 0x676   :  { %1928 = vtanh.f32 %v522_v9 }
 0x677   :  { %1930 = vtanh.f32 %v616_v10 }
 0x67b   :  { %v1925_v5 = vpop.eup %1924 }
 0x67c   :  { %533 = vrot.lane.b32.xlu0 %v1925_v5, %s2003_s6 }
 0x67f   :  { %v1927_v6 = vpop.eup %1926 }
 0x680   :  { %627 = vrot.lane.b32.xlu1 %v1927_v6, %s2003_s6  ;;  %528 = vrot.lane.b32.xlu0 %v476_v7, %s2002_s26  ;;  %v1929_v11 = vpop.eup %1928 }
 0x681   :  { %v524_v12 = vadd.f32 1.0, %v1929_v11  ;;  %v1931_v13 = vpop.eup %1930 }
 0x682   :  { %v618_v15 = vadd.f32 1.0, %v1931_v13 }
 0x683   :  { %v525_v14 = vmul.f32 0.5, %v524_v12 }
 0x684   :  { %622 = vrot.lane.b32.xlu1 %v568_v8, %s2002_s26  ;;  %v619_v18 = vmul.f32 0.5, %v618_v15 }
 0x6ee   :  { %v534_v16 = vpop.permute.xlu0 %533 }
 0x6ef   :  { %v536_v17 = vmul.f32 %v534_v16, %v525_v14 }
 0x6f1   :  { %538 = vrot.lane.b32.xlu0 %v536_v17, %s2002_s26 }
 0x6f2   :  { %v628_v19 = vpop.permute.xlu1 %627  ;;  %v529_v21 = vpop.permute.xlu0 %528 }
 0x6f3   :  { %v630_v20 = vmul.f32 %v628_v19, %v619_v18  ;;  %v531_v22 = vmul.f32 %v529_v21, %v525_v14 }
 0x6f5   :  { %632 = vrot.lane.b32.xlu1 %v630_v20, %s2002_s26 }
 0x6f6   :  { %v623_v23 = vpop.permute.xlu1 %622 }
 0x6f7   :  { %v625_v26 = vmul.f32 %v623_v23, %v619_v18 }
 0x763   :  { %v539_v24 = vpop.permute.xlu0 %538 }
 0x764   :  { %v541_v25 = vadd.f32 %v539_v24, %v531_v22 }
 0x766   :  { %1932 = vtanh.f32 %v541_v25 }
 0x767   :  { %v633_v27 = vpop.permute.xlu1 %632 }
 0x768   :  { %v635_v28 = vadd.f32 %v633_v27, %v625_v26 }
 0x76a   :  { %1934 = vtanh.f32 %v635_v28 }
 0x770   :  { %v1933_v29 = vpop.eup %1932 }
 0x771   :  { %544 = vrot.lane.b32.xlu0 %v1933_v29, %s2003_s6 }
 0x774   :  { %v1935_v30 = vpop.eup %1934 }
 0x775   :  { %638 = vrot.lane.b32.xlu1 %v1935_v30, %s2003_s6 }
 0x7e3   :  { %v545_v31 = vpop.permute.xlu0 %544 }
 0x7e4   :  { %v2189_v32 = vmul.f32 %v545_v31, %v525_v14 }
 0x7e6   :  { %549 = vrot.lane.b32.xlu0 %v2189_v32, %s2002_s26 }
 0x7e7   :  { %v639_v33 = vpop.permute.xlu1 %638 }
 0x7e8   :  { %v2193_v34 = vmul.f32 %v639_v33, %v619_v18 }
 0x7ea   :  { %643 = vrot.lane.b32.xlu1 %v2193_v34, %s2002_s26  ;;  %554 = vrot.lane.b32.xlu0 %v541_v25, %s2004_s7 }
 0x7ee   :  { %648 = vrot.lane.b32.xlu1 %v635_v28, %s2004_s7 }
 0x858   :  { %v550_v35 = vpop.permute.xlu0 %549 }
 0x859   :  { %552 = vst.msk [vmem:[#allocation2] sm:$0xff] %vm60_vm0, %v550_v35 }
 0x85c   :  { %v644_v36 = vpop.permute.xlu1 %643  ;;  %v555_v37 = vpop.permute.xlu0 %554 }
 0x85d   :  { %646 = vst.msk [vmem:[#allocation4] sm:$0xff] %vm60_vm0, %v644_v36  ;;  %557 = vst.msk [vmem:[#allocation3] sm:$0xff] %vm60_vm0, %v555_v37 }
 0x860   :  { %v649_v38 = vpop.permute.xlu1 %648  ;;  %v663_v40 = vld [vmem:[#allocation2] sm:$0xff] }
 0x861   :  { %651 = vst.msk [vmem:[#allocation5] sm:$0xff] %vm60_vm0, %v649_v38  ;;  %v665_v42 = vpack.c.bf16 %v663_v40, %v663_v40 }
 0x863   :  { %1816 = vmatmul.mubr.msk.bf16.vlgmr.msra.gmra.mrb[12].mxu0 %vm60_vm0, %v665_v42  ;;  %v1669_v42 = vld [vmem:[%s2511_s0 + $0x20] sm:$0xff] }
 0x864   :  { %v755_v43 = vld [vmem:[#allocation4] sm:$0xff]  ;;  %1828 = vmatpush3.bf16.msra.mxu0 %v2039_v1  ;;  %1831 = vmatprep.mubr.msk.bf16.mxu0 %vm2001_vm1, %v2000_v0  ;;  %v664_v61 = vld [vmem:[#allocation3] sm:$0xff] }
 0x865   :  { %v759_v44 = vpack.c.bf16 %v755_v43, %v755_v43  ;;  %1829 = vmatprep.subr.bf16.mxu0 %v2000_v0 }
 0x867   :  { %1824 = vmatmul.mubr.msk.bf16.vlgmr.msra.gmra.mrb[12].mxu1 %vm60_vm0, %v759_v44 }
 0x868   :  { %1830 = vmatpush3.bf16.msra.mxu0 %v2063_v3  ;;  %1836 = vmatpush3.bf16.msra.mxu1 %v2053_v2  ;;  %v756_v62 = vld [vmem:[#allocation5] sm:$0xff] }
 0x869   :  { %1837 = vmatprep.subr.bf16.mxu1 %v2000_v0  ;;  %1839 = vmatprep.mubr.msk.bf16.mxu1 %vm2001_vm1, %v2000_v0 }
 0x86a   :  { %1843 = vmatprep.subr.bf16.mxu0 %v2000_v0 }
 0x86c   :  { %1838 = vmatpush3.bf16.msra.mxu1 %v2070_v4 }
 0x86d   :  { %1851 = vmatprep.subr.bf16.mxu1 %v2000_v0 }
 0x936   :  { %v703_v46 = vpop.f32.mrb[12].mxu0 }
 0x937   :  { %v709_v47 = vadd.f32 %v1661_v45, %v703_v46  ;;  %v1817_v49 = vpop.f32.mrb[13].mxu0 }
 0x938   :  { %v706_v51 = vpop.f32.mrb[14].mxu0 }
 0x939   :  { %1936 = vtanh.f32 %v709_v47  ;;  %v1818_v53 = vpop.f32.mrb[15].mxu0  ;;  %v710_v63 = vmul.f32 0.5, %v709_v47  ;;  %v1673_v47 = vld [vmem:[%s2512_s1 + $0x18] sm:$0xff] }
 0x93a   :  { %v797_v54 = vpop.f32.mrb[12].mxu1 }
 0x93b   :  { %v803_v55 = vadd.f32 %v1665_v52, %v797_v54  ;;  %v1825_v56 = vpop.f32.mrb[13].mxu1 }
 0x93c   :  { %v800_v57 = vpop.f32.mrb[14].mxu1 }
 0x93d   :  { %1938 = vtanh.f32 %v803_v55  ;;  %v1826_v58 = vpop.f32.mrb[15].mxu1  ;;  %v804_v5 = vmul.f32 0.5, %v803_v55 }
 0x93e   :  { %1940 = vtanh.f32 %v710_v63 }
 0x93f   :  { %1942 = vtanh.f32 %v804_v5 }
 0x943   :  { %v1937_v59 = vpop.eup %1936 }
 0x944   :  { %721 = vrot.lane.b32.xlu0 %v1937_v59, %s2003_s6 }
 0x947   :  { %v1939_v60 = vpop.eup %1938 }
 0x948   :  { %815 = vrot.lane.b32.xlu1 %v1939_v60, %s2003_s6  ;;  %716 = vrot.lane.b32.xlu0 %v664_v61, %s2002_s26  ;;  %v1941_v6 = vpop.eup %1940 }
 0x949   :  { %v712_v7 = vadd.f32 1.0, %v1941_v6  ;;  %v1943_v8 = vpop.eup %1942 }
 0x94a   :  { %v806_v10 = vadd.f32 1.0, %v1943_v8 }
 0x94b   :  { %v713_v9 = vmul.f32 0.5, %v712_v7 }
 0x94c   :  { %810 = vrot.lane.b32.xlu1 %v756_v62, %s2002_s26  ;;  %v807_v13 = vmul.f32 0.5, %v806_v10 }
 0x9b6   :  { %v722_v11 = vpop.permute.xlu0 %721 }
 0x9b7   :  { %v724_v12 = vmul.f32 %v722_v11, %v713_v9 }
 0x9b9   :  { %726 = vrot.lane.b32.xlu0 %v724_v12, %s2002_s26 }
 0x9ba   :  { %v816_v14 = vpop.permute.xlu1 %815  ;;  %v717_v16 = vpop.permute.xlu0 %716 }
 0x9bb   :  { %v818_v15 = vmul.f32 %v816_v14, %v807_v13  ;;  %v719_v17 = vmul.f32 %v717_v16, %v713_v9 }
 0x9bd   :  { %820 = vrot.lane.b32.xlu1 %v818_v15, %s2002_s26 }
 0x9be   :  { %v811_v18 = vpop.permute.xlu1 %810 }
 0x9bf   :  { %v813_v21 = vmul.f32 %v811_v18, %v807_v13 }
 0xa2b   :  { %v727_v19 = vpop.permute.xlu0 %726 }
 0xa2c   :  { %v729_v20 = vadd.f32 %v727_v19, %v719_v17 }
 0xa2e   :  { %1944 = vtanh.f32 %v729_v20 }
 0xa2f   :  { %v821_v22 = vpop.permute.xlu1 %820 }
 0xa30   :  { %v823_v23 = vadd.f32 %v821_v22, %v813_v21 }
 0xa32   :  { %1946 = vtanh.f32 %v823_v23 }
 0xa38   :  { %v1945_v24 = vpop.eup %1944 }
 0xa39   :  { %732 = vrot.lane.b32.xlu0 %v1945_v24, %s2003_s6 }
 0xa3c   :  { %v1947_v25 = vpop.eup %1946 }
 0xa3d   :  { %826 = vrot.lane.b32.xlu1 %v1947_v25, %s2003_s6 }
 0xaab   :  { %v733_v26 = vpop.permute.xlu0 %732 }
 0xaac   :  { %v2231_v27 = vmul.f32 %v733_v26, %v713_v9 }
 0xaae   :  { %737 = vrot.lane.b32.xlu0 %v2231_v27, %s2002_s26 }
 0xaaf   :  { %v827_v28 = vpop.permute.xlu1 %826 }
 0xab0   :  { %v2235_v29 = vmul.f32 %v827_v28, %v807_v13 }
 0xab2   :  { %831 = vrot.lane.b32.xlu1 %v2235_v29, %s2002_s26  ;;  %742 = vrot.lane.b32.xlu0 %v729_v20, %s2004_s7 }
 0xab6   :  { %836 = vrot.lane.b32.xlu1 %v823_v23, %s2004_s7 }
 0xb20   :  { %v738_v30 = vpop.permute.xlu0 %737 }
 0xb21   :  { %740 = vst.msk [vmem:[#allocation2] sm:$0xff] %vm60_vm0, %v738_v30 }
 0xb24   :  { %v832_v31 = vpop.permute.xlu1 %831  ;;  %v743_v33 = vpop.permute.xlu0 %742 }
 0xb25   :  { %834 = vst.msk [vmem:[#allocation4] sm:$0xff] %vm60_vm0, %v832_v31  ;;  %745 = vst.msk [vmem:[#allocation3] sm:$0xff] %vm60_vm0, %v743_v33 }
 0xb28   :  { %v837_v35 = vpop.permute.xlu1 %836  ;;  %v851_v36 = vld [vmem:[#allocation2] sm:$0xff] }
 0xb29   :  { %839 = vst.msk [vmem:[#allocation5] sm:$0xff] %vm60_vm0, %v837_v35  ;;  %v853_v37 = vpack.c.bf16 %v851_v36, %v851_v36 }
 0xb2b   :  { %1832 = vmatmul.mubr.msk.bf16.vlgmr.msra.gmra.mrb[16].mxu0 %vm60_vm0, %v853_v37 }
 0xb2c   :  { %v943_v38 = vld [vmem:[#allocation4] sm:$0xff]  ;;  %1844 = vmatpush3.bf16.msra.mxu0 %v2039_v1  ;;  %1847 = vmatprep.mubr.msk.bf16.mxu0 %vm2001_vm1, %v2000_v0  ;;  %v852_v58 = vld [vmem:[#allocation3] sm:$0xff] }
 0xb2d   :  { %v947_v40 = vpack.c.bf16 %v943_v38, %v943_v38  ;;  %1845 = vmatprep.subr.bf16.mxu0 %v2000_v0 }
 0xb2f   :  { %1840 = vmatmul.mubr.msk.bf16.vlgmr.msra.gmra.mrb[16].mxu1 %vm60_vm0, %v947_v40 }
 0xb30   :  { %1846 = vmatpush3.bf16.msra.mxu0 %v2063_v3  ;;  %1852 = vmatpush3.bf16.msra.mxu1 %v2053_v2  ;;  %v944_v59 = vld [vmem:[#allocation5] sm:$0xff] }
 0xb31   :  { %1853 = vmatprep.subr.bf16.mxu1 %v2000_v0  ;;  %1855 = vmatprep.mubr.msk.bf16.mxu1 %vm2001_vm1, %v2000_v0 }
 0xb32   :  { %1859 = vmatprep.subr.bf16.mxu0 %v2000_v0 }
 0xb34   :  { %1854 = vmatpush3.bf16.msra.mxu1 %v2070_v4 }
 0xb35   :  { %1867 = vmatprep.subr.bf16.mxu1 %v2000_v0 }
 0xbfe   :  { %v891_v43 = vpop.f32.mrb[16].mxu0 }
 0xbff   :  { %v897_v44 = vadd.f32 %v1669_v42, %v891_v43  ;;  %v1833_v45 = vpop.f32.mrb[17].mxu0 }
 0xc00   :  { %v894_v46 = vpop.f32.mrb[18].mxu0 }
 0xc01   :  { %1948 = vtanh.f32 %v897_v44  ;;  %v1834_v49 = vpop.f32.mrb[19].mxu0  ;;  %v898_v60 = vmul.f32 0.5, %v897_v44 }
 0xc02   :  { %v985_v51 = vpop.f32.mrb[16].mxu1 }
 0xc03   :  { %v991_v52 = vadd.f32 %v1673_v47, %v985_v51  ;;  %v1841_v53 = vpop.f32.mrb[17].mxu1 }
 0xc04   :  { %v988_v54 = vpop.f32.mrb[18].mxu1 }
 0xc05   :  { %1950 = vtanh.f32 %v991_v52  ;;  %v1842_v55 = vpop.f32.mrb[19].mxu1  ;;  %v992_v61 = vmul.f32 0.5, %v991_v52 }
 0xc06   :  { %1952 = vtanh.f32 %v898_v60 }
 0xc07   :  { %1954 = vtanh.f32 %v992_v61 }
 0xc0b   :  { %v1949_v56 = vpop.eup %1948 }
 0xc0c   :  { %909 = vrot.lane.b32.xlu0 %v1949_v56, %s2003_s6 }
 0xc0f   :  { %v1951_v57 = vpop.eup %1950 }
 0xc10   :  { %1003 = vrot.lane.b32.xlu1 %v1951_v57, %s2003_s6  ;;  %904 = vrot.lane.b32.xlu0 %v852_v58, %s2002_s26  ;;  %v1953_v62 = vpop.eup %1952 }
 0xc11   :  { %v900_v63 = vadd.f32 1.0, %v1953_v62  ;;  %v1955_v5 = vpop.eup %1954 }
 0xc12   :  { %v994_v7 = vadd.f32 1.0, %v1955_v5 }
 0xc13   :  { %v901_v6 = vmul.f32 0.5, %v900_v63 }
 0xc14   :  { %998 = vrot.lane.b32.xlu1 %v944_v59, %s2002_s26  ;;  %v995_v10 = vmul.f32 0.5, %v994_v7 }
 0xc7e   :  { %v910_v8 = vpop.permute.xlu0 %909 }
 0xc7f   :  { %v912_v9 = vmul.f32 %v910_v8, %v901_v6 }
 0xc81   :  { %914 = vrot.lane.b32.xlu0 %v912_v9, %s2002_s26 }
 0xc82   :  { %v1004_v11 = vpop.permute.xlu1 %1003  ;;  %v905_v13 = vpop.permute.xlu0 %904 }
 0xc83   :  { %v1006_v12 = vmul.f32 %v1004_v11, %v995_v10  ;;  %v907_v14 = vmul.f32 %v905_v13, %v901_v6 }
 0xc85   :  { %1008 = vrot.lane.b32.xlu1 %v1006_v12, %s2002_s26 }
 0xc86   :  { %v999_v15 = vpop.permute.xlu1 %998 }
 0xc87   :  { %v1001_v18 = vmul.f32 %v999_v15, %v995_v10 }
 0xcf3   :  { %v915_v16 = vpop.permute.xlu0 %914 }
 0xcf4   :  { %v917_v17 = vadd.f32 %v915_v16, %v907_v14 }
 0xcf6   :  { %1956 = vtanh.f32 %v917_v17 }
 0xcf7   :  { %v1009_v19 = vpop.permute.xlu1 %1008 }
 0xcf8   :  { %v1011_v20 = vadd.f32 %v1009_v19, %v1001_v18 }
 0xcfa   :  { %1958 = vtanh.f32 %v1011_v20 }
 0xd00   :  { %v1957_v21 = vpop.eup %1956 }
 0xd01   :  { %920 = vrot.lane.b32.xlu0 %v1957_v21, %s2003_s6 }
 0xd04   :  { %v1959_v22 = vpop.eup %1958 }
 0xd05   :  { %1014 = vrot.lane.b32.xlu1 %v1959_v22, %s2003_s6 }
 0xd73   :  { %v921_v23 = vpop.permute.xlu0 %920 }
 0xd74   :  { %v2273_v24 = vmul.f32 %v921_v23, %v901_v6 }
 0xd76   :  { %925 = vrot.lane.b32.xlu0 %v2273_v24, %s2002_s26 }
 0xd77   :  { %v1015_v25 = vpop.permute.xlu1 %1014 }
 0xd78   :  { %v2277_v26 = vmul.f32 %v1015_v25, %v995_v10 }
 0xd7a   :  { %1019 = vrot.lane.b32.xlu1 %v2277_v26, %s2002_s26  ;;  %930 = vrot.lane.b32.xlu0 %v917_v17, %s2004_s7 }
 0xd7e   :  { %1024 = vrot.lane.b32.xlu1 %v1011_v20, %s2004_s7 }
 0xde8   :  { %v926_v28 = vpop.permute.xlu0 %925 }
 0xde9   :  { %928 = vst.msk [vmem:[#allocation2] sm:$0xff] %vm60_vm0, %v926_v28 }
 0xdec   :  { %v1020_v30 = vpop.permute.xlu1 %1019  ;;  %v931_v31 = vpop.permute.xlu0 %930 }
 0xded   :  { %1022 = vst.msk [vmem:[#allocation4] sm:$0xff] %vm60_vm0, %v1020_v30  ;;  %933 = vst.msk [vmem:[#allocation3] sm:$0xff] %vm60_vm0, %v931_v31 }
 0xdf0   :  { %v1025_v33 = vpop.permute.xlu1 %1024  ;;  %v1039_v35 = vld [vmem:[#allocation2] sm:$0xff] }
 0xdf1   :  { %1027 = vst.msk [vmem:[#allocation5] sm:$0xff] %vm60_vm0, %v1025_v33  ;;  %v1041_v36 = vpack.c.bf16 %v1039_v35, %v1039_v35  ;;  %v1996_v35 = vld [vmem:[%s2509_s2] sm:$0xff]  }
 0xdf3   :  { %1848 = vmatmul.mubr.msk.bf16.vlgmr.msra.gmra.mrb[20].mxu0 %vm60_vm0, %v1041_v36 }
 0xdf4   :  { %v1131_v37 = vld [vmem:[#allocation4] sm:$0xff]  ;;  %1860 = vmatpush3.bf16.msra.mxu0 %v2039_v1  ;;  %1863 = vmatprep.mubr.msk.bf16.mxu0 %vm2001_vm1, %v2000_v0  ;;  %v1677_v1 = vld [vmem:[%s2511_s0 + $0x28] sm:$0xff] }
 0xdf5   :  { %v1135_v38 = vpack.c.bf16 %v1131_v37, %v1131_v37  ;;  %1861 = vmatprep.subr.bf16.mxu0 %v2000_v0  ;;  %v1040_v53 = vld [vmem:[#allocation3] sm:$0xff] }
 0xdf6   :  { %v1997_v37 = vld [vmem:[%s2509_s2 + $0x8] sm:$0xff]  }
 0xdf7   :  { %1856 = vmatmul.mubr.msk.bf16.vlgmr.msra.gmra.mrb[20].mxu1 %vm60_vm0, %v1135_v38  ;;  %v1998_v38 = vld [vmem:[%s2510_s3] sm:$0xff]  }
 0xdf8   :  { %1862 = vmatpush3.bf16.msra.mxu0 %v2063_v3  ;;  %1868 = vmatpush3.bf16.msra.mxu1 %v2053_v2  ;;  %v1681_v2 = vld [vmem:[%s2512_s1 + $0x10] sm:$0xff]  ;;  %v1132_v54 = vld [vmem:[#allocation5] sm:$0xff] }
 0xdf9   :  { %1869 = vmatprep.subr.bf16.mxu1 %v2000_v0  ;;  %1871 = vmatprep.mubr.msk.bf16.mxu1 %vm2001_vm1, %v2000_v0 }
 0xdfa   :  { %1875 = vmatprep.subr.bf16.mxu0 %v2000_v0 }
 0xdfc   :  { %1870 = vmatpush3.bf16.msra.mxu1 %v2070_v4 }
 0xdfd   :  { %1883 = vmatprep.subr.bf16.mxu1 %v2000_v0 }
 0xec6   :  { %v1079_v40 = vpop.f32.mrb[20].mxu0 }
 0xec7   :  { %v1085_v42 = vadd.f32 %v1677_v1, %v1079_v40  ;;  %v1849_v3 = vpop.f32.mrb[21].mxu0  ;;  %v1999_v1 = vld [vmem:[%s2510_s3 + $0x8] sm:$0xff]   ;;  %v1685_v40 = vld [vmem:[%s2511_s0 + $0x30] sm:$0xff] }
 0xec8   :  { %v1082_v43 = vpop.f32.mrb[22].mxu0 }
 0xec9   :  { %1960 = vtanh.f32 %v1085_v42  ;;  %v1850_v44 = vpop.f32.mrb[23].mxu0  ;;  %v1086_v55 = vmul.f32 0.5, %v1085_v42 }
 0xeca   :  { %v1173_v45 = vpop.f32.mrb[20].mxu1  ;;  %v1689_v44 = vld [vmem:[%s2512_s1 + $0x8] sm:$0xff] }
 0xecb   :  { %v1179_v46 = vadd.f32 %v1681_v2, %v1173_v45  ;;  %v1857_v47 = vpop.f32.mrb[21].mxu1 }
 0xecc   :  { %v1176_v4 = vpop.f32.mrb[22].mxu1 }
 0xecd   :  { %1962 = vtanh.f32 %v1179_v46  ;;  %v1858_v49 = vpop.f32.mrb[23].mxu1  ;;  %v1180_v56 = vmul.f32 0.5, %v1179_v46 }
 0xece   :  { %1964 = vtanh.f32 %v1086_v55 }
 0xecf   :  { %1966 = vtanh.f32 %v1180_v56 }
 0xed3   :  { %v1961_v51 = vpop.eup %1960 }
 0xed4   :  { %1097 = vrot.lane.b32.xlu0 %v1961_v51, %s2003_s6 }
 0xed7   :  { %v1963_v52 = vpop.eup %1962 }
 0xed8   :  { %1191 = vrot.lane.b32.xlu1 %v1963_v52, %s2003_s6  ;;  %1092 = vrot.lane.b32.xlu0 %v1040_v53, %s2002_s26  ;;  %v1965_v57 = vpop.eup %1964 }
 0xed9   :  { %v1088_v58 = vadd.f32 1.0, %v1965_v57  ;;  %v1967_v59 = vpop.eup %1966 }
 0xeda   :  { %v1182_v61 = vadd.f32 1.0, %v1967_v59 }
 0xedb   :  { %v1089_v60 = vmul.f32 0.5, %v1088_v58 }
 0xedc   :  { %1186 = vrot.lane.b32.xlu1 %v1132_v54, %s2002_s26  ;;  %v1183_v5 = vmul.f32 0.5, %v1182_v61 }
 0xf46   :  { %v1098_v62 = vpop.permute.xlu0 %1097 }
 0xf47   :  { %v1100_v63 = vmul.f32 %v1098_v62, %v1089_v60 }
 0xf49   :  { %1102 = vrot.lane.b32.xlu0 %v1100_v63, %s2002_s26 }
 0xf4a   :  { %v1192_v6 = vpop.permute.xlu1 %1191  ;;  %v1093_v8 = vpop.permute.xlu0 %1092 }
 0xf4b   :  { %v1194_v7 = vmul.f32 %v1192_v6, %v1183_v5  ;;  %v1095_v9 = vmul.f32 %v1093_v8, %v1089_v60 }
 0xf4d   :  { %1196 = vrot.lane.b32.xlu1 %v1194_v7, %s2002_s26 }
 0xf4e   :  { %v1187_v10 = vpop.permute.xlu1 %1186 }
 0xf4f   :  { %v1189_v13 = vmul.f32 %v1187_v10, %v1183_v5 }
 0xfbb   :  { %v1103_v11 = vpop.permute.xlu0 %1102 }
 0xfbc   :  { %v1105_v12 = vadd.f32 %v1103_v11, %v1095_v9 }
 0xfbe   :  { %1968 = vtanh.f32 %v1105_v12 }
 0xfbf   :  { %v1197_v14 = vpop.permute.xlu1 %1196 }
 0xfc0   :  { %v1199_v15 = vadd.f32 %v1197_v14, %v1189_v13 }
 0xfc2   :  { %1970 = vtanh.f32 %v1199_v15 }
 0xfc8   :  { %v1969_v16 = vpop.eup %1968 }
 0xfc9   :  { %1108 = vrot.lane.b32.xlu0 %v1969_v16, %s2003_s6 }
 0xfcc   :  { %v1971_v17 = vpop.eup %1970 }
 0xfcd   :  { %1202 = vrot.lane.b32.xlu1 %v1971_v17, %s2003_s6 }
0x103b   :  { %v1109_v18 = vpop.permute.xlu0 %1108 }
0x103c   :  { %v2315_v19 = vmul.f32 %v1109_v18, %v1089_v60 }
0x103e   :  { %1113 = vrot.lane.b32.xlu0 %v2315_v19, %s2002_s26 }
0x103f   :  { %v1203_v20 = vpop.permute.xlu1 %1202 }
0x1040   :  { %v2319_v21 = vmul.f32 %v1203_v20, %v1183_v5 }
0x1042   :  { %1207 = vrot.lane.b32.xlu1 %v2319_v21, %s2002_s26  ;;  %1118 = vrot.lane.b32.xlu0 %v1105_v12, %s2004_s7 }
0x1046   :  { %1212 = vrot.lane.b32.xlu1 %v1199_v15, %s2004_s7 }
0x10b0   :  { %v1114_v22 = vpop.permute.xlu0 %1113 }
0x10b1   :  { %1116 = vst.msk [vmem:[#allocation2] sm:$0xff] %vm60_vm0, %v1114_v22 }
0x10b4   :  { %v1208_v23 = vpop.permute.xlu1 %1207  ;;  %v1119_v25 = vpop.permute.xlu0 %1118 }
0x10b5   :  { %1210 = vst.msk [vmem:[#allocation4] sm:$0xff] %vm60_vm0, %v1208_v23  ;;  %1121 = vst.msk [vmem:[#allocation3] sm:$0xff] %vm60_vm0, %v1119_v25 }
0x10b8   :  { %v1213_v28 = vpop.permute.xlu1 %1212  ;;  %v1227_v30 = vld [vmem:[#allocation2] sm:$0xff] }
0x10b9   :  { %1215 = vst.msk [vmem:[#allocation5] sm:$0xff] %vm60_vm0, %v1213_v28  ;;  %v1229_v31 = vpack.c.bf16 %v1227_v30, %v1227_v30 }
0x10bb   :  { %1864 = vmatmul.mubr.msk.bf16.vlgmr.msra.gmra.mrb[24].mxu0 %vm60_vm0, %v1229_v31 }
0x10bc   :  { %v1319_v33 = vld [vmem:[#allocation4] sm:$0xff]  ;;  %1876 = vmatpush3.bf16.msra.mxu0 %v1996_v35  ;;  %1879 = vmatprep.mubr.msk.bf16.mxu0 %vm2001_vm1, %v2000_v0  ;;  %v1228_v53 = vld [vmem:[#allocation3] sm:$0xff] }
0x10bd   :  { %v1323_v36 = vpack.c.bf16 %v1319_v33, %v1319_v33  ;;  %1877 = vmatprep.subr.bf16.mxu0 %v2000_v0 }
0x10bf   :  { %1872 = vmatmul.mubr.msk.bf16.vlgmr.msra.gmra.mrb[24].mxu1 %vm60_vm0, %v1323_v36 }
0x10c0   :  { %1878 = vmatpush3.bf16.msra.mxu0 %v1997_v37  ;;  %1884 = vmatpush3.bf16.msra.mxu1 %v1998_v38  ;;  %v1320_v54 = vld [vmem:[#allocation5] sm:$0xff] }
0x10c1   :  { %1885 = vmatprep.subr.bf16.mxu1 %v2000_v0  ;;  %1887 = vmatprep.mubr.msk.bf16.mxu1 %vm2001_vm1, %v2000_v0  ;;  %v1693_v38 = vld [vmem:[%s2511_s0 + $0x38] sm:$0xff] }
0x10c4   :  { %1886 = vmatpush3.bf16.msra.mxu1 %v1999_v1 }
0x118e   :  { %v1267_v42 = vpop.f32.mrb[24].mxu0 }
0x118f   :  { %v1273_v3 = vadd.f32 %v1685_v40, %v1267_v42  ;;  %v1865_v43 = vpop.f32.mrb[25].mxu0 }
0x1190   :  { %v1270_v2 = vpop.f32.mrb[26].mxu0  ;;  %v1509_v43 = vld [vmem:[%s2512_s1] sm:$0xff] }
0x1191   :  { %1972 = vtanh.f32 %v1273_v3  ;;  %v1866_v45 = vpop.f32.mrb[27].mxu0  ;;  %v1274_v55 = vmul.f32 0.5, %v1273_v3 }
0x1192   :  { %v1361_v0 = vpop.f32.mrb[24].mxu1 }
0x1193   :  { %v1367_v46 = vadd.f32 %v1689_v44, %v1361_v0  ;;  %v1873_v47 = vpop.f32.mrb[25].mxu1 }
0x1194   :  { %v1364_v4 = vpop.f32.mrb[26].mxu1 }
0x1195   :  { %1974 = vtanh.f32 %v1367_v46  ;;  %v1874_v49 = vpop.f32.mrb[27].mxu1  ;;  %v1368_v56 = vmul.f32 0.5, %v1367_v46 }
0x1196   :  { %1976 = vtanh.f32 %v1274_v55 }
0x1197   :  { %1978 = vtanh.f32 %v1368_v56 }
0x119b   :  { %v1973_v51 = vpop.eup %1972 }
0x119c   :  { %1285 = vrot.lane.b32.xlu0 %v1973_v51, %s2003_s6 }
0x119f   :  { %v1975_v52 = vpop.eup %1974 }
0x11a0   :  { %1379 = vrot.lane.b32.xlu1 %v1975_v52, %s2003_s6  ;;  %1280 = vrot.lane.b32.xlu0 %v1228_v53, %s2002_s26  ;;  %v1977_v57 = vpop.eup %1976 }
0x11a1   :  { %v1276_v58 = vadd.f32 1.0, %v1977_v57  ;;  %v1979_v59 = vpop.eup %1978 }
0x11a2   :  { %v1370_v61 = vadd.f32 1.0, %v1979_v59 }
0x11a3   :  { %v1277_v60 = vmul.f32 0.5, %v1276_v58 }
0x11a4   :  { %1374 = vrot.lane.b32.xlu1 %v1320_v54, %s2002_s26  ;;  %v1371_v5 = vmul.f32 0.5, %v1370_v61 }
0x120e   :  { %v1286_v62 = vpop.permute.xlu0 %1285 }
0x120f   :  { %v1288_v63 = vmul.f32 %v1286_v62, %v1277_v60 }
0x1211   :  { %1290 = vrot.lane.b32.xlu0 %v1288_v63, %s2002_s26 }
0x1212   :  { %v1380_v6 = vpop.permute.xlu1 %1379  ;;  %v1281_v8 = vpop.permute.xlu0 %1280 }
0x1213   :  { %v1382_v7 = vmul.f32 %v1380_v6, %v1371_v5  ;;  %v1283_v9 = vmul.f32 %v1281_v8, %v1277_v60 }
0x1215   :  { %1384 = vrot.lane.b32.xlu1 %v1382_v7, %s2002_s26 }
0x1216   :  { %v1375_v10 = vpop.permute.xlu1 %1374 }
0x1217   :  { %v1377_v13 = vmul.f32 %v1375_v10, %v1371_v5 }
0x1283   :  { %v1291_v11 = vpop.permute.xlu0 %1290 }
0x1284   :  { %v1293_v12 = vadd.f32 %v1291_v11, %v1283_v9 }
0x1286   :  { %1980 = vtanh.f32 %v1293_v12 }
0x1287   :  { %v1385_v14 = vpop.permute.xlu1 %1384 }
0x1288   :  { %v1387_v15 = vadd.f32 %v1385_v14, %v1377_v13 }
0x128a   :  { %1982 = vtanh.f32 %v1387_v15 }
0x1290   :  { %v1981_v16 = vpop.eup %1980 }
0x1291   :  { %1296 = vrot.lane.b32.xlu0 %v1981_v16, %s2003_s6 }
0x1294   :  { %v1983_v17 = vpop.eup %1982 }
0x1295   :  { %1390 = vrot.lane.b32.xlu1 %v1983_v17, %s2003_s6  ;;  %v1700_v17 = vpack.c.bf16 %v2109_v50, %v2109_v50  ;;  %v1704_v50 = vpack.c.bf16 %v2193_v34, %v2193_v34  ;;  %v1708_v34 = vpack.c.bf16 %v2277_v26, %v2277_v26 }
0x1303   :  { %v1297_v18 = vpop.permute.xlu0 %1296 }
0x1304   :  { %v2363_v20 = vmul.f32 %v1297_v18, %v1277_v60  ;;  %v1701_v18 = vpack.c.bf16 %v2147_v39, %v2147_v39  ;;  %v1705_v39 = vpack.c.bf16 %v2231_v27, %v2231_v27  ;;  %v1709_v27 = vpack.c.bf16 %v2315_v19, %v2315_v19 }
0x1306   :  { %1301 = vrot.lane.b32.xlu0 %v2363_v20, %s2002_s26 }
0x1307   :  { %v1391_v22 = vpop.permute.xlu1 %1390 }
0x1308   :  { %v2367_v23 = vmul.f32 %v1391_v22, %v1371_v5  ;;  %v1702_v22 = vpack.c.bf16 %v2151_v41, %v2151_v41  ;;  %v1706_v41 = vpack.c.bf16 %v2235_v29, %v2235_v29  ;;  %v1710_v29 = vpack.c.bf16 %v2319_v21, %v2319_v21 }
0x130a   :  { %1395 = vrot.lane.b32.xlu1 %v2367_v23, %s2002_s26  ;;  %1306 = vrot.lane.b32.xlu0 %v1293_v12, %s2004_s7  ;;  %v1712_v26 = vpack.c.bf16 %v2367_v23, %v2367_v23 }
0x130e   :  { %1400 = vrot.lane.b32.xlu1 %v1387_v15, %s2004_s7  ;;  %v1699_v15 = vpack.c.bf16 %v2105_v48, %v2105_v48  ;;  %v1703_v48 = vpack.c.bf16 %v2189_v32, %v2189_v32  ;;  %v1707_v32 = vpack.c.bf16 %v2273_v24, %v2273_v24  ;;  %v1711_v24 = vpack.c.bf16 %v2363_v20, %v2363_v20 }
0x1378   :  { %v1302_v25 = vpop.permute.xlu0 %1301 }
0x1379   :  { %1304 = vst.msk [vmem:[#allocation2] sm:$0xff] %vm60_vm0, %v1302_v25 }
0x137c   :  { %v1396_v28 = vpop.permute.xlu1 %1395  ;;  %v1307_v30 = vpop.permute.xlu0 %1306 }
0x137d   :  { %1398 = vst.msk [vmem:[#allocation4] sm:$0xff] %vm60_vm0, %v1396_v28  ;;  %1309 = vst.msk [vmem:[#allocation3] sm:$0xff] %vm60_vm0, %v1307_v30 }
0x1380   :  { %v1401_v31 = vpop.permute.xlu1 %1400  ;;  %v1415_v33 = vld [vmem:[#allocation2] sm:$0xff] }
0x1381   :  { %1403 = vst.msk [vmem:[#allocation5] sm:$0xff] %vm60_vm0, %v1401_v31  ;;  %v1417_v35 = vpack.c.bf16 %v1415_v33, %v1415_v33 }
0x1383   :  { %1880 = vmatmul.mubr.msk.bf16.vlgmr.msra.gmra.mrb[28].mxu0 %vm60_vm0, %v1417_v35 }
0x1384   :  { %v1507_v36 = vld [vmem:[#allocation4] sm:$0xff]  ;;  %v1416_v51 = vld [vmem:[#allocation3] sm:$0xff] }
0x1385   :  { %v1510_v37 = vpack.c.bf16 %v1507_v36, %v1507_v36 }
0x1387   :  { %1888 = vmatmul.mubr.msk.bf16.vlgmr.msra.gmra.mrb[28].mxu1 %vm60_vm0, %v1510_v37 }
0x1388   :  { %v1508_v52 = vld [vmem:[#allocation5] sm:$0xff] }
0x1456   :  { %v1455_v1 = vpop.f32.mrb[28].mxu0 }
0x1457   :  { %v1461_v40 = vadd.f32 %v1693_v38, %v1455_v1  ;;  %v1881_v42 = vpop.f32.mrb[29].mxu0 }
0x1458   :  { %v1458_v3 = vpop.f32.mrb[30].mxu0 }
0x1459   :  { %1984 = vtanh.f32 %v1461_v40  ;;  %v1882_v2 = vpop.f32.mrb[31].mxu0  ;;  %v1462_v53 = vmul.f32 0.5, %v1461_v40 }
0x145a   :  { %v1548_v44 = vpop.f32.mrb[28].mxu1 }
0x145b   :  { %v1554_v45 = vadd.f32 %v1548_v44, %v1509_v43  ;;  %v1889_v0 = vpop.f32.mrb[29].mxu1 }
0x145c   :  { %v1551_v46 = vpop.f32.mrb[30].mxu1 }
0x145d   :  { %1986 = vtanh.f32 %v1554_v45  ;;  %v1890_v47 = vpop.f32.mrb[31].mxu1  ;;  %v1555_v54 = vmul.f32 0.5, %v1554_v45 }
0x145e   :  { %1988 = vtanh.f32 %v1462_v53 }
0x145f   :  { %1990 = vtanh.f32 %v1555_v54 }
0x1463   :  { %v1985_v4 = vpop.eup %1984 }
0x1464   :  { %1473 = vrot.lane.b32.xlu0 %v1985_v4, %s2003_s6 }
0x1467   :  { %v1987_v49 = vpop.eup %1986 }
0x1468   :  { %1566 = vrot.lane.b32.xlu1 %v1987_v49, %s2003_s6  ;;  %1468 = vrot.lane.b32.xlu0 %v1416_v51, %s2002_s26  ;;  %v1989_v55 = vpop.eup %1988 }
0x1469   :  { %v1464_v56 = vadd.f32 1.0, %v1989_v55  ;;  %v1991_v57 = vpop.eup %1990 }
0x146a   :  { %v1557_v59 = vadd.f32 1.0, %v1991_v57 }
0x146b   :  { %v1465_v58 = vmul.f32 0.5, %v1464_v56 }
0x146c   :  { %1561 = vrot.lane.b32.xlu1 %v1508_v52, %s2002_s26  ;;  %v1558_v62 = vmul.f32 0.5, %v1557_v59 }
0x14d6   :  { %v1474_v60 = vpop.permute.xlu0 %1473 }
0x14d7   :  { %v1476_v61 = vmul.f32 %v1474_v60, %v1465_v58 }
0x14d9   :  { %1478 = vrot.lane.b32.xlu0 %v1476_v61, %s2002_s26 }
0x14da   :  { %v1567_v63 = vpop.permute.xlu1 %1566  ;;  %v1469_v6 = vpop.permute.xlu0 %1468 }
0x14db   :  { %v1569_v5 = vmul.f32 %v1567_v63, %v1558_v62  ;;  %v1471_v7 = vmul.f32 %v1469_v6, %v1465_v58 }
0x14dd   :  { %1571 = vrot.lane.b32.xlu1 %v1569_v5, %s2002_s26 }
0x14de   :  { %v1562_v8 = vpop.permute.xlu1 %1561 }
0x14df   :  { %v1564_v11 = vmul.f32 %v1562_v8, %v1558_v62 }
0x154b   :  { %v1479_v9 = vpop.permute.xlu0 %1478 }
0x154c   :  { %v1481_v10 = vadd.f32 %v1479_v9, %v1471_v7 }
0x154e   :  { %1992 = vtanh.f32 %v1481_v10 }
0x154f   :  { %v1572_v12 = vpop.permute.xlu1 %1571 }
0x1550   :  { %v1574_v13 = vadd.f32 %v1572_v12, %v1564_v11 }
0x1552   :  { %1994 = vtanh.f32 %v1574_v13 }
0x1558   :  { %v1993_v14 = vpop.eup %1992 }
0x1559   :  { %1484 = vrot.lane.b32.xlu0 %v1993_v14, %s2003_s6 }
0x155c   :  { %v1995_v16 = vpop.eup %1994 }
0x155d   :  { %1577 = vrot.lane.b32.xlu1 %v1995_v16, %s2003_s6  ;;  %174 = vrot.lane.b32.xlu0 %v1699_v15, %s2002_s26 }
0x1561   :  { %280 = vrot.lane.b32.xlu1 %v1700_v17, %s2002_s26  ;;  %374 = vrot.lane.b32.xlu0 %v1701_v18, %s2002_s26 }
0x1565   :  { %468 = vrot.lane.b32.xlu1 %v1702_v22, %s2002_s26  ;;  %562 = vrot.lane.b32.xlu0 %v1703_v48, %s2002_s26 }
0x1569   :  { %656 = vrot.lane.b32.xlu1 %v1704_v50, %s2002_s26  ;;  %750 = vrot.lane.b32.xlu0 %v1705_v39, %s2002_s26 }
0x156d   :  { %844 = vrot.lane.b32.xlu1 %v1706_v41, %s2002_s26  ;;  %938 = vrot.lane.b32.xlu0 %v1707_v32, %s2002_s26 }
0x1571   :  { %1032 = vrot.lane.b32.xlu1 %v1708_v34, %s2002_s26  ;;  %1126 = vrot.lane.b32.xlu0 %v1709_v27, %s2002_s26 }
0x1575   :  { %1220 = vrot.lane.b32.xlu1 %v1710_v29, %s2002_s26  ;;  %1314 = vrot.lane.b32.xlu0 %v1711_v24, %s2002_s26 }
0x1579   :  { %1408 = vrot.lane.b32.xlu1 %v1712_v26, %s2002_s26 }
0x157d   :  { %1494 = vrot.lane.b32.xlu1 %v1481_v10, %s2004_s7 }
0x15cb   :  { %v1485_v19 = vpop.permute.xlu0 %1484 }
0x15cc   :  { %v1487_v25 = vmul.f32 %v1485_v19, %v1465_v58 }
0x15ce   :  { %1489 = vrot.lane.b32.xlu0 %v1487_v25, %s2002_s26  ;;  %v1713_v30 = vpack.c.bf16 %v1487_v25, %v1487_v25 }
0x15cf   :  { %v1578_v21 = vpop.permute.xlu1 %1577  ;;  %v175_v28 = vpop.permute.xlu0 %174 }
0x15d0   :  { %v1580_v20 = vmul.f32 %v1578_v21, %v1558_v62  ;;  %178 = vst.msk [vmem:[%s2513_s4] sm:$0xf] %vm177_vm2, %v175_v28 }
0x15d2   :  { %1582 = vrot.lane.b32.xlu1 %v1580_v20, %s2002_s26  ;;  %1502 = vrot.lane.b32.xlu0 %v1713_v30, %s2002_s26  ;;  %v1714_v33 = vpack.c.bf16 %v1580_v20, %v1580_v20 }
0x15d3   :  { %v281_v23 = vpop.permute.xlu1 %280  ;;  %v375_v31 = vpop.permute.xlu0 %374 }
0x15d4   :  { %1644 = vst.msk [vmem:[%s2514_s5 + $0x1c] sm:$0xf] %vm177_vm2, %v281_v23  ;;  %1648 = vst.msk [vmem:[%s2513_s4 + $0x4] sm:$0xf] %vm177_vm2, %v375_v31 }
0x15d6   :  { %1595 = vrot.lane.b32.xlu1 %v1714_v33, %s2002_s26  ;;  %1587 = vrot.lane.b32.xlu0 %v1574_v13, %s2004_s7 }
0x15d7   :  { %v469_v35 = vpop.permute.xlu1 %468  ;;  %v563_v36 = vpop.permute.xlu0 %562 }
0x15d8   :  { %1652 = vst.msk [vmem:[%s2514_s5 + $0x18] sm:$0xf] %vm177_vm2, %v469_v35  ;;  %1656 = vst.msk [vmem:[%s2513_s4 + $0x8] sm:$0xf] %vm177_vm2, %v563_v36 }
0x15db   :  { %v657_v37 = vpop.permute.xlu1 %656  ;;  %v751_v38 = vpop.permute.xlu0 %750 }
0x15dc   :  { %1660 = vst.msk [vmem:[%s2514_s5 + $0x14] sm:$0xf] %vm177_vm2, %v657_v37  ;;  %1664 = vst.msk [vmem:[%s2513_s4 + $0xc] sm:$0xf] %vm177_vm2, %v751_v38 }
0x15df   :  { %v845_v1 = vpop.permute.xlu1 %844  ;;  %v939_v40 = vpop.permute.xlu0 %938 }
0x15e0   :  { %1668 = vst.msk [vmem:[%s2514_s5 + $0x10] sm:$0xf] %vm177_vm2, %v845_v1  ;;  %1672 = vst.msk [vmem:[%s2513_s4 + $0x10] sm:$0xf] %vm177_vm2, %v939_v40 }
0x15e3   :  { %v1033_v42 = vpop.permute.xlu1 %1032  ;;  %v1127_v3 = vpop.permute.xlu0 %1126 }
0x15e4   :  { %1676 = vst.msk [vmem:[%s2514_s5 + $0xc] sm:$0xf] %vm177_vm2, %v1033_v42  ;;  %1680 = vst.msk [vmem:[%s2513_s4 + $0x14] sm:$0xf] %vm177_vm2, %v1127_v3 }
0x15e7   :  { %v1221_v43 = vpop.permute.xlu1 %1220  ;;  %v1315_v2 = vpop.permute.xlu0 %1314 }
0x15e8   :  { %1684 = vst.msk [vmem:[%s2514_s5 + $0x8] sm:$0xf] %vm177_vm2, %v1221_v43  ;;  %1688 = vst.msk [vmem:[%s2513_s4 + $0x18] sm:$0xf] %vm177_vm2, %v1315_v2 }
0x15eb   :  { %v1409_v44 = vpop.permute.xlu1 %1408 }
0x15ec   :  { %1692 = vst.msk [vmem:[%s2514_s5 + $0x4] sm:$0xf] %vm177_vm2, %v1409_v44 }
0x15ef   :  { %v1495_v45 = vpop.permute.xlu1 %1494 }
0x15f0   :  { %1497 = vst.msk [vmem:[#allocation3] sm:$0xff] %vm60_vm0, %v1495_v45 }
0x1640   :  { %v1490_v0 = vpop.permute.xlu0 %1489 }
0x1641   :  { %1492 = vst.msk [vmem:[#allocation2] sm:$0xff] %vm60_vm0, %v1490_v0 }
0x1644   :  { %v1583_v46 = vpop.permute.xlu1 %1582  ;;  %v1503_v47 = vpop.permute.xlu0 %1502 }
0x1645   :  { %1585 = vst.msk [vmem:[#allocation4] sm:$0xff] %vm60_vm0, %v1583_v46 }
0x1646   :  { %1696 = vst.msk [vmem:[%s2513_s4 + $0x1c] sm:$0xf] %vm177_vm2, %v1503_v47 }
0x1648   :  { %v1596_v4 = vpop.permute.xlu1 %1595  ;;  %v1588_v49 = vpop.permute.xlu0 %1587 }
0x1649   :  { %1598 = vst.msk [vmem:[%s2514_s5] sm:$0xf] %vm177_vm2, %v1596_v4 }
0x164a   :  { %1590 = vst.msk [vmem:[#allocation5] sm:$0xff] %vm60_vm0, %v1588_v49 }

</bundles_post_ra>
